<compile_context>
chip_gen: v7x
topology: tpu7x:2x2x1
jax: 0.10.0
libtpu: 0.0.40
codegen_flags: <defaults>
</compile_context>

<pallas_src>
import jax
import jax.numpy as jnp
from jax import lax
from jax.experimental import pallas as pl
from jax.experimental.pallas import tpu as pltpu

EPS = 1e-5
K = 3        # both convs are 3x3, stride 1, no padding
CIN = 3      # conv1 input channels
C1 = 128     # conv1 output channels
C2 = 10      # conv2 output channels (logical)
C2P = 128    # conv2 output channels padded to a full lane width (lane-dense)


def _vmem():
    return pl.BlockSpec(memory_space=pltpu.MemorySpace.VMEM)


# ------------------------------ fused kernel --------------------------------

def _fused_cnn_kernel(p1_ref, w1_ref, b1_ref, g1_ref, be1_ref,
                      w2_ref, b2_ref, g2_ref, be2_ref,
                      o_ref, h1_ref):
    """Whole forward pass in one kernel.

    p1_ref : (M1, 9*CIN)   conv1 im2col patches, M1 = N*Ho1*Wo1, f32
    w1_ref : (9*CIN, C1)   conv1 weights as a matmul slab, f32
    b1/g1/be1 : (1, C1)    conv1 bias, BN1 gamma, BN1 beta
    w2_ref : (9, C1, C2P)  conv2 per-tap weight slabs, Cout zero-padded, bf16
    b2/g2/be2 : (1, C2P)   conv2 bias / BN2 gamma / BN2 beta (padded)
    o_ref  : (N, C2P)      pooled output (first C2 lanes are real)
    h1_ref : (N, Ho1, Wo1, C1) f32 VMEM scratch holding the conv1+BN1 activation
    """
    n, ho1, wo1, c1 = h1_ref.shape
    m1 = n * ho1 * wo1
    ho2, wo2 = ho1 - (K - 1), wo1 - (K - 1)
    hw2 = ho2 * wo2
    m2 = n * hw2
    c2p = o_ref.shape[1]

    # ---- conv1: single MXU matmul over im2col patches, + bias + F.relu ----
    z1 = jnp.dot(p1_ref[...], w1_ref[...], preferred_element_type=jnp.float32)
    a1 = jnp.maximum(z1 + b1_ref[...], 0.0)

    # ---- BatchNorm2d(128) with batch statistics (biased var), + ReLU ------
    mean1 = jnp.sum(a1, axis=0, keepdims=True) * (1.0 / m1)
    d1 = a1 - mean1
    var1 = jnp.sum(d1 * d1, axis=0, keepdims=True) * (1.0 / m1)
    h1 = jnp.maximum(d1 * lax.rsqrt(var1 + EPS) * g1_ref[...] + be1_ref[...], 0.0)

    # Keep the conv1 activation resident in VMEM for the conv2 taps
    # (last dim is 128 lanes, so this reshape is layout-friendly).
    h1_ref[...] = h1.reshape(n, ho1, wo1, c1)

    # ---- conv2: 9 accumulated shifted matmuls, bf16 operands, f32 acc -----
    acc2 = None
    for kh in range(K):
        for kw in range(K):
            tap = h1_ref[:, kh:kh + ho2, kw:kw + wo2, :]        # (N, Ho2, Wo2, C1)
            lhs = tap.reshape(m2, c1).astype(jnp.bfloat16)       # lane-dense 2D
            contrib = jnp.dot(lhs, w2_ref[kh * K + kw],
                              preferred_element_type=jnp.float32)
            acc2 = contrib if acc2 is None else acc2 + contrib

    # ---- bias + F.relu, BatchNorm2d(10) batch stats, + ReLU ----------------
    # Padded channels are exactly zero (zero weights & bias): their mean/var
    # are 0, so BN maps them to beta_pad = 0 (no NaNs); wrapper slices them off.
    a2 = jnp.maximum(acc2 + b2_ref[...], 0.0)
    mean2 = jnp.sum(a2, axis=0, keepdims=True) * (1.0 / m2)
    d2 = a2 - mean2
    var2 = jnp.sum(d2 * d2, axis=0, keepdims=True) * (1.0 / m2)
    h2 = jnp.maximum(d2 * lax.rsqrt(var2 + EPS) * g2_ref[...] + be2_ref[...], 0.0)

    # ---- AdaptiveAvgPool2d(1): mean over spatial positions, per sample -----
    rows = [jnp.sum(h2[i * hw2:(i + 1) * hw2, :], axis=0, keepdims=True)
            for i in range(n)]
    o_ref[...] = jnp.concatenate(rows, axis=0) * (1.0 / hw2)


# ------------------------------- JAX wrapper ---------------------------------

def _im2col_3x3(x_nhwc):
    """(N,H,W,C) -> (N*Ho*Wo, 9*C) patches, column order (kh, kw, c)."""
    n, h, w, c = x_nhwc.shape
    ho, wo = h - (K - 1), w - (K - 1)
    taps = [x_nhwc[:, i:i + ho, j:j + wo, :] for i in range(K) for j in range(K)]
    patches = jnp.concatenate(taps, axis=-1)            # (N, Ho, Wo, 9*C)
    return patches.reshape(n * ho * wo, K * K * c), (n, ho, wo)


def cnn_forward(x_nchw, params):
    x = jnp.transpose(x_nchw, (0, 2, 3, 1)).astype(jnp.float32)   # NCHW -> NHWC
    n, h, w, _ = x.shape
    ho1, wo1 = h - (K - 1), w - (K - 1)

    # conv1 im2col on the wrapper side (tiny: N*Ho1*Wo1 x 27 floats).
    p1, _ = _im2col_3x3(x)                                         # (M1, 27)

    # conv1 weights (Cout,Cin,KH,KW) -> (KH*KW*Cin, Cout) matching patch order.
    w1m = jnp.transpose(params["w1"], (2, 3, 1, 0)).reshape(K * K * CIN, C1)

    # conv2 weights as 9 per-tap (C1, C2P) slabs, Cout zero-padded 10 -> 128, bf16.
    w2t = jnp.transpose(params["w2"], (2, 3, 1, 0))                # (KH, KW, C1, C2)
    w2t = jnp.pad(w2t, ((0, 0), (0, 0), (0, 0), (0, C2P - C2)))
    w2t = w2t.reshape(K * K, C1, C2P).astype(jnp.bfloat16)

    def _pad_c2(v, fill):
        return jnp.pad(v, (0, C2P - C2), constant_values=fill).reshape(1, C2P)

    b2p = _pad_c2(params["b2"], 0.0)
    g2p = _pad_c2(params["g2"], 1.0)
    be2p = _pad_c2(params["be2"], 0.0)

    pooled = pl.pallas_call(
        _fused_cnn_kernel,
        out_shape=jax.ShapeDtypeStruct((n, C2P), jnp.float32),
        in_specs=[_vmem()] * 9,
        out_specs=_vmem(),
        scratch_shapes=[pltpu.VMEM((n, ho1, wo1, C1), jnp.float32)],
        compiler_params=pltpu.CompilerParams(vmem_limit_bytes=32 * 1024 * 1024),
    )(p1, w1m,
      params["b1"].reshape(1, C1), params["g1"].reshape(1, C1),
      params["be1"].reshape(1, C1),
      w2t, b2p, g2p, be2p)

    # Slice the padded channels and restore PyTorch's (N, 10, 1, 1) output.
    return pooled[:, :C2].reshape(n, C2, 1, 1)


def init_params(key):
    k1, k2, k3, k4 = jax.random.split(key, 4)
    w1 = jax.random.normal(k1, (C1, CIN, K, K), jnp.float32) / jnp.sqrt(CIN * 9.0)
    b1 = jax.random.normal(k2, (C1,), jnp.float32) * 0.01
    w2 = jax.random.normal(k3, (C2, C1, K, K), jnp.float32) / jnp.sqrt(C1 * 9.0)
    b2 = jax.random.normal(k4, (C2,), jnp.float32) * 0.01
    return dict(
        w1=w1, b1=b1,
        g1=jnp.ones((C1,), jnp.float32), be1=jnp.zeros((C1,), jnp.float32),
        w2=w2, b2=b2,
        g2=jnp.ones((C2,), jnp.float32), be2=jnp.zeros((C2,), jnp.float32),
    )


if __name__ == "__main__":
    key = jax.random.PRNGKey(0)
    pkey, xkey = jax.random.split(key)
    params = init_params(pkey)
    x = jax.random.normal(xkey, (2, 3, 16, 16), jnp.float32)   # NCHW like PyTorch
    out = jax.jit(cnn_forward)(x, params)
    jax.block_until_ready(out)
    assert out.shape == (2, C2, 1, 1), out.shape
    assert bool(jnp.all(jnp.isfinite(out))), "non-finite output"
    print("KERNEL_OK")
</pallas_src>

<mosaic_0001>
module attributes {stable_mosaic.version = 11 : i64} {
  func.func @_fused_cnn_kernel(%arg0: memref<392x27xf32, #tpu.memory_space<vmem>>, %arg1: memref<27x128xf32, #tpu.memory_space<vmem>>, %arg2: memref<1x128xf32, #tpu.memory_space<vmem>>, %arg3: memref<1x128xf32, #tpu.memory_space<vmem>>, %arg4: memref<1x128xf32, #tpu.memory_space<vmem>>, %arg5: memref<9x128x128xbf16, #tpu.memory_space<vmem>>, %arg6: memref<1x128xf32, #tpu.memory_space<vmem>>, %arg7: memref<1x128xf32, #tpu.memory_space<vmem>>, %arg8: memref<1x128xf32, #tpu.memory_space<vmem>>, %arg9: memref<2x128xf32, #tpu.memory_space<vmem>>, %arg10: memref<2x14x14x128xf32, #tpu.memory_space<vmem>>) attributes {dimension_semantics = [], scalar_prefetch = 0 : i64, scratch_operands = 1 : i64, tpu.core_type = #tpu.core_type<tc>} {
    %c0 = arith.constant 0 : index
    %c0_0 = arith.constant 0 : index
    %0 = vector.load %arg0[%c0, %c0_0] : memref<392x27xf32, #tpu.memory_space<vmem>>, vector<392x27xf32>
    %c0_1 = arith.constant 0 : index
    %c0_2 = arith.constant 0 : index
    %1 = vector.load %arg1[%c0_1, %c0_2] : memref<27x128xf32, #tpu.memory_space<vmem>>, vector<27x128xf32>
    %cst = arith.constant dense<0.000000e+00> : vector<392x128xf32>
    %2 = tpu.matmul %0, %1, %cst {dimension_numbers = #tpu.dot_dimension_numbers<[1], [0], [0], [1], [0, 0, 1, 1], [], []>} : vector<392x27xf32>, vector<27x128xf32>, vector<392x128xf32> -> vector<392x128xf32>
    %c0_3 = arith.constant 0 : index
    %c0_4 = arith.constant 0 : index
    %3 = vector.load %arg2[%c0_3, %c0_4] : memref<1x128xf32, #tpu.memory_space<vmem>>, vector<1x128xf32>
    %4 = vector.broadcast %3 : vector<1x128xf32> to vector<392x128xf32>
    %5 = arith.addf %2, %4 : vector<392x128xf32>
    %cst_5 = arith.constant 0.000000e+00 : f32
    %6 = vector.broadcast %cst_5 : f32 to vector<392x128xf32>
    %7 = arith.maximumf %5, %6 : vector<392x128xf32>
    %cst_6 = arith.constant dense<0.000000e+00> : vector<128xf32>
    %8 = vector.multi_reduction <add>, %7, %cst_6 [0] : vector<392x128xf32> to vector<128xf32>
    %9 = vector.shape_cast %8 : vector<128xf32> to vector<1x128xf32>
    %cst_7 = arith.constant 0.00255102036 : f32
    %10 = vector.broadcast %cst_7 : f32 to vector<1x128xf32>
    %11 = arith.mulf %9, %10 : vector<1x128xf32>
    %12 = vector.broadcast %11 : vector<1x128xf32> to vector<392x128xf32>
    %13 = arith.subf %7, %12 : vector<392x128xf32>
    %14 = arith.mulf %13, %13 : vector<392x128xf32>
    %cst_8 = arith.constant dense<0.000000e+00> : vector<128xf32>
    %15 = vector.multi_reduction <add>, %14, %cst_8 [0] : vector<392x128xf32> to vector<128xf32>
    %16 = vector.shape_cast %15 : vector<128xf32> to vector<1x128xf32>
    %cst_9 = arith.constant 0.00255102036 : f32
    %17 = vector.broadcast %cst_9 : f32 to vector<1x128xf32>
    %18 = arith.mulf %16, %17 : vector<1x128xf32>
    %cst_10 = arith.constant 9.99999974E-6 : f32
    %19 = vector.broadcast %cst_10 : f32 to vector<1x128xf32>
    %20 = arith.addf %18, %19 : vector<1x128xf32>
    %21 = math.rsqrt %20 : vector<1x128xf32>
    %22 = vector.broadcast %21 : vector<1x128xf32> to vector<392x128xf32>
    %23 = arith.mulf %13, %22 : vector<392x128xf32>
    %c0_11 = arith.constant 0 : index
    %c0_12 = arith.constant 0 : index
    %24 = vector.load %arg3[%c0_11, %c0_12] : memref<1x128xf32, #tpu.memory_space<vmem>>, vector<1x128xf32>
    %25 = vector.broadcast %24 : vector<1x128xf32> to vector<392x128xf32>
    %26 = arith.mulf %23, %25 : vector<392x128xf32>
    %c0_13 = arith.constant 0 : index
    %c0_14 = arith.constant 0 : index
    %27 = vector.load %arg4[%c0_13, %c0_14] : memref<1x128xf32, #tpu.memory_space<vmem>>, vector<1x128xf32>
    %28 = vector.broadcast %27 : vector<1x128xf32> to vector<392x128xf32>
    %29 = arith.addf %26, %28 : vector<392x128xf32>
    %cst_15 = arith.constant 0.000000e+00 : f32
    %30 = vector.broadcast %cst_15 : f32 to vector<392x128xf32>
    %31 = arith.maximumf %29, %30 : vector<392x128xf32>
    %32 = vector.shape_cast %31 : vector<392x128xf32> to vector<2x14x14x128xf32>
    %c0_16 = arith.constant 0 : index
    %c0_17 = arith.constant 0 : index
    %c0_18 = arith.constant 0 : index
    %c0_19 = arith.constant 0 : index
    %33 = vector.load %arg10[%c0_16, %c0_17, %c0_18, %c0_19] : memref<2x14x14x128xf32, #tpu.memory_space<vmem>>, vector<2x14x14x128xf32>
    tpu.vector_store %arg10[%c0_16, %c0_17, %c0_18, %c0_19], %32 {strides = array<i32>} : memref<2x14x14x128xf32, #tpu.memory_space<vmem>>, vector<2x14x14x128xf32>,
    %c0_20 = arith.constant 0 : index
    %c0_21 = arith.constant 0 : index
    %c0_22 = arith.constant 0 : index
    %c0_23 = arith.constant 0 : index
    %34 = vector.load %arg10[%c0_20, %c0_21, %c0_22, %c0_23] : memref<2x14x14x128xf32, #tpu.memory_space<vmem>>, vector<2x12x12x128xf32>
    %35 = vector.shape_cast %34 : vector<2x12x12x128xf32> to vector<288x128xf32>
    %36 = arith.truncf %35 : vector<288x128xf32> to vector<288x128xbf16>
    %c0_24 = arith.constant 0 : index
    %c0_25 = arith.constant 0 : index
    %c0_26 = arith.constant 0 : index
    %37 = vector.load %arg5[%c0_24, %c0_25, %c0_26] : memref<9x128x128xbf16, #tpu.memory_space<vmem>>, vector<1x128x128xbf16>
    %38 = vector.shape_cast %37 : vector<1x128x128xbf16> to vector<128x128xbf16>
    %cst_27 = arith.constant dense<0.000000e+00> : vector<288x128xf32>
    %39 = tpu.matmul %36, %38, %cst_27 {dimension_numbers = #tpu.dot_dimension_numbers<[1], [0], [0], [1], [0, 0, 1, 1], [], []>} : vector<288x128xbf16>, vector<128x128xbf16>, vector<288x128xf32> -> vector<288x128xf32>
    %c0_28 = arith.constant 0 : index
    %c0_29 = arith.constant 0 : index
    %c1 = arith.constant 1 : index
    %c0_30 = arith.constant 0 : index
    %40 = vector.load %arg10[%c0_28, %c0_29, %c1, %c0_30] : memref<2x14x14x128xf32, #tpu.memory_space<vmem>>, vector<2x12x12x128xf32>
    %41 = vector.shape_cast %40 : vector<2x12x12x128xf32> to vector<288x128xf32>
    %42 = arith.truncf %41 : vector<288x128xf32> to vector<288x128xbf16>
    %c1_31 = arith.constant 1 : index
    %c0_32 = arith.constant 0 : index
    %c0_33 = arith.constant 0 : index
    %43 = vector.load %arg5[%c1_31, %c0_32, %c0_33] : memref<9x128x128xbf16, #tpu.memory_space<vmem>>, vector<1x128x128xbf16>
    %44 = vector.shape_cast %43 : vector<1x128x128xbf16> to vector<128x128xbf16>
    %cst_34 = arith.constant dense<0.000000e+00> : vector<288x128xf32>
    %45 = tpu.matmul %42, %44, %cst_34 {dimension_numbers = #tpu.dot_dimension_numbers<[1], [0], [0], [1], [0, 0, 1, 1], [], []>} : vector<288x128xbf16>, vector<128x128xbf16>, vector<288x128xf32> -> vector<288x128xf32>
    %46 = arith.addf %39, %45 : vector<288x128xf32>
    %c0_35 = arith.constant 0 : index
    %c0_36 = arith.constant 0 : index
    %c2 = arith.constant 2 : index
    %c0_37 = arith.constant 0 : index
    %47 = vector.load %arg10[%c0_35, %c0_36, %c2, %c0_37] : memref<2x14x14x128xf32, #tpu.memory_space<vmem>>, vector<2x12x12x128xf32>
    %48 = vector.shape_cast %47 : vector<2x12x12x128xf32> to vector<288x128xf32>
    %49 = arith.truncf %48 : vector<288x128xf32> to vector<288x128xbf16>
    %c2_38 = arith.constant 2 : index
    %c0_39 = arith.constant 0 : index
    %c0_40 = arith.constant 0 : index
    %50 = vector.load %arg5[%c2_38, %c0_39, %c0_40] : memref<9x128x128xbf16, #tpu.memory_space<vmem>>, vector<1x128x128xbf16>
    %51 = vector.shape_cast %50 : vector<1x128x128xbf16> to vector<128x128xbf16>
    %cst_41 = arith.constant dense<0.000000e+00> : vector<288x128xf32>
    %52 = tpu.matmul %49, %51, %cst_41 {dimension_numbers = #tpu.dot_dimension_numbers<[1], [0], [0], [1], [0, 0, 1, 1], [], []>} : vector<288x128xbf16>, vector<128x128xbf16>, vector<288x128xf32> -> vector<288x128xf32>
    %53 = arith.addf %46, %52 : vector<288x128xf32>
    %c0_42 = arith.constant 0 : index
    %c1_43 = arith.constant 1 : index
    %c0_44 = arith.constant 0 : index
    %c0_45 = arith.constant 0 : index
    %54 = vector.load %arg10[%c0_42, %c1_43, %c0_44, %c0_45] : memref<2x14x14x128xf32, #tpu.memory_space<vmem>>, vector<2x12x12x128xf32>
    %55 = vector.shape_cast %54 : vector<2x12x12x128xf32> to vector<288x128xf32>
    %56 = arith.truncf %55 : vector<288x128xf32> to vector<288x128xbf16>
    %c3 = arith.constant 3 : index
    %c0_46 = arith.constant 0 : index
    %c0_47 = arith.constant 0 : index
    %57 = vector.load %arg5[%c3, %c0_46, %c0_47] : memref<9x128x128xbf16, #tpu.memory_space<vmem>>, vector<1x128x128xbf16>
    %58 = vector.shape_cast %57 : vector<1x128x128xbf16> to vector<128x128xbf16>
    %cst_48 = arith.constant dense<0.000000e+00> : vector<288x128xf32>
    %59 = tpu.matmul %56, %58, %cst_48 {dimension_numbers = #tpu.dot_dimension_numbers<[1], [0], [0], [1], [0, 0, 1, 1], [], []>} : vector<288x128xbf16>, vector<128x128xbf16>, vector<288x128xf32> -> vector<288x128xf32>
    %60 = arith.addf %53, %59 : vector<288x128xf32>
    %c0_49 = arith.constant 0 : index
    %c1_50 = arith.constant 1 : index
    %c1_51 = arith.constant 1 : index
    %c0_52 = arith.constant 0 : index
    %61 = vector.load %arg10[%c0_49, %c1_50, %c1_51, %c0_52] : memref<2x14x14x128xf32, #tpu.memory_space<vmem>>, vector<2x12x12x128xf32>
    %62 = vector.shape_cast %61 : vector<2x12x12x128xf32> to vector<288x128xf32>
    %63 = arith.truncf %62 : vector<288x128xf32> to vector<288x128xbf16>
    %c4 = arith.constant 4 : index
    %c0_53 = arith.constant 0 : index
    %c0_54 = arith.constant 0 : index
    %64 = vector.load %arg5[%c4, %c0_53, %c0_54] : memref<9x128x128xbf16, #tpu.memory_space<vmem>>, vector<1x128x128xbf16>
    %65 = vector.shape_cast %64 : vector<1x128x128xbf16> to vector<128x128xbf16>
    %cst_55 = arith.constant dense<0.000000e+00> : vector<288x128xf32>
    %66 = tpu.matmul %63, %65, %cst_55 {dimension_numbers = #tpu.dot_dimension_numbers<[1], [0], [0], [1], [0, 0, 1, 1], [], []>} : vector<288x128xbf16>, vector<128x128xbf16>, vector<288x128xf32> -> vector<288x128xf32>
    %67 = arith.addf %60, %66 : vector<288x128xf32>
    %c0_56 = arith.constant 0 : index
    %c1_57 = arith.constant 1 : index
    %c2_58 = arith.constant 2 : index
    %c0_59 = arith.constant 0 : index
    %68 = vector.load %arg10[%c0_56, %c1_57, %c2_58, %c0_59] : memref<2x14x14x128xf32, #tpu.memory_space<vmem>>, vector<2x12x12x128xf32>
    %69 = vector.shape_cast %68 : vector<2x12x12x128xf32> to vector<288x128xf32>
    %70 = arith.truncf %69 : vector<288x128xf32> to vector<288x128xbf16>
    %c5 = arith.constant 5 : index
    %c0_60 = arith.constant 0 : index
    %c0_61 = arith.constant 0 : index
    %71 = vector.load %arg5[%c5, %c0_60, %c0_61] : memref<9x128x128xbf16, #tpu.memory_space<vmem>>, vector<1x128x128xbf16>
    %72 = vector.shape_cast %71 : vector<1x128x128xbf16> to vector<128x128xbf16>
    %cst_62 = arith.constant dense<0.000000e+00> : vector<288x128xf32>
    %73 = tpu.matmul %70, %72, %cst_62 {dimension_numbers = #tpu.dot_dimension_numbers<[1], [0], [0], [1], [0, 0, 1, 1], [], []>} : vector<288x128xbf16>, vector<128x128xbf16>, vector<288x128xf32> -> vector<288x128xf32>
    %74 = arith.addf %67, %73 : vector<288x128xf32>
    %c0_63 = arith.constant 0 : index
    %c2_64 = arith.constant 2 : index
    %c0_65 = arith.constant 0 : index
    %c0_66 = arith.constant 0 : index
    %75 = vector.load %arg10[%c0_63, %c2_64, %c0_65, %c0_66] : memref<2x14x14x128xf32, #tpu.memory_space<vmem>>, vector<2x12x12x128xf32>
    %76 = vector.shape_cast %75 : vector<2x12x12x128xf32> to vector<288x128xf32>
    %77 = arith.truncf %76 : vector<288x128xf32> to vector<288x128xbf16>
    %c6 = arith.constant 6 : index
    %c0_67 = arith.constant 0 : index
    %c0_68 = arith.constant 0 : index
    %78 = vector.load %arg5[%c6, %c0_67, %c0_68] : memref<9x128x128xbf16, #tpu.memory_space<vmem>>, vector<1x128x128xbf16>
    %79 = vector.shape_cast %78 : vector<1x128x128xbf16> to vector<128x128xbf16>
    %cst_69 = arith.constant dense<0.000000e+00> : vector<288x128xf32>
    %80 = tpu.matmul %77, %79, %cst_69 {dimension_numbers = #tpu.dot_dimension_numbers<[1], [0], [0], [1], [0, 0, 1, 1], [], []>} : vector<288x128xbf16>, vector<128x128xbf16>, vector<288x128xf32> -> vector<288x128xf32>
    %81 = arith.addf %74, %80 : vector<288x128xf32>
    %c0_70 = arith.constant 0 : index
    %c2_71 = arith.constant 2 : index
    %c1_72 = arith.constant 1 : index
    %c0_73 = arith.constant 0 : index
    %82 = vector.load %arg10[%c0_70, %c2_71, %c1_72, %c0_73] : memref<2x14x14x128xf32, #tpu.memory_space<vmem>>, vector<2x12x12x128xf32>
    %83 = vector.shape_cast %82 : vector<2x12x12x128xf32> to vector<288x128xf32>
    %84 = arith.truncf %83 : vector<288x128xf32> to vector<288x128xbf16>
    %c7 = arith.constant 7 : index
    %c0_74 = arith.constant 0 : index
    %c0_75 = arith.constant 0 : index
    %85 = vector.load %arg5[%c7, %c0_74, %c0_75] : memref<9x128x128xbf16, #tpu.memory_space<vmem>>, vector<1x128x128xbf16>
    %86 = vector.shape_cast %85 : vector<1x128x128xbf16> to vector<128x128xbf16>
    %cst_76 = arith.constant dense<0.000000e+00> : vector<288x128xf32>
    %87 = tpu.matmul %84, %86, %cst_76 {dimension_numbers = #tpu.dot_dimension_numbers<[1], [0], [0], [1], [0, 0, 1, 1], [], []>} : vector<288x128xbf16>, vector<128x128xbf16>, vector<288x128xf32> -> vector<288x128xf32>
    %88 = arith.addf %81, %87 : vector<288x128xf32>
    %c0_77 = arith.constant 0 : index
    %c2_78 = arith.constant 2 : index
    %c2_79 = arith.constant 2 : index
    %c0_80 = arith.constant 0 : index
    %89 = vector.load %arg10[%c0_77, %c2_78, %c2_79, %c0_80] : memref<2x14x14x128xf32, #tpu.memory_space<vmem>>, vector<2x12x12x128xf32>
    %90 = vector.shape_cast %89 : vector<2x12x12x128xf32> to vector<288x128xf32>
    %91 = arith.truncf %90 : vector<288x128xf32> to vector<288x128xbf16>
    %c8 = arith.constant 8 : index
    %c0_81 = arith.constant 0 : index
    %c0_82 = arith.constant 0 : index
    %92 = vector.load %arg5[%c8, %c0_81, %c0_82] : memref<9x128x128xbf16, #tpu.memory_space<vmem>>, vector<1x128x128xbf16>
    %93 = vector.shape_cast %92 : vector<1x128x128xbf16> to vector<128x128xbf16>
    %cst_83 = arith.constant dense<0.000000e+00> : vector<288x128xf32>
    %94 = tpu.matmul %91, %93, %cst_83 {dimension_numbers = #tpu.dot_dimension_numbers<[1], [0], [0], [1], [0, 0, 1, 1], [], []>} : vector<288x128xbf16>, vector<128x128xbf16>, vector<288x128xf32> -> vector<288x128xf32>
    %95 = arith.addf %88, %94 : vector<288x128xf32>
    %c0_84 = arith.constant 0 : index
    %c0_85 = arith.constant 0 : index
    %96 = vector.load %arg6[%c0_84, %c0_85] : memref<1x128xf32, #tpu.memory_space<vmem>>, vector<1x128xf32>
    %97 = vector.broadcast %96 : vector<1x128xf32> to vector<288x128xf32>
    %98 = arith.addf %95, %97 : vector<288x128xf32>
    %cst_86 = arith.constant 0.000000e+00 : f32
    %99 = vector.broadcast %cst_86 : f32 to vector<288x128xf32>
    %100 = arith.maximumf %98, %99 : vector<288x128xf32>
    %cst_87 = arith.constant dense<0.000000e+00> : vector<128xf32>
    %101 = vector.multi_reduction <add>, %100, %cst_87 [0] : vector<288x128xf32> to vector<128xf32>
    %102 = vector.shape_cast %101 : vector<128xf32> to vector<1x128xf32>
    %cst_88 = arith.constant 0.00347222225 : f32
    %103 = vector.broadcast %cst_88 : f32 to vector<1x128xf32>
    %104 = arith.mulf %102, %103 : vector<1x128xf32>
    %105 = vector.broadcast %104 : vector<1x128xf32> to vector<288x128xf32>
    %106 = arith.subf %100, %105 : vector<288x128xf32>
    %107 = arith.mulf %106, %106 : vector<288x128xf32>
    %cst_89 = arith.constant dense<0.000000e+00> : vector<128xf32>
    %108 = vector.multi_reduction <add>, %107, %cst_89 [0] : vector<288x128xf32> to vector<128xf32>
    %109 = vector.shape_cast %108 : vector<128xf32> to vector<1x128xf32>
    %cst_90 = arith.constant 0.00347222225 : f32
    %110 = vector.broadcast %cst_90 : f32 to vector<1x128xf32>
    %111 = arith.mulf %109, %110 : vector<1x128xf32>
    %cst_91 = arith.constant 9.99999974E-6 : f32
    %112 = vector.broadcast %cst_91 : f32 to vector<1x128xf32>
    %113 = arith.addf %111, %112 : vector<1x128xf32>
    %114 = math.rsqrt %113 : vector<1x128xf32>
    %115 = vector.broadcast %114 : vector<1x128xf32> to vector<288x128xf32>
    %116 = arith.mulf %106, %115 : vector<288x128xf32>
    %c0_92 = arith.constant 0 : index
    %c0_93 = arith.constant 0 : index
    %117 = vector.load %arg7[%c0_92, %c0_93] : memref<1x128xf32, #tpu.memory_space<vmem>>, vector<1x128xf32>
    %118 = vector.broadcast %117 : vector<1x128xf32> to vector<288x128xf32>
    %119 = arith.mulf %116, %118 : vector<288x128xf32>
    %c0_94 = arith.constant 0 : index
    %c0_95 = arith.constant 0 : index
    %120 = vector.load %arg8[%c0_94, %c0_95] : memref<1x128xf32, #tpu.memory_space<vmem>>, vector<1x128xf32>
    %121 = vector.broadcast %120 : vector<1x128xf32> to vector<288x128xf32>
    %122 = arith.addf %119, %121 : vector<288x128xf32>
    %cst_96 = arith.constant 0.000000e+00 : f32
    %123 = vector.broadcast %cst_96 : f32 to vector<288x128xf32>
    %124 = arith.maximumf %122, %123 : vector<288x128xf32>
    %125 = vector.extract_strided_slice %124 {offsets = [0, 0], sizes = [144, 128], strides = [1, 1]} : vector<288x128xf32> to vector<144x128xf32>
    %cst_97 = arith.constant dense<0.000000e+00> : vector<128xf32>
    %126 = vector.multi_reduction <add>, %125, %cst_97 [0] : vector<144x128xf32> to vector<128xf32>
    %127 = vector.shape_cast %126 : vector<128xf32> to vector<1x128xf32>
    %128 = vector.extract_strided_slice %124 {offsets = [144, 0], sizes = [144, 128], strides = [1, 1]} : vector<288x128xf32> to vector<144x128xf32>
    %cst_98 = arith.constant dense<0.000000e+00> : vector<128xf32>
    %129 = vector.multi_reduction <add>, %128, %cst_98 [0] : vector<144x128xf32> to vector<128xf32>
    %130 = vector.shape_cast %129 : vector<128xf32> to vector<1x128xf32>
    %131 = tpu.concatenate %127, %130 in 0 : vector<1x128xf32>, vector<1x128xf32> -> vector<2x128xf32>
    %cst_99 = arith.constant 0.0069444445 : f32
    %132 = vector.broadcast %cst_99 : f32 to vector<2x128xf32>
    %133 = arith.mulf %131, %132 : vector<2x128xf32>
    %c0_100 = arith.constant 0 : index
    %c0_101 = arith.constant 0 : index
    %134 = vector.load %arg9[%c0_100, %c0_101] : memref<2x128xf32, #tpu.memory_space<vmem>>, vector<2x128xf32>
    tpu.vector_store %arg9[%c0_100, %c0_101], %133 {strides = array<i32>} : memref<2x128xf32, #tpu.memory_space<vmem>>, vector<2x128xf32>,
    return
  }
}

</mosaic_0001>

<bundles_post_ra>
// kernel: cnn_forward.1
= control target key start
LH: loop header
LB: loop body
LE: loop exit
PB: predicated region body
PF: predicated region fallthrough
CT: control target
= control target key end

     0   :  { %vm242_vm0 = vcmask 1042432   ;;  %v9609_v3 = vmov 0.0|0.0   ;;  %vm9610_vm1 = vmmov 0   ;;  %v9611_v6 = vmov 0.0   ;;  %s13706_s0 = inlined_call_operand.vmem [shape: f32[392,27], index: 0, kind: input, shape index: {}]   ;;  %s13707_s1 = inlined_call_operand.vmem [shape: f32[27,128], index: 1, kind: input, shape index: {}]   ;;  %s13708_s2 = inlined_call_operand.vmem [shape: f32[1,128], index: 2, kind: input, shape index: {}]   ;;  %s13709_s3 = inlined_call_operand.vmem [shape: f32[1,128], index: 3, kind: input, shape index: {}]   ;;  %s13710_s4 = inlined_call_operand.vmem [shape: f32[1,128], index: 4, kind: input, shape index: {}]   ;;  %s13711_s5 = inlined_call_operand.vmem [shape: bf16[9,128,128], index: 5, kind: input, shape index: {}]   ;;  %s13712_s6 = inlined_call_operand.vmem [shape: f32[1,128], index: 6, kind: input, shape index: {}]   ;;  %s13713_s7 = inlined_call_operand.vmem [shape: f32[1,128], index: 7, kind: input, shape index: {}]   ;;  %s13714_s8 = inlined_call_operand.vmem [shape: f32[1,128], index: 8, kind: input, shape index: {}]   ;;  %s13715_s9 = inlined_call_operand.hbm [shape: f32[2,128], index: 9, kind: output, shape index: {}]  }
   0x1   :  { %v83_v0 = vld [vmem:[%s13707_s1] sm:$0xff]  ;;  %v84_v1 = vld [vmem:[%s13707_s1 + $0x8] sm:$0xff]  ;;  %v85_v2 = vld [vmem:[%s13707_s1 + $0x10] sm:$0xff]  ;;  %8889 = vmatprep.subr.bf16.mxu0 %v9609_v3  ;;  %8274 = vmatprep.mubr.msk.f32.mxu0 %vm9610_vm1, %v9611_v6  ;;  %vm9612_vm2 = vmmov 1   ;;  %vm94_vm4 = vcmask 220160  }
   0x2   :  { %v8890_v4 = vpack.c.bf16 %v84_v1, %v83_v0  ;;  %v86_v5 = vld [vmem:[%s13707_s1 + $0x18] sm:$0x7]  ;;  %vm8894_vm3 = vmpackc.low %vm242_vm0, %vm9612_vm2  ;;  %v34_v8 = vld [vmem:[%s13706_s0] sm:$0xff] }
   0x3   :  { %v8893_v7 = vpack.c.bf16 %v86_v5, %v85_v2  ;;  %v35_v9 = vld [vmem:[%s13706_s0 + $0x8] sm:$0xff]  ;;  %v36_v10 = vld [vmem:[%s13706_s0 + $0x10] sm:$0xff]  ;;  %v37_v11 = vld [vmem:[%s13706_s0 + $0x18] sm:$0xff] }
   0x4   :  { %8891 = vmatpush3.bf16.msra.mxu0 %v8890_v4  ;;  %v38_v12 = vld [vmem:[%s13706_s0 + $0x20] sm:$0xff]  ;;  %v39_v13 = vld [vmem:[%s13706_s0 + $0x28] sm:$0xff]  ;;  %v40_v14 = vld [vmem:[%s13706_s0 + $0x30] sm:$0xff] }
   0x5   :  { %8892 = vmatprep.subr.bf16.mxu0 %v9609_v3  ;;  %v41_v15 = vld [vmem:[%s13706_s0 + $0x38] sm:$0xff]  ;;  %v42_v16 = vld [vmem:[%s13706_s0 + $0x40] sm:$0xff]  ;;  %v43_v17 = vld [vmem:[%s13706_s0 + $0x48] sm:$0xff] }
   0x6   :  { %v44_v18 = vld [vmem:[%s13706_s0 + $0x50] sm:$0xff]  ;;  %v45_v19 = vld [vmem:[%s13706_s0 + $0x58] sm:$0xff]  ;;  %v46_v20 = vld [vmem:[%s13706_s0 + $0x60] sm:$0xff] }
   0x7   :  { %v47_v21 = vld [vmem:[%s13706_s0 + $0x68] sm:$0xff]  ;;  %v48_v22 = vld [vmem:[%s13706_s0 + $0x70] sm:$0xff] }
   0x8   :  { %8895 = vmatpush3.bf16.msk.msra.mxu0 %vm8894_vm3, %v8893_v7 }
   0xb   :  { %8275 = vmatmul.mubr.msk.f32.vlgmr.msra.gmra.mrb[0].mxu0 %vm94_vm4, %v34_v8 }
   0xc   :  { %8277 = vmatprep.mubr.msk.f32.mxu0 %vm9610_vm1, %v9611_v6 }
   0xf   :  { %8278 = vmatmul.mubr.msk.f32.gmra.mrb[2].mxu0 %vm94_vm4, %v35_v9 }
  0x10   :  { %8280 = vmatprep.mubr.msk.f32.mxu0 %vm9610_vm1, %v9611_v6 }
  0x13   :  { %8281 = vmatmul.mubr.msk.f32.gmra.mrb[4].mxu0 %vm94_vm4, %v36_v10 }
  0x14   :  { %8283 = vmatprep.mubr.msk.f32.mxu0 %vm9610_vm1, %v9611_v6 }
  0x17   :  { %8284 = vmatmul.mubr.msk.f32.gmra.mrb[6].mxu0 %vm94_vm4, %v37_v11 }
  0x18   :  { %8286 = vmatprep.mubr.msk.f32.mxu0 %vm9610_vm1, %v9611_v6 }
  0x1b   :  { %8287 = vmatmul.mubr.msk.f32.gmra.mrb[8].mxu0 %vm94_vm4, %v38_v12 }
  0x1c   :  { %8289 = vmatprep.mubr.msk.f32.mxu0 %vm9610_vm1, %v9611_v6 }
  0x1f   :  { %8290 = vmatmul.mubr.msk.f32.gmra.mrb[10].mxu0 %vm94_vm4, %v39_v13 }
  0x20   :  { %8292 = vmatprep.mubr.msk.f32.mxu0 %vm9610_vm1, %v9611_v6 }
  0x23   :  { %8293 = vmatmul.mubr.msk.f32.gmra.mrb[12].mxu0 %vm94_vm4, %v40_v14 }
  0x24   :  { %8295 = vmatprep.mubr.msk.f32.mxu0 %vm9610_vm1, %v9611_v6 }
  0x27   :  { %8296 = vmatmul.mubr.msk.f32.gmra.mrb[14].mxu0 %vm94_vm4, %v41_v15 }
  0x28   :  { %8298 = vmatprep.mubr.msk.f32.mxu0 %vm9610_vm1, %v9611_v6 }
  0x2b   :  { %8299 = vmatmul.mubr.msk.f32.gmra.mrb[16].mxu0 %vm94_vm4, %v42_v16 }
  0x2c   :  { %8301 = vmatprep.mubr.msk.f32.mxu0 %vm9610_vm1, %v9611_v6 }
  0x2f   :  { %8302 = vmatmul.mubr.msk.f32.gmra.mrb[18].mxu0 %vm94_vm4, %v43_v17 }
  0x30   :  { %8304 = vmatprep.mubr.msk.f32.mxu0 %vm9610_vm1, %v9611_v6 }
  0x33   :  { %8305 = vmatmul.mubr.msk.f32.gmra.mrb[20].mxu0 %vm94_vm4, %v44_v18 }
  0x34   :  { %8307 = vmatprep.mubr.msk.f32.mxu0 %vm9610_vm1, %v9611_v6 }
  0x37   :  { %8308 = vmatmul.mubr.msk.f32.gmra.mrb[22].mxu0 %vm94_vm4, %v45_v19 }
  0x38   :  { %8310 = vmatprep.mubr.msk.f32.mxu0 %vm9610_vm1, %v9611_v6 }
  0x3b   :  { %8311 = vmatmul.mubr.msk.f32.gmra.mrb[24].mxu0 %vm94_vm4, %v46_v20 }
  0x3c   :  { %8313 = vmatprep.mubr.msk.f32.mxu0 %vm9610_vm1, %v9611_v6 }
  0x3f   :  { %8314 = vmatmul.mubr.msk.f32.gmra.mrb[26].mxu0 %vm94_vm4, %v47_v21 }
  0x40   :  { %8316 = vmatprep.mubr.msk.f32.mxu0 %vm9610_vm1, %v9611_v6 }
  0x41   :  { %14 = vsyncpa [#allocation4], 0  ;;  %v49_v23 = vld [vmem:[%s13706_s0 + $0x78] sm:$0xff]  ;;  %v50_v24 = vld [vmem:[%s13706_s0 + $0x80] sm:$0xff]  ;;  %vm7705_vm5 = vcmask 1040384  }
  0x42   :  { %v51_v25 = vld [vmem:[%s13706_s0 + $0x88] sm:$0xff]  ;;  %v52_v26 = vld [vmem:[%s13706_s0 + $0x90] sm:$0xff]  ;;  %v53_v27 = vld [vmem:[%s13706_s0 + $0x98] sm:$0xff] }
  0x43   :  { %8317 = vmatmul.mubr.msk.f32.gmra.mrb[28].mxu0 %vm94_vm4, %v48_v22  ;;  %v54_v28 = vld [vmem:[%s13706_s0 + $0xa0] sm:$0xff]  ;;  %v55_v29 = vld [vmem:[%s13706_s0 + $0xa8] sm:$0xff]  ;;  %v56_v30 = vld [vmem:[%s13706_s0 + $0xb0] sm:$0xff] }
  0x44   :  { %8319 = vmatprep.mubr.msk.f32.mxu0 %vm9610_vm1, %v9611_v6  ;;  %v57_v31 = vld [vmem:[%s13706_s0 + $0xb8] sm:$0xff]  ;;  %v58_v32 = vld [vmem:[%s13706_s0 + $0xc0] sm:$0xff]  ;;  %v59_v33 = vld [vmem:[%s13706_s0 + $0xc8] sm:$0xff] }
  0x45   :  { %v60_v34 = vld [vmem:[%s13706_s0 + $0xd0] sm:$0xff]  ;;  %v61_v35 = vld [vmem:[%s13706_s0 + $0xd8] sm:$0xff]  ;;  %v62_v36 = vld [vmem:[%s13706_s0 + $0xe0] sm:$0xff] }
  0x46   :  { %v63_v37 = vld [vmem:[%s13706_s0 + $0xe8] sm:$0xff]  ;;  %v64_v38 = vld [vmem:[%s13706_s0 + $0xf0] sm:$0xff]  ;;  %v65_v39 = vld [vmem:[%s13706_s0 + $0xf8] sm:$0xff] }
  0x47   :  { %8320 = vmatmul.mubr.msk.f32.gmra.mrb[30].mxu0 %vm94_vm4, %v49_v23  ;;  %v66_v40 = vld [vmem:[%s13706_s0 + $0x100] sm:$0xff]  ;;  %v67_v41 = vld [vmem:[%s13706_s0 + $0x108] sm:$0xff]  ;;  %v68_v42 = vld [vmem:[%s13706_s0 + $0x110] sm:$0xff] }
  0x48   :  { %8322 = vmatprep.mubr.msk.f32.mxu0 %vm9610_vm1, %v9611_v6  ;;  %v69_v43 = vld [vmem:[%s13706_s0 + $0x118] sm:$0xff]  ;;  %v70_v44 = vld [vmem:[%s13706_s0 + $0x120] sm:$0xff]  ;;  %v71_v45 = vld [vmem:[%s13706_s0 + $0x128] sm:$0xff] }
  0x49   :  { %v72_v46 = vld [vmem:[%s13706_s0 + $0x130] sm:$0xff]  ;;  %v73_v47 = vld [vmem:[%s13706_s0 + $0x138] sm:$0xff]  ;;  %v74_v48 = vld [vmem:[%s13706_s0 + $0x140] sm:$0xff] }
  0x4a   :  { %v75_v49 = vld [vmem:[%s13706_s0 + $0x148] sm:$0xff]  ;;  %v76_v50 = vld [vmem:[%s13706_s0 + $0x150] sm:$0xff]  ;;  %v77_v51 = vld [vmem:[%s13706_s0 + $0x158] sm:$0xff] }
  0x4b   :  { %8323 = vmatmul.mubr.msk.f32.gmra.mrb[32].mxu0 %vm94_vm4, %v50_v24  ;;  %v78_v52 = vld [vmem:[%s13706_s0 + $0x160] sm:$0xff]  ;;  %v79_v53 = vld [vmem:[%s13706_s0 + $0x168] sm:$0xff]  ;;  %v80_v54 = vld [vmem:[%s13706_s0 + $0x170] sm:$0xff] }
  0x4c   :  { %8325 = vmatprep.mubr.msk.f32.mxu0 %vm9610_vm1, %v9611_v6  ;;  %v81_v55 = vld [vmem:[%s13706_s0 + $0x178] sm:$0xff]  ;;  %v82_v56 = vld [vmem:[%s13706_s0 + $0x180] sm:$0xff] }
  0x4f   :  { %8326 = vmatmul.mubr.msk.f32.gmra.mrb[34].mxu0 %vm94_vm4, %v51_v25 }
  0x50   :  { %8328 = vmatprep.mubr.msk.f32.mxu0 %vm9610_vm1, %v9611_v6 }
  0x53   :  { %8329 = vmatmul.mubr.msk.f32.gmra.mrb[36].mxu0 %vm94_vm4, %v52_v26 }
  0x54   :  { %8331 = vmatprep.mubr.msk.f32.mxu0 %vm9610_vm1, %v9611_v6 }
  0x57   :  { %8332 = vmatmul.mubr.msk.f32.gmra.mrb[38].mxu0 %vm94_vm4, %v53_v27 }
  0x58   :  { %8334 = vmatprep.mubr.msk.f32.mxu0 %vm9610_vm1, %v9611_v6 }
  0x5b   :  { %8335 = vmatmul.mubr.msk.f32.gmra.mrb[40].mxu0 %vm94_vm4, %v54_v28 }
  0x5c   :  { %8337 = vmatprep.mubr.msk.f32.mxu0 %vm9610_vm1, %v9611_v6 }
  0x5f   :  { %8338 = vmatmul.mubr.msk.f32.gmra.mrb[42].mxu0 %vm94_vm4, %v55_v29 }
  0x60   :  { %8340 = vmatprep.mubr.msk.f32.mxu0 %vm9610_vm1, %v9611_v6 }
  0x63   :  { %8341 = vmatmul.mubr.msk.f32.gmra.mrb[44].mxu0 %vm94_vm4, %v56_v30 }
  0x64   :  { %8343 = vmatprep.mubr.msk.f32.mxu0 %vm9610_vm1, %v9611_v6 }
  0x67   :  { %8344 = vmatmul.mubr.msk.f32.gmra.mrb[46].mxu0 %vm94_vm4, %v57_v31 }
  0x68   :  { %8346 = vmatprep.mubr.msk.f32.mxu0 %vm9610_vm1, %v9611_v6 }
  0x6b   :  { %8347 = vmatmul.mubr.msk.f32.gmra.mrb[48].mxu0 %vm94_vm4, %v58_v32 }
  0x6c   :  { %8349 = vmatprep.mubr.msk.f32.mxu0 %vm9610_vm1, %v9611_v6 }
  0x6f   :  { %8350 = vmatmul.mubr.msk.f32.gmra.mrb[50].mxu0 %vm94_vm4, %v59_v33  ;;  %v9986_v33 = vld [vmem:[%s13708_s2] ss:$0 sm:$0xff] }
  0x70   :  { %8352 = vmatprep.mubr.msk.f32.mxu0 %vm9610_vm1, %v9611_v6 }
  0x73   :  { %8353 = vmatmul.mubr.msk.f32.gmra.mrb[52].mxu0 %vm94_vm4, %v60_v34 }
  0x74   :  { %8355 = vmatprep.mubr.msk.f32.mxu0 %vm9610_vm1, %v9611_v6 }
  0x77   :  { %8356 = vmatmul.mubr.msk.f32.gmra.mrb[54].mxu0 %vm94_vm4, %v61_v35 }
  0x78   :  { %8358 = vmatprep.mubr.msk.f32.mxu0 %vm9610_vm1, %v9611_v6 }
  0x7b   :  { %8359 = vmatmul.mubr.msk.f32.gmra.mrb[56].mxu0 %vm94_vm4, %v62_v36 }
  0x7c   :  { %8361 = vmatprep.mubr.msk.f32.mxu0 %vm9610_vm1, %v9611_v6 }
  0x7f   :  { %8362 = vmatmul.mubr.msk.f32.gmra.mrb[58].mxu0 %vm94_vm4, %v63_v37 }
  0x80   :  { %8364 = vmatprep.mubr.msk.f32.mxu0 %vm9610_vm1, %v9611_v6 }
  0x83   :  { %8365 = vmatmul.mubr.msk.f32.gmra.mrb[60].mxu0 %vm94_vm4, %v64_v38 }
  0x84   :  { %8367 = vmatprep.mubr.msk.f32.mxu0 %vm9610_vm1, %v9611_v6 }
  0x87   :  { %8368 = vmatmul.mubr.msk.f32.gmra.mrb[62].mxu0 %vm94_vm4, %v65_v39 }
  0x88   :  { %8370 = vmatprep.mubr.msk.f32.mxu0 %vm9610_vm1, %v9611_v6 }
  0x8b   :  { %8371 = vmatmul.mubr.msk.f32.gmra.mrb[64].mxu0 %vm94_vm4, %v66_v40 }
  0x8c   :  { %8373 = vmatprep.mubr.msk.f32.mxu0 %vm9610_vm1, %v9611_v6 }
  0x8f   :  { %8374 = vmatmul.mubr.msk.f32.gmra.mrb[66].mxu0 %vm94_vm4, %v67_v41 }
  0x90   :  { %8376 = vmatprep.mubr.msk.f32.mxu0 %vm9610_vm1, %v9611_v6 }
  0x93   :  { %8377 = vmatmul.mubr.msk.f32.gmra.mrb[68].mxu0 %vm94_vm4, %v68_v42 }
  0x94   :  { %8379 = vmatprep.mubr.msk.f32.mxu0 %vm9610_vm1, %v9611_v6 }
  0x97   :  { %8380 = vmatmul.mubr.msk.f32.gmra.mrb[70].mxu0 %vm94_vm4, %v69_v43 }
  0x98   :  { %8382 = vmatprep.mubr.msk.f32.mxu0 %vm9610_vm1, %v9611_v6 }
  0x9b   :  { %8383 = vmatmul.mubr.msk.f32.gmra.mrb[72].mxu0 %vm94_vm4, %v70_v44 }
  0x9c   :  { %8385 = vmatprep.mubr.msk.f32.mxu0 %vm9610_vm1, %v9611_v6 }
  0x9f   :  { %8386 = vmatmul.mubr.msk.f32.gmra.mrb[74].mxu0 %vm94_vm4, %v71_v45 }
  0xa0   :  { %8388 = vmatprep.mubr.msk.f32.mxu0 %vm9610_vm1, %v9611_v6 }
  0xa3   :  { %8389 = vmatmul.mubr.msk.f32.gmra.mrb[76].mxu0 %vm94_vm4, %v72_v46 }
  0xa4   :  { %8391 = vmatprep.mubr.msk.f32.mxu0 %vm9610_vm1, %v9611_v6 }
  0xa7   :  { %8392 = vmatmul.mubr.msk.f32.gmra.mrb[78].mxu0 %vm94_vm4, %v73_v47 }
  0xa8   :  { %8394 = vmatprep.mubr.msk.f32.mxu0 %vm9610_vm1, %v9611_v6 }
  0xab   :  { %8395 = vmatmul.mubr.msk.f32.gmra.mrb[80].mxu0 %vm94_vm4, %v74_v48 }
  0xac   :  { %8397 = vmatprep.mubr.msk.f32.mxu0 %vm9610_vm1, %v9611_v6 }
  0xaf   :  { %8398 = vmatmul.mubr.msk.f32.gmra.mrb[82].mxu0 %vm94_vm4, %v75_v49 }
  0xb0   :  { %8400 = vmatprep.mubr.msk.f32.mxu0 %vm9610_vm1, %v9611_v6 }
  0xb3   :  { %8401 = vmatmul.mubr.msk.f32.gmra.mrb[84].mxu0 %vm94_vm4, %v76_v50 }
  0xb4   :  { %8403 = vmatprep.mubr.msk.f32.mxu0 %vm9610_vm1, %v9611_v6 }
  0xb7   :  { %8404 = vmatmul.mubr.msk.f32.gmra.mrb[86].mxu0 %vm94_vm4, %v77_v51 }
  0xb8   :  { %8406 = vmatprep.mubr.msk.f32.mxu0 %vm9610_vm1, %v9611_v6 }
  0xbb   :  { %8407 = vmatmul.mubr.msk.f32.gmra.mrb[88].mxu0 %vm94_vm4, %v78_v52 }
  0xbc   :  { %8409 = vmatprep.mubr.msk.f32.mxu0 %vm9610_vm1, %v9611_v6 }
  0xbf   :  { %8410 = vmatmul.mubr.msk.f32.gmra.mrb[90].mxu0 %vm94_vm4, %v79_v53 }
  0xc0   :  { %8412 = vmatprep.mubr.msk.f32.mxu0 %vm9610_vm1, %v9611_v6 }
  0xc3   :  { %8413 = vmatmul.mubr.msk.f32.gmra.mrb[92].mxu0 %vm94_vm4, %v80_v54 }
  0xc4   :  { %8415 = vmatprep.mubr.msk.f32.mxu0 %vm9610_vm1, %v9611_v6 }
  0xc7   :  { %8416 = vmatmul.mubr.msk.f32.gmra.mrb[94].mxu0 %vm94_vm4, %v81_v55 }
  0xc8   :  { %8418 = vmatprep.mubr.msk.f32.mxu0 %vm9610_vm1, %v9611_v6 }
  0xcb   :  { %8419 = vmatmul.mubr.msk.f32.gmra.mrb[96].mxu0 %vm94_vm4, %v82_v56 }
  0xde   :  { %v312_v57 = vpop.f32.mrb[0].mxu0 }
  0xdf   :  { %v8276_v58 = vpop.f32.mrb[1].mxu0  ;;  %v9994_v36 = vadd.f32 %v9986_v33, %v312_v57 }
  0xe1   :  { %v13754_v42 = vmax.f32 %v9994_v36, 0.0 }
  0xe2   :  { %v317_v59 = vpop.f32.mrb[2].mxu0 }
  0xe3   :  { %v8279_v60 = vpop.f32.mrb[3].mxu0  ;;  %v9989_v34 = vadd.f32 %v9986_v33, %v317_v59 }
  0xe5   :  { %v13753_v39 = vmax.f32 %v9989_v34, 0.0 }
  0xe6   :  { %v322_v61 = vpop.f32.mrb[4].mxu0 }
  0xe7   :  { %v8282_v62 = vpop.f32.mrb[5].mxu0  ;;  %v9997_v37 = vadd.f32 %v9986_v33, %v322_v61  ;;  %v605_v46 = vadd.f32 %v13753_v39, %v13754_v42 }
  0xe9   :  { %v13752_v43 = vmax.f32 %v9997_v37, 0.0 }
  0xea   :  { %v327_v63 = vpop.f32.mrb[6].mxu0 }
  0xeb   :  { %v8285_v0 = vpop.f32.mrb[7].mxu0  ;;  %v10001_v40 = vadd.f32 %v9986_v33, %v327_v63  ;;  %v606_v50 = vadd.f32 %v605_v46, %v13752_v43 }
  0xed   :  { %v13750_v47 = vmax.f32 %v10001_v40, 0.0 }
  0xee   :  { %v332_v1 = vpop.f32.mrb[8].mxu0 }
  0xef   :  { %v8288_v2 = vpop.f32.mrb[9].mxu0  ;;  %v10008_v44 = vadd.f32 %v9986_v33, %v332_v1  ;;  %v607_v54 = vadd.f32 %v606_v50, %v13750_v47 }
  0xf1   :  { %v13749_v51 = vmax.f32 %v10008_v44, 0.0 }
  0xf2   :  { %v337_v3 = vpop.f32.mrb[10].mxu0 }
  0xf3   :  { %v8291_v4 = vpop.f32.mrb[11].mxu0  ;;  %v10016_v48 = vadd.f32 %v9986_v33, %v337_v3  ;;  %v608_v58 = vadd.f32 %v607_v54, %v13749_v51 }
  0xf5   :  { %v13747_v55 = vmax.f32 %v10016_v48, 0.0 }
  0xf6   :  { %v342_v5 = vpop.f32.mrb[12].mxu0 }
  0xf7   :  { %v8294_v6 = vpop.f32.mrb[13].mxu0  ;;  %v10024_v52 = vadd.f32 %v9986_v33, %v342_v5  ;;  %v609_v62 = vadd.f32 %v608_v58, %v13747_v55 }
  0xf9   :  { %v13746_v59 = vmax.f32 %v10024_v52, 0.0 }
  0xfa   :  { %v347_v7 = vpop.f32.mrb[14].mxu0 }
  0xfb   :  { %v8297_v8 = vpop.f32.mrb[15].mxu0  ;;  %v10030_v56 = vadd.f32 %v9986_v33, %v347_v7  ;;  %v610_v2 = vadd.f32 %v609_v62, %v13746_v59 }
  0xfd   :  { %v13744_v63 = vmax.f32 %v10030_v56, 0.0 }
  0xfe   :  { %v352_v9 = vpop.f32.mrb[16].mxu0 }
  0xff   :  { %v8300_v10 = vpop.f32.mrb[17].mxu0  ;;  %v10038_v60 = vadd.f32 %v9986_v33, %v352_v9  ;;  %v611_v6 = vadd.f32 %v610_v2, %v13744_v63 }
 0x101   :  { %v13743_v3 = vmax.f32 %v10038_v60, 0.0 }
 0x102   :  { %v357_v11 = vpop.f32.mrb[18].mxu0 }
 0x103   :  { %v8303_v12 = vpop.f32.mrb[19].mxu0  ;;  %v10044_v0 = vadd.f32 %v9986_v33, %v357_v11  ;;  %v612_v10 = vadd.f32 %v611_v6, %v13743_v3 }
 0x105   :  { %v13742_v7 = vmax.f32 %v10044_v0, 0.0 }
 0x106   :  { %v362_v13 = vpop.f32.mrb[20].mxu0 }
 0x107   :  { %v8306_v14 = vpop.f32.mrb[21].mxu0  ;;  %v10050_v4 = vadd.f32 %v9986_v33, %v362_v13 }
 0x108   :  { %v613_v14 = vadd.f32 %v612_v10, %v13742_v7 }
 0x109   :  { %v13740_v11 = vmax.f32 %v10050_v4, 0.0 }
 0x10a   :  { %v367_v15 = vpop.f32.mrb[22].mxu0 }
 0x10b   :  { %v8309_v16 = vpop.f32.mrb[23].mxu0  ;;  %v10056_v8 = vadd.f32 %v9986_v33, %v367_v15 }
 0x10d   :  { %v13738_v16 = vmax.f32 %v10056_v8, 0.0 }
 0x10e   :  { %v372_v17 = vpop.f32.mrb[24].mxu0 }
 0x10f   :  { %v8312_v18 = vpop.f32.mrb[25].mxu0  ;;  %v10062_v12 = vadd.f32 %v9986_v33, %v372_v17 }
 0x112   :  { %v377_v19 = vpop.f32.mrb[26].mxu0 }
 0x113   :  { %v8315_v20 = vpop.f32.mrb[27].mxu0  ;;  %v10068_v18 = vadd.f32 %v9986_v33, %v377_v19 }
 0x114   :  { %v614_v20 = vadd.f32 %v613_v14, %v13740_v11 }
 0x116   :  { %v9971_v21 = vpop.f32.mrb[28].mxu0 }
 0x117   :  { %v8318_v22 = vpop.f32.mrb[29].mxu0 }
 0x118   :  { %v13737_v22 = vmax.f32 %v10062_v12, 0.0 }
 0x11a   :  { %v9973_v23 = vpop.f32.mrb[30].mxu0 }
 0x11b   :  { %v8321_v24 = vpop.f32.mrb[31].mxu0  ;;  %v10082_v19 = vadd.f32 %v9986_v33, %v9973_v23 }
 0x11c   :  { %v10075_v24 = vadd.f32 %v9986_v33, %v9971_v21 }
 0x11d   :  { %v13728_v50 = vmax.f32 %v10082_v19, 0.0 }
 0x11e   :  { %v9975_v25 = vpop.f32.mrb[32].mxu0 }
 0x11f   :  { %v8324_v26 = vpop.f32.mrb[33].mxu0  ;;  %v10089_v21 = vadd.f32 %v9986_v33, %v9975_v25 }
 0x120   :  { %v615_v26 = vadd.f32 %v614_v20, %v13738_v16 }
 0x121   :  { %v13725_v58 = vmax.f32 %v10089_v21, 0.0 }
 0x122   :  { %v9977_v27 = vpop.f32.mrb[34].mxu0 }
 0x123   :  { %v8327_v28 = vpop.f32.mrb[35].mxu0  ;;  %v10096_v23 = vadd.f32 %v9986_v33, %v9977_v27 }
 0x124   :  { %v13734_v28 = vmax.f32 %v10068_v18, 0.0 }
 0x125   :  { %v13722_v2 = vmax.f32 %v10096_v23, 0.0 }
 0x126   :  { %v9979_v29 = vpop.f32.mrb[36].mxu0 }
 0x127   :  { %v8330_v30 = vpop.f32.mrb[37].mxu0  ;;  %v10103_v25 = vadd.f32 %v9986_v33, %v9979_v29 }
 0x129   :  { %v13719_v10 = vmax.f32 %v10103_v25, 0.0 }
 0x12a   :  { %v9981_v31 = vpop.f32.mrb[38].mxu0 }
 0x12b   :  { %v8333_v32 = vpop.f32.mrb[39].mxu0  ;;  %v10110_v27 = vadd.f32 %v9986_v33, %v9981_v31 }
 0x12c   :  { %v616_v32 = vadd.f32 %v615_v26, %v13737_v22 }
 0x12d   :  { %v13716_v20 = vmax.f32 %v10110_v27, 0.0 }
 0x12e   :  { %v9991_v35 = vpop.f32.mrb[40].mxu0  ;;  %v617_v46 = vadd.f32 %v616_v32, %v13734_v28 }
 0x12f   :  { %v8336_v38 = vpop.f32.mrb[41].mxu0  ;;  %v10117_v29 = vadd.f32 %v9986_v33, %v9991_v35 }
 0x130   :  { %v13731_v38 = vmax.f32 %v10075_v24, 0.0 }
 0x131   :  { %v13717_v32 = vmax.f32 %v10117_v29, 0.0 }
 0x132   :  { %v10003_v41 = vpop.f32.mrb[42].mxu0  ;;  %v618_v54 = vadd.f32 %v617_v46, %v13731_v38 }
 0x133   :  { %v8339_v45 = vpop.f32.mrb[43].mxu0  ;;  %v10124_v31 = vadd.f32 %v9986_v33, %v10003_v41 }
 0x134   :  { %v619_v62 = vadd.f32 %v618_v54, %v13728_v50 }
 0x135   :  { %v13718_v54 = vmax.f32 %v10124_v31, 0.0 }
 0x136   :  { %v10018_v49 = vpop.f32.mrb[44].mxu0  ;;  %v620_v6 = vadd.f32 %v619_v62, %v13725_v58 }
 0x137   :  { %v8342_v53 = vpop.f32.mrb[45].mxu0  ;;  %v10131_v35 = vadd.f32 %v9986_v33, %v10018_v49 }
 0x138   :  { %v621_v14 = vadd.f32 %v620_v6, %v13722_v2 }
 0x139   :  { %v13720_v6 = vmax.f32 %v10131_v35, 0.0 }
 0x13a   :  { %v10032_v57 = vpop.f32.mrb[46].mxu0  ;;  %v622_v26 = vadd.f32 %v621_v14, %v13719_v10 }
 0x13b   :  { %v8345_v61 = vpop.f32.mrb[47].mxu0  ;;  %v10138_v41 = vadd.f32 %v9986_v33, %v10032_v57 }
 0x13c   :  { %v623_v46 = vadd.f32 %v622_v26, %v13716_v20 }
 0x13d   :  { %v13721_v26 = vmax.f32 %v10138_v41, 0.0 }
 0x13e   :  { %v432_v1 = vpop.f32.mrb[48].mxu0  ;;  %v624_v62 = vadd.f32 %v623_v46, %v13717_v32 }
 0x13f   :  { %v8348_v5 = vpop.f32.mrb[49].mxu0 }
 0x140   :  { %v625_v14 = vadd.f32 %v624_v62, %v13718_v54 }
 0x142   :  { %v437_v9 = vpop.f32.mrb[50].mxu0  ;;  %v626_v20 = vadd.f32 %v625_v14, %v13720_v6 }
 0x143   :  { %v8351_v13 = vpop.f32.mrb[51].mxu0 }
 0x146   :  { %v442_v15 = vpop.f32.mrb[52].mxu0 }
 0x147   :  { %v8354_v17 = vpop.f32.mrb[53].mxu0  ;;  %v10156_v32 = vadd.f32 %v9986_v33, %v442_v15 }
 0x149   :  { %v13726_v14 = vmax.f32 %v10156_v32, 0.0 }
 0x14a   :  { %v447_v30 = vpop.f32.mrb[54].mxu0 }
 0x14b   :  { %v8357_v45 = vpop.f32.mrb[55].mxu0  ;;  %v10162_v54 = vadd.f32 %v9986_v33, %v447_v30 }
 0x14e   :  { %v452_v53 = vpop.f32.mrb[56].mxu0 }
 0x14f   :  { %v8360_v61 = vpop.f32.mrb[57].mxu0  ;;  %v10168_v6 = vadd.f32 %v9986_v33, %v452_v53 }
 0x152   :  { %v457_v5 = vpop.f32.mrb[58].mxu0 }
 0x153   :  { %v8363_v13 = vpop.f32.mrb[59].mxu0 }
 0x154   :  { %v10144_v13 = vadd.f32 %v9986_v33, %v432_v1 }
 0x156   :  { %v462_v17 = vpop.f32.mrb[60].mxu0  ;;  %v13723_v46 = vmax.f32 %v10144_v13, 0.0 }
 0x157   :  { %v8366_v45 = vpop.f32.mrb[61].mxu0 }
 0x158   :  { %v10150_v45 = vadd.f32 %v9986_v33, %v437_v9 }
 0x15a   :  { %v467_v61 = vpop.f32.mrb[62].mxu0  ;;  %v13724_v62 = vmax.f32 %v10150_v45, 0.0 }
 0x15b   :  { %v8369_v49 = vpop.f32.mrb[63].mxu0 }
 0x15c   :  { %v627_v49 = vadd.f32 %v626_v20, %v13721_v26  ;;  %v13727_v20 = vmax.f32 %v10162_v54, 0.0  ;;  %v10174_v26 = vadd.f32 %v9986_v33, %v457_v5 }
 0x15e   :  { %v472_v57 = vpop.f32.mrb[64].mxu0  ;;  %v628_v10 = vadd.f32 %v627_v49, %v13723_v46  ;;  %v13729_v49 = vmax.f32 %v10168_v6, 0.0  ;;  %v10180_v46 = vadd.f32 %v9986_v33, %v462_v17 }
 0x15f   :  { %v8372_v1 = vpop.f32.mrb[65].mxu0 }
 0x160   :  { %v629_v1 = vadd.f32 %v628_v10, %v13724_v62  ;;  %v13730_v10 = vmax.f32 %v10174_v26, 0.0  ;;  %v10186_v62 = vadd.f32 %v9986_v33, %v467_v61 }
 0x162   :  { %v477_v9 = vpop.f32.mrb[66].mxu0  ;;  %v630_v2 = vadd.f32 %v629_v1, %v13726_v14  ;;  %v13732_v1 = vmax.f32 %v10180_v46, 0.0  ;;  %v10192_v14 = vadd.f32 %v9986_v33, %v472_v57 }
 0x163   :  { %v8375_v15 = vpop.f32.mrb[67].mxu0 }
 0x164   :  { %v631_v15 = vadd.f32 %v630_v2, %v13727_v20  ;;  %v13733_v2 = vmax.f32 %v10186_v62, 0.0  ;;  %v10198_v20 = vadd.f32 %v9986_v33, %v477_v9 }
 0x166   :  { %v482_v30 = vpop.f32.mrb[68].mxu0  ;;  %v632_v58 = vadd.f32 %v631_v15, %v13729_v49  ;;  %v13735_v15 = vmax.f32 %v10192_v14, 0.0 }
 0x167   :  { %v8378_v53 = vpop.f32.mrb[69].mxu0  ;;  %v10204_v49 = vadd.f32 %v9986_v33, %v482_v30 }
 0x168   :  { %v633_v53 = vadd.f32 %v632_v58, %v13730_v10  ;;  %v13736_v58 = vmax.f32 %v10198_v20, 0.0 }
 0x16a   :  { %v487_v5 = vpop.f32.mrb[70].mxu0  ;;  %v634_v50 = vadd.f32 %v633_v53, %v13732_v1  ;;  %v13739_v53 = vmax.f32 %v10204_v49, 0.0 }
 0x16b   :  { %v8381_v17 = vpop.f32.mrb[71].mxu0  ;;  %v10210_v10 = vadd.f32 %v9986_v33, %v487_v5 }
 0x16c   :  { %v635_v17 = vadd.f32 %v634_v50, %v13733_v2 }
 0x16d   :  { %v13741_v50 = vmax.f32 %v10210_v10, 0.0 }
 0x16e   :  { %v492_v61 = vpop.f32.mrb[72].mxu0  ;;  %v636_v38 = vadd.f32 %v635_v17, %v13735_v15 }
 0x16f   :  { %v8384_v57 = vpop.f32.mrb[73].mxu0  ;;  %v10216_v1 = vadd.f32 %v9986_v33, %v492_v61 }
 0x170   :  { %v637_v57 = vadd.f32 %v636_v38, %v13736_v58 }
 0x171   :  { %13869 = vst [vmem:[#allocation6_spill] sm:$0xff] %v10216_v1  ;;  %v13745_v17 = vmax.f32 %v10216_v1, 0.0 }
 0x172   :  { %v497_v9 = vpop.f32.mrb[74].mxu0  ;;  %v638_v28 = vadd.f32 %v637_v57, %v13739_v53 }
 0x173   :  { %v8387_v30 = vpop.f32.mrb[75].mxu0  ;;  %v10222_v2 = vadd.f32 %v9986_v33, %v497_v9 }
 0x174   :  { %v639_v30 = vadd.f32 %v638_v28, %v13741_v50 }
 0x175   :  { %13870 = vst [vmem:[#allocation7_spill] sm:$0xff] %v10222_v2  ;;  %v13748_v38 = vmax.f32 %v10222_v2, 0.0 }
 0x176   :  { %v502_v5 = vpop.f32.mrb[76].mxu0  ;;  %v640_v9 = vadd.f32 %v639_v30, %v13745_v17 }
 0x177   :  { %v10228_v15 = vadd.f32 %v9986_v33, %v502_v5  ;;  %v8390_v61 = vpop.f32.mrb[77].mxu0 }
 0x178   :  { %v641_v53 = vadd.f32 %v640_v9, %v13748_v38 }
 0x179   :  { %13871 = vst [vmem:[#allocation8_spill] sm:$0xff] %v10228_v15  ;;  %v13751_v22 = vmax.f32 %v10228_v15, 0.0 }
 0x17a   :  { %v507_v58 = vpop.f32.mrb[78].mxu0 }
 0x17b   :  { %v508_v16 = vadd.f32 %v9986_v33, %v507_v58  ;;  %v8393_v57 = vpop.f32.mrb[79].mxu0  ;;  %v642_v61 = vadd.f32 %v641_v53, %v13751_v22 }
 0x17d   :  { %v595_v5 = vmax.f32 %v508_v16, 0.0 }
 0x17e   :  { %v512_v11 = vpop.f32.mrb[80].mxu0 }
 0x17f   :  { %v513_v28 = vadd.f32 %v9986_v33, %v512_v11  ;;  %v8396_v50 = vpop.f32.mrb[81].mxu0  ;;  %v643_v7 = vadd.f32 %v642_v61, %v595_v5 }
 0x181   :  { %v596_v3 = vmax.f32 %v513_v28, 0.0 }
 0x182   :  { %v517_v63 = vpop.f32.mrb[82].mxu0 }
 0x183   :  { %v644_v30 = vadd.f32 %v643_v7, %v596_v3  ;;  %v518_v17 = vadd.f32 %v9986_v33, %v517_v63  ;;  %v8399_v59 = vpop.f32.mrb[83].mxu0 }
 0x185   :  { %v597_v58 = vmax.f32 %v518_v17, 0.0 }
 0x186   :  { %v522_v57 = vpop.f32.mrb[84].mxu0 }
 0x187   :  { %v645_v55 = vadd.f32 %v644_v30, %v597_v58  ;;  %v523_v9 = vadd.f32 %v9986_v33, %v522_v57  ;;  %v8402_v16 = vpop.f32.mrb[85].mxu0 }
 0x189   :  { %v598_v38 = vmax.f32 %v523_v9, 0.0 }
 0x18a   :  { %v527_v51 = vpop.f32.mrb[86].mxu0 }
 0x18b   :  { %v646_v47 = vadd.f32 %v645_v55, %v598_v38  ;;  %v528_v53 = vadd.f32 %v9986_v33, %v527_v51  ;;  %v8405_v11 = vpop.f32.mrb[87].mxu0 }
 0x18d   :  { %v599_v50 = vmax.f32 %v528_v53, 0.0 }
 0x18e   :  { %v532_v61 = vpop.f32.mrb[88].mxu0 }
 0x18f   :  { %v647_v28 = vadd.f32 %v646_v47, %v599_v50  ;;  %v533_v7 = vadd.f32 %v9986_v33, %v532_v61  ;;  %v8408_v22 = vpop.f32.mrb[89].mxu0 }
 0x191   :  { %v600_v63 = vmax.f32 %v533_v7, 0.0 }
 0x192   :  { %v537_v59 = vpop.f32.mrb[90].mxu0 }
 0x193   :  { %v648_v17 = vadd.f32 %v647_v28, %v600_v63  ;;  %v538_v30 = vadd.f32 %v9986_v33, %v537_v59  ;;  %v8411_v43 = vpop.f32.mrb[91].mxu0 }
 0x195   :  { %v601_v57 = vmax.f32 %v538_v30, 0.0 }
 0x196   :  { %v542_v16 = vpop.f32.mrb[92].mxu0 }
 0x197   :  { %v649_v9 = vadd.f32 %v648_v17, %v601_v57  ;;  %v543_v55 = vadd.f32 %v9986_v33, %v542_v16  ;;  %v8414_v39 = vpop.f32.mrb[93].mxu0 }
 0x199   :  { %v602_v51 = vmax.f32 %v543_v55, 0.0 }
 0x19a   :  { %v547_v11 = vpop.f32.mrb[94].mxu0 }
 0x19b   :  { %v650_v53 = vadd.f32 %v649_v9, %v602_v51  ;;  %v548_v47 = vadd.f32 %v9986_v33, %v547_v11  ;;  %v8417_v42 = vpop.f32.mrb[95].mxu0 }
 0x19d   :  { %v603_v61 = vmax.f32 %v548_v47, 0.0 }
 0x19e   :  { %v552_v22 = vpop.f32.mrb[96].mxu0 }
 0x19f   :  { %v651_v7 = vadd.f32 %v650_v53, %v603_v61  ;;  %v553_v28 = vadd.f32 %v9986_v33, %v552_v22  ;;  %v8420_v15 = vpop.f32.mrb[97].mxu0 }
 0x1a1   :  { %v604_v59 = vmax.f32 %v553_v28, 0.0 }
 0x1a3   :  { %v652_v43 = vadd.f32 %v651_v7, %v604_v59 }
 0x1a5   :  { %v653_v30 = vrot.slane %v652_v43, 4 }
 0x1a7   :  { %v654_v2 = vadd.f32 %v653_v30, %v652_v43 }
 0x1a9   :  { %v655_v17 = vrot.slane %v654_v2, 2 }
 0x1ab   :  { %v656_v1 = vadd.f32 %v655_v17, %v654_v2  ;;  %v13883_v17 = vmax.f32 %v10024_v52, 0.0 }
 0x1ad   :  { %v657_v16 = vrot.slane %v656_v1, 1 }
 0x1af   :  { %v658_v39 = vadd.f32 %v657_v16, %v656_v1 }
 0x1b1   :  { %v10250_v55 = vmul.f32 0.0025510204, %v658_v39 }
 0x1b3   :  { %v10253_v9 = vsub.f32 %v595_v5, %v10250_v55  ;;  %v10256_v42 = vsub.f32 %v596_v3, %v10250_v55  ;;  %v10259_v11 = vsub.f32 %v597_v58, %v10250_v55  ;;  %v10262_v33 = vsub.f32 %v598_v38, %v10250_v55 }
 0x1b4   :  { %v10265_v15 = vsub.f32 %v599_v50, %v10250_v55  ;;  %v10268_v2 = vsub.f32 %v600_v63, %v10250_v55  ;;  %v10271_v1 = vsub.f32 %v601_v57, %v10250_v55  ;;  %v10274_v5 = vsub.f32 %v602_v51, %v10250_v55 }
 0x1b5   :  { %13872 = vst [vmem:[#allocation9_spill] sm:$0xff] %v10262_v33  ;;  %v10277_v3 = vsub.f32 %v603_v61, %v10250_v55  ;;  %v10280_v58 = vsub.f32 %v604_v59, %v10250_v55  ;;  %v13877_v38 = vmax.f32 %v9994_v36, 0.0  ;;  %v13878_v63 = vmax.f32 %v9989_v34, 0.0 }
 0x1b6   :  { %13873 = vst [vmem:[#allocation10_spill] sm:$0xff] %v10265_v15  ;;  %13874 = vst [vmem:[#allocation11_spill] sm:$0xff] %v10268_v2  ;;  %v13879_v57 = vmax.f32 %v9997_v37, 0.0  ;;  %v13880_v36 = vmax.f32 %v10001_v40, 0.0  ;;  %v13881_v34 = vmax.f32 %v10008_v44, 0.0  ;;  %v13882_v59 = vmax.f32 %v10016_v48, 0.0 }
 0x1b7   :  { %13875 = vst [vmem:[#allocation12_spill] sm:$0xff] %v10271_v1  ;;  %13876 = vst [vmem:[#allocation13_spill] sm:$0xff] %v10274_v5  ;;  %v10285_v50 = vsub.f32 %v13877_v38, %v10250_v55  ;;  %v10290_v53 = vsub.f32 %v13878_v63, %v10250_v55  ;;  %v10323_v16 = vsub.f32 %v13883_v17, %v10250_v55  ;;  %v13884_v38 = vmax.f32 %v10030_v56, 0.0 }
 0x1b8   :  { %v10295_v51 = vsub.f32 %v13879_v57, %v10250_v55  ;;  %v10304_v22 = vsub.f32 %v13880_v36, %v10250_v55  ;;  %v10309_v7 = vsub.f32 %v13881_v34, %v10250_v55  ;;  %v10316_v43 = vsub.f32 %v13882_v59, %v10250_v55 }
 0x1b9   :  { %v709_v47 = vmul.f32 %v10285_v50, %v10285_v50  ;;  %v710_v61 = vmul.f32 %v10290_v53, %v10290_v53  ;;  %v10330_v63 = vsub.f32 %v13884_v38, %v10250_v55  ;;  %v715_v52 = vmul.f32 %v10323_v16, %v10323_v16 }
 0x1ba   :  { %v711_v37 = vmul.f32 %v10295_v51, %v10295_v51  ;;  %v712_v30 = vmul.f32 %v10304_v22, %v10304_v22  ;;  %v713_v44 = vmul.f32 %v10309_v7, %v10309_v7  ;;  %v714_v48 = vmul.f32 %v10316_v43, %v10316_v43 }
 0x1bb   :  { %v758_v28 = vadd.f32 %v710_v61, %v709_v47  ;;  %v13885_v47 = vmax.f32 %v10038_v60, 0.0  ;;  %v13886_v34 = vmax.f32 %v10044_v0, 0.0  ;;  %v716_v56 = vmul.f32 %v10330_v63, %v10330_v63 }
 0x1bc   :  { %v13887_v59 = vmax.f32 %v10050_v4, 0.0  ;;  %v13888_v17 = vmax.f32 %v10056_v8, 0.0  ;;  %v13889_v38 = vmax.f32 %v10062_v12, 0.0 }
 0x1bd   :  { %v759_v40 = vadd.f32 %v758_v28, %v711_v37  ;;  %v10337_v61 = vsub.f32 %v13885_v47, %v10250_v55  ;;  %v10344_v37 = vsub.f32 %v13886_v34, %v10250_v55  ;;  %v13890_v47 = vmax.f32 %v10068_v18, 0.0 }
 0x1be   :  { %v13891_v34 = vmax.f32 %v10075_v24, 0.0 }
 0x1bf   :  { %v760_v39 = vadd.f32 %v759_v40, %v712_v30  ;;  %v10351_v30 = vsub.f32 %v13887_v59, %v10250_v55  ;;  %v717_v60 = vmul.f32 %v10337_v61, %v10337_v61  ;;  %v718_v0 = vmul.f32 %v10344_v37, %v10344_v37 }
 0x1c0   :  { %v13892_v59 = vmax.f32 %v10082_v19, 0.0 }
 0x1c1   :  { %v761_v57 = vadd.f32 %v760_v39, %v713_v44  ;;  %v10358_v44 = vsub.f32 %v13888_v17, %v10250_v55  ;;  %v719_v4 = vmul.f32 %v10351_v30, %v10351_v30  ;;  %v13893_v17 = vmax.f32 %v10089_v21, 0.0 }
 0x1c3   :  { %v762_v36 = vadd.f32 %v761_v57, %v714_v48  ;;  %v10365_v48 = vsub.f32 %v13889_v38, %v10250_v55  ;;  %v720_v8 = vmul.f32 %v10358_v44, %v10358_v44  ;;  %v13894_v38 = vmax.f32 %v10096_v23, 0.0 }
 0x1c5   :  { %v763_v28 = vadd.f32 %v762_v36, %v715_v52  ;;  %v10372_v52 = vsub.f32 %v13890_v47, %v10250_v55  ;;  %v721_v12 = vmul.f32 %v10365_v48, %v10365_v48  ;;  %v13895_v47 = vmax.f32 %v10103_v25, 0.0 }
 0x1c7   :  { %v764_v40 = vadd.f32 %v763_v28, %v716_v56  ;;  %v10379_v56 = vsub.f32 %v13891_v34, %v10250_v55  ;;  %v722_v18 = vmul.f32 %v10372_v52, %v10372_v52  ;;  %v13896_v34 = vmax.f32 %v10110_v27, 0.0 }
 0x1c9   :  { %v765_v39 = vadd.f32 %v764_v40, %v717_v60  ;;  %v10386_v60 = vsub.f32 %v13892_v59, %v10250_v55  ;;  %v723_v24 = vmul.f32 %v10379_v56, %v10379_v56  ;;  %v13897_v59 = vmax.f32 %v10117_v29, 0.0 }
 0x1cb   :  { %v766_v57 = vadd.f32 %v765_v39, %v718_v0  ;;  %v10393_v0 = vsub.f32 %v13893_v17, %v10250_v55  ;;  %v724_v19 = vmul.f32 %v10386_v60, %v10386_v60  ;;  %v13898_v17 = vmax.f32 %v10124_v31, 0.0 }
 0x1cd   :  { %v767_v36 = vadd.f32 %v766_v57, %v719_v4  ;;  %v10400_v4 = vsub.f32 %v13894_v38, %v10250_v55  ;;  %v725_v21 = vmul.f32 %v10393_v0, %v10393_v0  ;;  %v13899_v38 = vmax.f32 %v10131_v35, 0.0 }
 0x1cf   :  { %v768_v28 = vadd.f32 %v767_v36, %v720_v8  ;;  %v10407_v8 = vsub.f32 %v13895_v47, %v10250_v55  ;;  %v726_v23 = vmul.f32 %v10400_v4, %v10400_v4  ;;  %v13900_v47 = vmax.f32 %v10138_v41, 0.0 }
 0x1d1   :  { %v769_v40 = vadd.f32 %v768_v28, %v721_v12  ;;  %v10414_v12 = vsub.f32 %v13896_v34, %v10250_v55  ;;  %v727_v25 = vmul.f32 %v10407_v8, %v10407_v8  ;;  %v13901_v34 = vmax.f32 %v10144_v13, 0.0 }
 0x1d3   :  { %v770_v39 = vadd.f32 %v769_v40, %v722_v18  ;;  %v10421_v18 = vsub.f32 %v13897_v59, %v10250_v55  ;;  %v728_v27 = vmul.f32 %v10414_v12, %v10414_v12  ;;  %v13902_v59 = vmax.f32 %v10150_v45, 0.0 }
 0x1d5   :  { %v771_v57 = vadd.f32 %v770_v39, %v723_v24  ;;  %v10428_v24 = vsub.f32 %v13898_v17, %v10250_v55  ;;  %v729_v29 = vmul.f32 %v10421_v18, %v10421_v18  ;;  %v13903_v17 = vmax.f32 %v10156_v32, 0.0 }
 0x1d7   :  { %v772_v36 = vadd.f32 %v771_v57, %v724_v19  ;;  %v10435_v19 = vsub.f32 %v13899_v38, %v10250_v55  ;;  %v730_v31 = vmul.f32 %v10428_v24, %v10428_v24  ;;  %v13904_v38 = vmax.f32 %v10162_v54, 0.0 }
 0x1d9   :  { %v773_v28 = vadd.f32 %v772_v36, %v725_v21  ;;  %v10442_v21 = vsub.f32 %v13900_v47, %v10250_v55  ;;  %v731_v35 = vmul.f32 %v10435_v19, %v10435_v19  ;;  %v13905_v47 = vmax.f32 %v10168_v6, 0.0 }
 0x1db   :  { %v774_v40 = vadd.f32 %v773_v28, %v726_v23  ;;  %v10449_v23 = vsub.f32 %v13901_v34, %v10250_v55  ;;  %v732_v41 = vmul.f32 %v10442_v21, %v10442_v21  ;;  %v13906_v34 = vmax.f32 %v10174_v26, 0.0 }
 0x1dd   :  { %v775_v39 = vadd.f32 %v774_v40, %v727_v25  ;;  %v10456_v25 = vsub.f32 %v13902_v59, %v10250_v55  ;;  %v733_v13 = vmul.f32 %v10449_v23, %v10449_v23  ;;  %v13907_v59 = vmax.f32 %v10180_v46, 0.0 }
 0x1df   :  { %v776_v57 = vadd.f32 %v775_v39, %v728_v27  ;;  %v10463_v27 = vsub.f32 %v13903_v17, %v10250_v55  ;;  %v734_v45 = vmul.f32 %v10456_v25, %v10456_v25  ;;  %v13908_v17 = vmax.f32 %v10186_v62, 0.0 }
 0x1e1   :  { %v777_v36 = vadd.f32 %v776_v57, %v729_v29  ;;  %v10470_v29 = vsub.f32 %v13904_v38, %v10250_v55  ;;  %v735_v32 = vmul.f32 %v10463_v27, %v10463_v27  ;;  %v13909_v38 = vmax.f32 %v10192_v14, 0.0 }
 0x1e3   :  { %v778_v28 = vadd.f32 %v777_v36, %v730_v31  ;;  %v10477_v31 = vsub.f32 %v13905_v47, %v10250_v55  ;;  %v736_v54 = vmul.f32 %v10470_v29, %v10470_v29  ;;  %v13910_v47 = vmax.f32 %v10198_v20, 0.0 }
 0x1e5   :  { %v779_v40 = vadd.f32 %v778_v28, %v731_v35  ;;  %v10484_v35 = vsub.f32 %v13906_v34, %v10250_v55  ;;  %v737_v6 = vmul.f32 %v10477_v31, %v10477_v31  ;;  %v13911_v34 = vmax.f32 %v10204_v49, 0.0 }
 0x1e7   :  { %v780_v39 = vadd.f32 %v779_v40, %v732_v41  ;;  %v10491_v41 = vsub.f32 %v13907_v59, %v10250_v55  ;;  %v738_v26 = vmul.f32 %v10484_v35, %v10484_v35  ;;  %v13912_v59 = vmax.f32 %v10210_v10, 0.0 }
 0x1e9   :  { %v781_v57 = vadd.f32 %v780_v39, %v733_v13  ;;  %v10498_v13 = vsub.f32 %v13908_v17, %v10250_v55  ;;  %v739_v46 = vmul.f32 %v10491_v41, %v10491_v41  ;;  %v13913_v17 = vld [vmem:[#allocation6_spill] sm:$0xff] }
 0x1eb   :  { %v782_v36 = vadd.f32 %v781_v57, %v734_v45  ;;  %v10505_v45 = vsub.f32 %v13909_v38, %v10250_v55  ;;  %v740_v62 = vmul.f32 %v10498_v13, %v10498_v13 }
 0x1ed   :  { %v783_v28 = vadd.f32 %v782_v36, %v735_v32  ;;  %v10512_v32 = vsub.f32 %v13910_v47, %v10250_v55  ;;  %v741_v14 = vmul.f32 %v10505_v45, %v10505_v45 }
 0x1ef   :  { %v784_v40 = vadd.f32 %v783_v28, %v736_v54  ;;  %v10519_v54 = vsub.f32 %v13911_v34, %v10250_v55  ;;  %v742_v20 = vmul.f32 %v10512_v32, %v10512_v32 }
 0x1f1   :  { %v785_v39 = vadd.f32 %v784_v40, %v737_v6  ;;  %v10526_v6 = vsub.f32 %v13912_v59, %v10250_v55  ;;  %v743_v49 = vmul.f32 %v10519_v54, %v10519_v54 }
 0x1f3   :  { %v786_v57 = vadd.f32 %v785_v39, %v738_v26  ;;  %v13914_v26 = vmax.f32 %v13913_v17, 0.0  ;;  %v744_v10 = vmul.f32 %v10526_v6, %v10526_v6 }
 0x1f5   :  { %v787_v36 = vadd.f32 %v786_v57, %v739_v46  ;;  %v10533_v39 = vsub.f32 %v13914_v26, %v10250_v55  ;;  %v13915_v46 = vld [vmem:[#allocation7_spill] sm:$0xff] }
 0x1f6   :  { %v13916_v57 = vmax.f32 %v13915_v46, 0.0 }
 0x1f7   :  { %v788_v28 = vadd.f32 %v787_v36, %v740_v62  ;;  %v13917_v36 = vld [vmem:[#allocation8_spill] sm:$0xff] }
 0x1f8   :  { %v10540_v47 = vsub.f32 %v13916_v57, %v10250_v55  ;;  %v13918_v34 = vmax.f32 %v13917_v36, 0.0  ;;  %v750_v57 = vmul.f32 %v10259_v11, %v10259_v11 }
 0x1f9   :  { %v789_v40 = vadd.f32 %v788_v28, %v741_v14  ;;  %v745_v28 = vmul.f32 %v10533_v39, %v10533_v39 }
 0x1fa   :  { %v10547_v14 = vsub.f32 %v13918_v34, %v10250_v55  ;;  %v749_v55 = vmul.f32 %v10256_v42, %v10256_v42  ;;  %v752_v34 = vmul.f32 %v10265_v15, %v10265_v15 }
 0x1fb   :  { %v790_v38 = vadd.f32 %v789_v40, %v742_v20  ;;  %v746_v20 = vmul.f32 %v10540_v47, %v10540_v47 }
 0x1fc   :  { %v747_v17 = vmul.f32 %v10547_v14, %v10547_v14 }
 0x1fd   :  { %v791_v62 = vadd.f32 %v790_v38, %v743_v49  ;;  %v748_v49 = vmul.f32 %v10253_v9, %v10253_v9 }
 0x1ff   :  { %v792_v59 = vadd.f32 %v791_v62, %v744_v10  ;;  %v751_v62 = vmul.f32 %v10262_v33, %v10262_v33 }
 0x201   :  { %v793_v40 = vadd.f32 %v792_v59, %v745_v28  ;;  %v753_v59 = vmul.f32 %v10268_v2, %v10268_v2 }
 0x203   :  { %v794_v26 = vadd.f32 %v793_v40, %v746_v20  ;;  %v754_v40 = vmul.f32 %v10271_v1, %v10271_v1 }
 0x205   :  { %v795_v38 = vadd.f32 %v794_v26, %v747_v17  ;;  %v755_v26 = vmul.f32 %v10274_v5, %v10274_v5  ;;  %v9613_v5 = vmov 1983009808  }
 0x207   :  { %v796_v46 = vadd.f32 %v795_v38, %v748_v49  ;;  %v756_v38 = vmul.f32 %v10277_v3, %v10277_v3 }
 0x209   :  { %v797_v10 = vadd.f32 %v796_v46, %v749_v55  ;;  %v757_v46 = vmul.f32 %v10280_v58, %v10280_v58 }
 0x20b   :  { %v798_v36 = vadd.f32 %v797_v10, %v750_v57 }
 0x20d   :  { %v799_v28 = vadd.f32 %v798_v36, %v751_v62 }
 0x20f   :  { %v800_v20 = vadd.f32 %v799_v28, %v752_v34 }
 0x211   :  { %v801_v17 = vadd.f32 %v800_v20, %v753_v59 }
 0x213   :  { %v802_v49 = vadd.f32 %v801_v17, %v754_v40  ;;  %v1076_v40 = vunpack.c.l.s4 %v9613_v5  ;;  %v1078_v17 = vlaneseq }
 0x215   :  { %v803_v55 = vadd.f32 %v802_v49, %v755_v26  ;;  %v1077_v15 = vunpack.c.0.s8 %v1076_v40  ;;  %v1079_v33 = vshrl.u32 %v1078_v17, 7  ;;  %v10580_v49 = vld [vmem:[%s13709_s3] ss:$0 sm:$0xff] }
 0x217   :  { %v804_v57 = vadd.f32 %v803_v55, %v756_v38  ;;  %v10582_v38 = vsub.s32 %v1077_v15, %v1079_v33 }
 0x219   :  { %v805_v10 = vadd.f32 %v804_v57, %v757_v46  ;;  %v10599_v46 = vld [vmem:[%s13710_s4] ss:$0 sm:$0xff] }
 0x21b   :  { %v806_v62 = vrot.slane %v805_v10, 4 }
 0x21d   :  { %v807_v36 = vadd.f32 %v806_v62, %v805_v10 }
 0x21f   :  { %v808_v34 = vrot.slane %v807_v36, 2 }
 0x221   :  { %v809_v28 = vadd.f32 %v808_v34, %v807_v36 }
 0x223   :  { %v810_v2 = vrot.slane %v809_v28, 1 }
 0x225   :  { %v811_v1 = vadd.f32 %v810_v2, %v809_v28 }
 0x227   :  { %v812_v59 = vmul.f32 0.0025510204, %v811_v1 }
 0x229   :  { %v813_v20 = vadd.f32 1e-05, %v812_v59 }
 0x22b   :  { %9522 = vrsqrt.f32 %v813_v20 }
 0x235   :  { %v10575_v26 = vpop.eup %9522 }
 0x236   :  { %v862_v2 = vmul.f32 %v10575_v26, %v10277_v3  ;;  %v863_v1 = vmul.f32 %v10575_v26, %v10280_v58  ;;  %v10590_v5 = vmul.f32 %v10575_v26, %v10285_v50  ;;  %v10594_v55 = vmul.f32 %v10575_v26, %v10290_v53 }
 0x237   :  { %v10603_v33 = vmul.f32 %v10575_v26, %v10295_v51  ;;  %v10607_v15 = vmul.f32 %v10575_v26, %v10304_v22  ;;  %v10611_v3 = vmul.f32 %v10575_v26, %v10309_v7  ;;  %v10615_v58 = vmul.f32 %v10575_v26, %v10316_v43 }
 0x238   :  { %v918_v50 = vmul.f32 %v10580_v49, %v862_v2  ;;  %v919_v53 = vmul.f32 %v10580_v49, %v863_v1  ;;  %v10621_v51 = vmul.f32 %v10575_v26, %v10323_v16  ;;  %v10625_v22 = vmul.f32 %v10575_v26, %v10330_v63 }
 0x239   :  { %v10629_v7 = vmul.f32 %v10575_v26, %v10337_v61  ;;  %v10633_v43 = vmul.f32 %v10575_v26, %v10344_v37  ;;  %v10637_v57 = vmul.f32 %v10575_v26, %v10351_v30  ;;  %v10641_v16 = vmul.f32 %v10575_v26, %v10358_v44 }
 0x23a   :  { %v974_v10 = vadd.f32 %v10599_v46, %v918_v50  ;;  %v975_v63 = vadd.f32 %v10599_v46, %v919_v53  ;;  %v10647_v61 = vmul.f32 %v10575_v26, %v10365_v48  ;;  %v10651_v37 = vmul.f32 %v10575_v26, %v10372_v52 }
 0x23b   :  { %v10655_v30 = vmul.f32 %v10575_v26, %v10379_v56  ;;  %v10659_v44 = vmul.f32 %v10575_v26, %v10386_v60  ;;  %v10663_v62 = vmul.f32 %v10575_v26, %v10393_v0  ;;  %v10667_v48 = vmul.f32 %v10575_v26, %v10400_v4 }
 0x23c   :  { %v1023_v36 = vmax.f32 %v974_v10, 0.0  ;;  %v1024_v34 = vmax.f32 %v975_v63, 0.0  ;;  %v10671_v52 = vmul.f32 %v10575_v26, %v10407_v8  ;;  %v10675_v56 = vmul.f32 %v10575_v26, %v10414_v12 }
 0x23d   :  { %v10679_v60 = vmul.f32 %v10575_v26, %v10421_v18  ;;  %v10683_v0 = vmul.f32 %v10575_v26, %v10428_v24  ;;  %v10687_v4 = vmul.f32 %v10575_v26, %v10435_v19  ;;  %v10691_v8 = vmul.f32 %v10575_v26, %v10442_v21 }
 0x23e   :  { %v1873_v28 = vcombine.high %v1023_v36, %v1023_v36  ;;  %v10694_v12 = vrot.slane %v1023_v36, %v10582_v38  ;;  %v1890_v59 = vcombine.high %v1024_v34, %v1024_v34  ;;  %v1897_v18 = vrot.slane %v1024_v34, %v10582_v38 }
 0x23f   :  { %v10699_v20 = vmul.f32 %v10575_v26, %v10449_v23  ;;  %v10703_v24 = vmul.f32 %v10575_v26, %v10456_v25  ;;  %v10707_v19 = vmul.f32 %v10575_v26, %v10463_v27  ;;  %v10711_v21 = vmul.f32 %v10575_v26, %v10470_v29 }
 0x240   :  { %13919 = vst [vmem:[#allocation6_spill] sm:$0xff] %v10694_v12  ;;  %v1887_v40 = vrot.slane %v1873_v28, %v10582_v38  ;;  %v1888_v17 = vcombine.high %v10694_v12, %v10694_v12  ;;  %v1904_v23 = vrot.slane %v1890_v59, %v10582_v38  ;;  %v1905_v2 = vcombine.high %v1897_v18, %v1897_v18 }
 0x241   :  { %v843_v25 = vmul.f32 %v10575_v26, %v10477_v31  ;;  %v844_v1 = vmul.f32 %v10575_v26, %v10484_v35  ;;  %v845_v27 = vmul.f32 %v10575_v26, %v10491_v41  ;;  %v846_v29 = vmul.f32 %v10575_v26, %v10498_v13 }
 0x242   :  { %v1889_v50 = vcombine.high %v1887_v40, %v1887_v40  ;;  %v1906_v53 = vcombine.high %v1904_v23, %v1904_v23  ;;  %v2798_v10 = vcombine.low %v1888_v17, %v1887_v40  ;;  %v2815_v63 = vcombine.low %v1905_v2, %v1904_v23  ;;  %v13920_v2 = vld [vmem:[#allocation9_spill] sm:$0xff] }
 0x243   :  { %v847_v36 = vmul.f32 %v10575_v26, %v10505_v45  ;;  %v848_v34 = vmul.f32 %v10575_v26, %v10512_v32  ;;  %v849_v31 = vmul.f32 %v10575_v26, %v10519_v54  ;;  %v850_v35 = vmul.f32 %v10575_v26, %v10526_v6 }
 0x244   :  { %v2799_v41 = vcombine.low %v1889_v50, %v1897_v18  ;;  %v2806_v28 = vrot.slane %v2798_v10, %v10582_v38  ;;  %v2822_v13 = vrot.slane %v2815_v63, %v10582_v38  ;;  %v2829_v59 = vrot.slane %v1906_v53, %v10582_v38  ;;  %v13921_v50 = vld [vmem:[#allocation10_spill] sm:$0xff]  ;;  %v13922_v53 = vld [vmem:[#allocation11_spill] sm:$0xff]  ;;  %v13923_v10 = vld [vmem:[#allocation12_spill] sm:$0xff] }
 0x245   :  { %v851_v40 = vmul.f32 %v10575_v26, %v10533_v39  ;;  %v852_v45 = vmul.f32 %v10575_v26, %v10540_v47  ;;  %v853_v32 = vmul.f32 %v10575_v26, %v10547_v14  ;;  %v854_v54 = vmul.f32 %v10575_v26, %v10253_v9 }
 0x246   :  { %v2813_v6 = vrot.slane %v2799_v41, %v10582_v38  ;;  %v2830_v18 = vcombine.low %v2822_v13, %v2829_v59  ;;  %v855_v17 = vmul.f32 %v10575_v26, %v10256_v42  ;;  %v856_v23 = vmul.f32 %v10575_v26, %v10259_v11  ;;  %v13924_v41 = vld [vmem:[#allocation13_spill] sm:$0xff] }
 0x247   :  { %v857_v39 = vmul.f32 %v10575_v26, %v13920_v2  ;;  %v858_v47 = vmul.f32 %v10575_v26, %v13921_v50  ;;  %v859_v14 = vmul.f32 %v10575_v26, %v13922_v53  ;;  %v860_v9 = vmul.f32 %v10575_v26, %v13923_v10 }
 0x248   :  { %v2814_v63 = vcombine.low %v2806_v28, %v2813_v6  ;;  %2942 = vst [vmem:[#allocation2 + $0x1b8] sm:$0x3f] %v2830_v18  ;;  %v861_v42 = vmul.f32 %v10575_v26, %v13924_v41  ;;  %v871_v13 = vmul.f32 %v10580_v49, %v10590_v5  ;;  %v872_v59 = vmul.f32 %v10580_v49, %v10594_v55 }
 0x249   :  { %v873_v2 = vmul.f32 %v10580_v49, %v10603_v33  ;;  %v874_v50 = vmul.f32 %v10580_v49, %v10607_v15  ;;  %v875_v28 = vmul.f32 %v10580_v49, %v10611_v3  ;;  %v876_v26 = vmul.f32 %v10580_v49, %v10615_v58 }
 0x24a   :  { %2941 = vst [vmem:[#allocation2 + $0x1b0] sm:$0xff] %v2814_v63  ;;  %v877_v6 = vmul.f32 %v10580_v49, %v10621_v51  ;;  %v878_v5 = vmul.f32 %v10580_v49, %v10625_v22  ;;  %v879_v55 = vmul.f32 %v10580_v49, %v10629_v7  ;;  %v880_v33 = vmul.f32 %v10580_v49, %v10633_v43 }
 0x24b   :  { %v881_v15 = vmul.f32 %v10580_v49, %v10637_v57  ;;  %v882_v3 = vmul.f32 %v10580_v49, %v10641_v16  ;;  %v883_v58 = vmul.f32 %v10580_v49, %v10647_v61  ;;  %v884_v51 = vmul.f32 %v10580_v49, %v10651_v37 }
 0x24c   :  { %v885_v22 = vmul.f32 %v10580_v49, %v10655_v30  ;;  %v886_v7 = vmul.f32 %v10580_v49, %v10659_v44  ;;  %v887_v43 = vmul.f32 %v10580_v49, %v10663_v62  ;;  %v888_v57 = vmul.f32 %v10580_v49, %v10667_v48 }
 0x24d   :  { %v889_v16 = vmul.f32 %v10580_v49, %v10671_v52  ;;  %v890_v61 = vmul.f32 %v10580_v49, %v10675_v56  ;;  %v891_v37 = vmul.f32 %v10580_v49, %v10679_v60  ;;  %v892_v30 = vmul.f32 %v10580_v49, %v10683_v0 }
 0x24e   :  { %v893_v44 = vmul.f32 %v10580_v49, %v10687_v4  ;;  %v894_v62 = vmul.f32 %v10580_v49, %v10691_v8  ;;  %v895_v48 = vmul.f32 %v10580_v49, %v10699_v20  ;;  %v896_v52 = vmul.f32 %v10580_v49, %v10703_v24 }
 0x24f   :  { %v897_v56 = vmul.f32 %v10580_v49, %v10707_v19  ;;  %v898_v60 = vmul.f32 %v10580_v49, %v10711_v21  ;;  %v899_v0 = vmul.f32 %v10580_v49, %v843_v25  ;;  %v900_v18 = vmul.f32 %v10580_v49, %v844_v1 }
 0x250   :  { %v901_v4 = vmul.f32 %v10580_v49, %v845_v27  ;;  %v902_v8 = vmul.f32 %v10580_v49, %v846_v29  ;;  %v903_v53 = vmul.f32 %v10580_v49, %v847_v36  ;;  %v904_v20 = vmul.f32 %v10580_v49, %v848_v34 }
 0x251   :  { %v905_v24 = vmul.f32 %v10580_v49, %v849_v31  ;;  %v906_v10 = vmul.f32 %v10580_v49, %v850_v35  ;;  %v907_v19 = vmul.f32 %v10580_v49, %v851_v40  ;;  %v908_v21 = vmul.f32 %v10580_v49, %v852_v45  ;;  %v9208_v35 = vld [vmem:[%s13711_s5 + $0xc0] sm:$0xff]  }
 0x252   :  { %v909_v25 = vmul.f32 %v10580_v49, %v853_v32  ;;  %v910_v1 = vmul.f32 %v10580_v49, %v854_v54  ;;  %v911_v27 = vmul.f32 %v10580_v49, %v855_v17  ;;  %v912_v29 = vmul.f32 %v10580_v49, %v856_v23  ;;  %8896 = vmatprep.subr.bf16.mxu1 %v9208_v35 }
 0x253   :  { %v10832_v36 = vmul.f32 %v10580_v49, %v857_v39  ;;  %v10835_v34 = vmul.f32 %v10580_v49, %v858_v47  ;;  %v10838_v31 = vmul.f32 %v10580_v49, %v859_v14  ;;  %v916_v40 = vmul.f32 %v10580_v49, %v860_v9  ;;  %8904 = vmatpush3.bf16.msra.mxu1 %v9208_v35 }
 0x254   :  { %v10845_v45 = vmul.f32 %v10580_v49, %v861_v42  ;;  %v10848_v32 = vadd.f32 %v10599_v46, %v871_v13  ;;  %v10851_v54 = vadd.f32 %v10599_v46, %v872_v59  ;;  %v10854_v17 = vadd.f32 %v10599_v46, %v873_v2  ;;  %v9206_v49 = vld [vmem:[%s13711_s5 + $0x40] sm:$0xff]  }
 0x255   :  { %v10857_v23 = vadd.f32 %v10599_v46, %v874_v50  ;;  %v10860_v39 = vadd.f32 %v10599_v46, %v875_v28  ;;  %v10863_v47 = vadd.f32 %v10599_v46, %v876_v26  ;;  %v933_v14 = vadd.f32 %v10599_v46, %v877_v6  ;;  %8421 = vmatprep.subr.bf16.mxu0 %v9206_v49  ;;  %v9209_v50 = vld [vmem:[%s13711_s5 + $0xc8] sm:$0xff]  }
 0x256   :  { %v10870_v9 = vadd.f32 %v10599_v46, %v878_v5  ;;  %v10873_v63 = vadd.f32 %v10599_v46, %v879_v55  ;;  %v10876_v41 = vadd.f32 %v10599_v46, %v880_v33  ;;  %v10879_v42 = vadd.f32 %v10599_v46, %v881_v15  ;;  %8422 = vmatpush3.bf16.msra.mxu0 %v9206_v49 }
 0x257   :  { %v10882_v13 = vadd.f32 %v10599_v46, %v882_v3  ;;  %v10885_v59 = vadd.f32 %v10599_v46, %v883_v58  ;;  %v10888_v2 = vadd.f32 %v10599_v46, %v884_v51  ;;  %v941_v28 = vadd.f32 %v10599_v46, %v885_v22  ;;  %v9207_v58 = vld [vmem:[%s13711_s5 + $0x48] sm:$0xff]   ;;  %8897 = vmatprep.subr.bf16.mxu1 %v9209_v50 }
 0x258   :  { %v10895_v26 = vadd.f32 %v10599_v46, %v886_v7  ;;  %v10898_v6 = vadd.f32 %v10599_v46, %v887_v43  ;;  %v10901_v5 = vadd.f32 %v10599_v46, %v888_v57  ;;  %v10904_v55 = vadd.f32 %v10599_v46, %v889_v16  ;;  %8905 = vmatpush3.bf16.msra.mxu1 %v9209_v50 }
 0x259   :  { %v10907_v33 = vadd.f32 %v10599_v46, %v890_v61  ;;  %v10910_v15 = vadd.f32 %v10599_v46, %v891_v37  ;;  %v10913_v3 = vadd.f32 %v10599_v46, %v892_v30  ;;  %v949_v51 = vadd.f32 %v10599_v46, %v893_v44  ;;  %8423 = vmatprep.subr.bf16.mxu0 %v9207_v58  ;;  %v9210_v30 = vld [vmem:[%s13711_s5 + $0xd0] sm:$0xff]  }
 0x25a   :  { %v10920_v22 = vadd.f32 %v10599_v46, %v894_v62  ;;  %v10923_v7 = vadd.f32 %v10599_v46, %v895_v48  ;;  %v10926_v43 = vadd.f32 %v10599_v46, %v896_v52  ;;  %v10929_v57 = vadd.f32 %v10599_v46, %v897_v56  ;;  %8424 = vmatpush3.bf16.msra.mxu0 %v9207_v58 }
 0x25b   :  { %v10932_v16 = vadd.f32 %v10599_v46, %v898_v60  ;;  %v10935_v61 = vadd.f32 %v10599_v46, %v899_v0  ;;  %v10938_v37 = vadd.f32 %v10599_v46, %v900_v18  ;;  %v957_v44 = vadd.f32 %v10599_v46, %v901_v4  ;;  %8898 = vmatprep.subr.bf16.mxu1 %v9210_v30  ;;  %v9211_v4 = vld [vmem:[%s13711_s5 + $0x50] sm:$0xff]  }
 0x25c   :  { %v10945_v62 = vadd.f32 %v10599_v46, %v902_v8  ;;  %v10948_v48 = vadd.f32 %v10599_v46, %v903_v53  ;;  %v10951_v52 = vadd.f32 %v10599_v46, %v904_v20  ;;  %v10954_v56 = vadd.f32 %v10599_v46, %v905_v24  ;;  %8906 = vmatpush3.bf16.msra.mxu1 %v9210_v30 }
 0x25d   :  { %v10957_v60 = vadd.f32 %v10599_v46, %v906_v10  ;;  %v10960_v0 = vadd.f32 %v10599_v46, %v907_v19  ;;  %v10963_v18 = vadd.f32 %v10599_v46, %v908_v21  ;;  %v10969_v8 = vadd.f32 %v10599_v46, %v909_v25  ;;  %8425 = vmatprep.subr.bf16.mxu0 %v9211_v4 }
 0x25e   :  { %v10972_v53 = vadd.f32 %v10599_v46, %v910_v1  ;;  %v10975_v20 = vadd.f32 %v10599_v46, %v911_v27  ;;  %v10978_v24 = vadd.f32 %v10599_v46, %v912_v29  ;;  %v10982_v10 = vadd.f32 %v10599_v46, %v10832_v36  ;;  %v9212_v1 = vld [vmem:[%s13711_s5 + $0xd8] sm:$0xff]   ;;  %8426 = vmatpush3.bf16.msra.mxu0 %v9211_v4 }
 0x25f   :  { %v10986_v19 = vadd.f32 %v10599_v46, %v10835_v34  ;;  %v10990_v21 = vadd.f32 %v10599_v46, %v10838_v31  ;;  %v10993_v25 = vadd.f32 %v10599_v46, %v916_v40  ;;  %v11000_v27 = vadd.f32 %v10599_v46, %v10845_v45  ;;  %8899 = vmatprep.subr.bf16.mxu1 %v9212_v1  ;;  %v9213_v45 = vld [vmem:[%s13711_s5 + $0x58] sm:$0xff]  }
 0x260   :  { %v11003_v29 = vmax.f32 %v10848_v32, 0.0  ;;  %v11006_v36 = vmax.f32 %v10851_v54, 0.0  ;;  %v11009_v34 = vmax.f32 %v10854_v17, 0.0  ;;  %v11012_v31 = vmax.f32 %v10857_v23, 0.0  ;;  %8907 = vmatpush3.bf16.msra.mxu1 %v9212_v1  ;;  %8427 = vmatprep.subr.bf16.mxu0 %v9213_v45 }
 0x261   :  { %v11015_v35 = vmax.f32 %v10860_v39, 0.0  ;;  %v11018_v40 = vmax.f32 %v10863_v47, 0.0  ;;  %v11020_v46 = vmax.f32 %v933_v14, 0.0  ;;  %v11026_v32 = vmax.f32 %v10870_v9, 0.0  ;;  %v9214_v9 = vld [vmem:[%s13711_s5 + $0xe0] sm:$0xff]  }
 0x262   :  { %v11029_v54 = vmax.f32 %v10873_v63, 0.0  ;;  %v11032_v17 = vmax.f32 %v10876_v41, 0.0  ;;  %v11035_v23 = vmax.f32 %v10879_v42, 0.0  ;;  %v11038_v39 = vmax.f32 %v10882_v13, 0.0  ;;  %8428 = vmatpush3.bf16.msra.mxu0 %v9213_v45  ;;  %8900 = vmatprep.subr.bf16.mxu1 %v9214_v9 }
 0x263   :  { %v11041_v47 = vmax.f32 %v10885_v59, 0.0  ;;  %v11044_v49 = vmax.f32 %v10888_v2, 0.0  ;;  %v11046_v14 = vmax.f32 %v941_v28, 0.0  ;;  %v11052_v63 = vmax.f32 %v10895_v26, 0.0  ;;  %v9215_v26 = vld [vmem:[%s13711_s5 + $0x60] sm:$0xff]  }
 0x264   :  { %v11055_v41 = vmax.f32 %v10898_v6, 0.0  ;;  %v11058_v42 = vmax.f32 %v10901_v5, 0.0  ;;  %v11061_v13 = vmax.f32 %v10904_v55, 0.0  ;;  %v11064_v59 = vmax.f32 %v10907_v33, 0.0  ;;  %8908 = vmatpush3.bf16.msra.mxu1 %v9214_v9  ;;  %8429 = vmatprep.subr.bf16.mxu0 %v9215_v26 }
 0x265   :  { %v11067_v2 = vmax.f32 %v10910_v15, 0.0  ;;  %v11070_v50 = vmax.f32 %v10913_v3, 0.0  ;;  %v11072_v28 = vmax.f32 %v949_v51, 0.0  ;;  %v11078_v6 = vmax.f32 %v10920_v22, 0.0  ;;  %v9216_v22 = vld [vmem:[%s13711_s5 + $0xe8] sm:$0xff]  }
 0x266   :  { %v11081_v5 = vmax.f32 %v10923_v7, 0.0  ;;  %v11084_v55 = vmax.f32 %v10926_v43, 0.0  ;;  %v11087_v33 = vmax.f32 %v10929_v57, 0.0  ;;  %v11090_v15 = vmax.f32 %v10932_v16, 0.0  ;;  %v9217_v7 = vld [vmem:[%s13711_s5 + $0x68] sm:$0xff]   ;;  %8430 = vmatpush3.bf16.msra.mxu0 %v9215_v26  ;;  %8901 = vmatprep.subr.bf16.mxu1 %v9216_v22 }
 0x267   :  { %v11093_v3 = vmax.f32 %v10935_v61, 0.0  ;;  %v11096_v58 = vmax.f32 %v10938_v37, 0.0  ;;  %v11098_v51 = vmax.f32 %v957_v44, 0.0  ;;  %v11107_v43 = vmax.f32 %v10945_v62, 0.0  ;;  %v9218_v37 = vld [vmem:[%s13711_s5 + $0xf0] sm:$0xff]   ;;  %8431 = vmatprep.subr.bf16.mxu0 %v9217_v7 }
 0x268   :  { %v11110_v57 = vmax.f32 %v10948_v48, 0.0  ;;  %v11113_v16 = vmax.f32 %v10951_v52, 0.0  ;;  %v11116_v61 = vmax.f32 %v10954_v56, 0.0  ;;  %v11122_v30 = vmax.f32 %v10957_v60, 0.0  ;;  %v9219_v52 = vld [vmem:[%s13711_s5 + $0x70] sm:$0xff]   ;;  %8909 = vmatpush3.bf16.msra.mxu1 %v9216_v22 }
 0x269   :  { %v11125_v44 = vmax.f32 %v10960_v0, 0.0  ;;  %v11128_v62 = vmax.f32 %v10963_v18, 0.0  ;;  %v11131_v48 = vmax.f32 %v10969_v8, 0.0  ;;  %v11137_v56 = vmax.f32 %v10972_v53, 0.0  ;;  %8902 = vmatprep.subr.bf16.mxu1 %v9218_v37 }
 0x26a   :  { %v11140_v60 = vmax.f32 %v10975_v20, 0.0  ;;  %v11143_v0 = vmax.f32 %v10978_v24, 0.0  ;;  %v11146_v18 = vmax.f32 %v10982_v10, 0.0  ;;  %v11149_v4 = vmax.f32 %v10986_v19, 0.0  ;;  %v9220_v20 = vld [vmem:[%s13711_s5 + $0xf8] sm:$0xff]   ;;  %8432 = vmatpush3.bf16.msra.mxu0 %v9217_v7 }
 0x26b   :  { %v11152_v8 = vmax.f32 %v10990_v21, 0.0  ;;  %v11155_v1 = vmax.f32 %v10993_v25, 0.0  ;;  %v11158_v53 = vmax.f32 %v11000_v27, 0.0  ;;  %v1074_v24 = vcombine.high %v11003_v29, %v11003_v29  ;;  %8433 = vmatprep.subr.bf16.mxu0 %v9219_v52 }
 0x26c   :  { %v11167_v10 = vrot.slane %v11003_v29, %v10582_v38  ;;  %v1091_v19 = vcombine.high %v11006_v36, %v11006_v36  ;;  %v11173_v21 = vrot.slane %v11006_v36, %v10582_v38  ;;  %v1108_v25 = vcombine.high %v11009_v34, %v11009_v34  ;;  %v9221_v36 = vld [vmem:[%s13711_s5 + $0x78] sm:$0xff]   ;;  %8910 = vmatpush3.bf16.msra.mxu1 %v9218_v37 }
 0x26d   :  { %v11179_v27 = vrot.slane %v11009_v34, %v10582_v38  ;;  %v1125_v45 = vcombine.high %v11012_v31, %v11012_v31  ;;  %v11185_v29 = vrot.slane %v11012_v31, %v10582_v38  ;;  %v11191_v9 = vrot.slane %v1074_v24, %v10582_v38  ;;  %8903 = vmatprep.subr.bf16.mxu1 %v9220_v20 }
 0x26e   :  { %v11196_v34 = vrot.slane %v1091_v19, %v10582_v38  ;;  %v11201_v31 = vrot.slane %v1108_v25, %v10582_v38  ;;  %v9225_v19 = vld [vmem:[%s13711_s5 + $0x100] sm:$0xff]   ;;  %v1142_v7 = vcombine.high %v11015_v35, %v11015_v35  ;;  %8434 = vmatpush3.bf16.msra.mxu0 %v9219_v52  ;;  %v1159_v37 = vcombine.high %v11018_v40, %v11018_v40 }
 0x26f   :  { %v11206_v11 = vrot.slane %v1125_v45, %v10582_v38  ;;  %v11221_v45 = vrot.slane %v11015_v35, %v10582_v38  ;;  %v11231_v25 = vrot.slane %v11018_v40, %v10582_v38  ;;  %8435 = vmatprep.subr.bf16.mxu0 %v9221_v36  ;;  %v1176_v52 = vcombine.high %v11020_v46, %v11020_v46 }
 0x270   :  { %v11234_v26 = vrot.slane %v1142_v7, %v10582_v38  ;;  %v11242_v22 = vrot.slane %v11020_v46, %v10582_v38  ;;  %8911 = vmatpush3.bf16.msra.mxu1 %v9220_v20  ;;  %v11245_v24 = vrot.slane %v1159_v37, %v10582_v38  ;;  %v1193_v7 = vcombine.high %v11026_v32, %v11026_v32 }
 0x271   :  { %v11253_v35 = vrot.slane %v11026_v32, %v10582_v38  ;;  %8629 = vmatprep.subr.bf16.mxu1 %v9225_v19  ;;  %v11258_v46 = vrot.slane %v1176_v52, %v10582_v38  ;;  %v1210_v37 = vcombine.high %v11029_v54, %v11029_v54  ;;  %v11273_v52 = vrot.slane %v11029_v54, %v10582_v38 }
 0x272   :  { %8436 = vmatpush3.bf16.msra.mxu0 %v9221_v36  ;;  %v11267_v32 = vrot.slane %v1193_v7, %v10582_v38  ;;  %v1227_v36 = vcombine.high %v11032_v17, %v11032_v17  ;;  %v11284_v7 = vrot.slane %v11032_v17, %v10582_v38  ;;  %v1244_v40 = vcombine.high %v11035_v23, %v11035_v23 }
 0x273   :  { %13925 = vst [vmem:[#allocation7_spill] sm:$0xff] %v11253_v35  ;;  %13926 = vst [vmem:[#allocation8_spill] sm:$0xff] %v11273_v52  ;;  %v11278_v12 = vrot.slane %v1210_v37, %v10582_v38  ;;  %v11294_v37 = vrot.slane %v11035_v23, %v10582_v38  ;;  %v1261_v19 = vcombine.high %v11038_v39, %v11038_v39 }
 0x274   :  { %13927 = vst [vmem:[#allocation9_spill] sm:$0xff] %v11284_v7  ;;  %v11299_v35 = vrot.slane %v1227_v36, %v10582_v38  ;;  %v11306_v54 = vrot.slane %v1244_v40, %v10582_v38  ;;  %v11312_v23 = vrot.slane %v11038_v39, %v10582_v38  ;;  %v1278_v36 = vcombine.high %v11041_v47, %v11041_v47 }
 0x275   :  { %13928 = vst [vmem:[#allocation10_spill] sm:$0xff] %v11294_v37  ;;  %v11319_v17 = vrot.slane %v1261_v19, %v10582_v38  ;;  %v11323_v40 = vrot.slane %v11041_v47, %v10582_v38  ;;  %v1295_v52 = vcombine.high %v11044_v49, %v11044_v49  ;;  %v11336_v19 = vrot.slane %v11044_v49, %v10582_v38 }
 0x276   :  { %13929 = vst [vmem:[#allocation11_spill] sm:$0xff] %v11299_v35  ;;  %v11332_v7 = vrot.slane %v1278_v36, %v10582_v38  ;;  %v1312_v39 = vcombine.high %v11046_v14, %v11046_v14  ;;  %v11353_v49 = vrot.slane %v11046_v14, %v10582_v38  ;;  %v1329_v47 = vcombine.high %v11052_v63, %v11052_v63 }
 0x277   :  { %13930 = vst [vmem:[#allocation12_spill] sm:$0xff] %v11323_v40  ;;  %13931 = vst [vmem:[#allocation13_spill] sm:$0xff] %v11336_v19  ;;  %v11343_v35 = vrot.slane %v1295_v52, %v10582_v38  ;;  %v11364_v40 = vrot.slane %v11052_v63, %v10582_v38  ;;  %v1346_v37 = vcombine.high %v11055_v41, %v11055_v41 }
 0x278   :  { %13933 = vst [vmem:[#allocation15_spill] sm:$0xff] %v11353_v49  ;;  %v11360_v20 = vrot.slane %v1312_v39, %v10582_v38  ;;  %v11371_v36 = vrot.slane %v1329_v47, %v10582_v38  ;;  %v11375_v19 = vrot.slane %v11055_v41, %v10582_v38  ;;  %v1363_v39 = vcombine.high %v11058_v42, %v11058_v42 }
 0x279   :  { %13932 = vst [vmem:[#allocation14_spill] sm:$0xff] %v11343_v35  ;;  %v11384_v35 = vrot.slane %v1346_v37, %v10582_v38  ;;  %v11388_v47 = vrot.slane %v11058_v42, %v10582_v38  ;;  %v1380_v63 = vcombine.high %v11061_v13, %v11061_v13  ;;  %v11405_v42 = vrot.slane %v11061_v13, %v10582_v38 }
 0x27a   :  { %13934 = vst [vmem:[#allocation16_spill] sm:$0xff] %v11375_v19  ;;  %v11395_v49 = vrot.slane %v1363_v39, %v10582_v38  ;;  %v1397_v41 = vcombine.high %v11064_v59, %v11064_v59  ;;  %v11416_v19 = vrot.slane %v11064_v59, %v10582_v38  ;;  %v1414_v52 = vcombine.high %v11067_v2, %v11067_v2 }
 0x27b   :  { %13935 = vst [vmem:[#allocation17_spill] sm:$0xff] %v11388_v47  ;;  %13937 = vst [vmem:[#allocation19_spill] sm:$0xff] %v11405_v42  ;;  %v11412_v14 = vrot.slane %v1380_v63, %v10582_v38  ;;  %v11427_v47 = vrot.slane %v11067_v2, %v10582_v38  ;;  %v1431_v63 = vcombine.high %v11070_v50, %v11070_v50 }
 0x27c   :  { %13936 = vst [vmem:[#allocation18_spill] sm:$0xff] %v11395_v49  ;;  %v11423_v37 = vrot.slane %v1397_v41, %v10582_v38  ;;  %v11436_v49 = vrot.slane %v1414_v52, %v10582_v38  ;;  %v11440_v41 = vrot.slane %v11070_v50, %v10582_v38  ;;  %v1448_v59 = vcombine.high %v11072_v28, %v11072_v28 }
 0x27d   :  { %13938 = vst [vmem:[#allocation20_spill] sm:$0xff] %v11427_v47  ;;  %v11447_v42 = vrot.slane %v1431_v63, %v10582_v38  ;;  %v11457_v50 = vrot.slane %v11072_v28, %v10582_v38  ;;  %v1465_v2 = vcombine.high %v11078_v6, %v11078_v6  ;;  %v11468_v47 = vrot.slane %v11078_v6, %v10582_v38 }
 0x27e   :  { %13939 = vst [vmem:[#allocation21_spill] sm:$0xff] %v11440_v41  ;;  %v11464_v13 = vrot.slane %v1448_v59, %v10582_v38  ;;  %v1482_v39 = vcombine.high %v11081_v5, %v11081_v5  ;;  %v11479_v41 = vrot.slane %v11081_v5, %v10582_v38  ;;  %v1499_v59 = vcombine.high %v11084_v55, %v11084_v55 }
 0x27f   :  { %13940 = vst [vmem:[#allocation22_spill] sm:$0xff] %v11447_v42  ;;  %13941 = vst [vmem:[#allocation23_spill] sm:$0xff] %v11457_v50  ;;  %v11475_v52 = vrot.slane %v1465_v2, %v10582_v38  ;;  %v11492_v2 = vrot.slane %v11084_v55, %v10582_v38  ;;  %v1516_v6 = vcombine.high %v11087_v33, %v11087_v33 }
 0x280   :  { %13942 = vst [vmem:[#allocation24_spill] sm:$0xff] %v11479_v41  ;;  %v11488_v42 = vrot.slane %v1482_v39, %v10582_v38  ;;  %v11499_v50 = vrot.slane %v1499_v59, %v10582_v38  ;;  %v11509_v55 = vrot.slane %v11087_v33, %v10582_v38  ;;  %v1533_v5 = vcombine.high %v11090_v15, %v11090_v15 }
 0x281   :  { %13943 = vst [vmem:[#allocation25_spill] sm:$0xff] %v11492_v2  ;;  %v11516_v28 = vrot.slane %v1516_v6, %v10582_v38  ;;  %v11520_v41 = vrot.slane %v11090_v15, %v10582_v38  ;;  %v1550_v63 = vcombine.high %v11093_v3, %v11093_v3  ;;  %v11531_v2 = vrot.slane %v11093_v3, %v10582_v38 }
 0x282   :  { %13944 = vst [vmem:[#allocation26_spill] sm:$0xff] %v11499_v50  ;;  %13945 = vst [vmem:[#allocation27_spill] sm:$0xff] %v11509_v55  ;;  %v11527_v39 = vrot.slane %v1533_v5, %v10582_v38  ;;  %v1567_v6 = vcombine.high %v11096_v58, %v11096_v58  ;;  %v11544_v5 = vrot.slane %v11096_v58, %v10582_v38 }
 0x283   :  { %13946 = vst [vmem:[#allocation28_spill] sm:$0xff] %v11531_v2  ;;  %v11540_v50 = vrot.slane %v1550_v63, %v10582_v38  ;;  %v1584_v15 = vcombine.high %v11098_v51, %v11098_v51  ;;  %v11561_v58 = vrot.slane %v11098_v51, %v10582_v38  ;;  %v1601_v3 = vcombine.high %v11107_v43, %v11107_v43  ;;  %v11579_v51 = vld [vmem:[%s13711_s5] sm:$0xff]  }
 0x284   :  { %13948 = vst [vmem:[#allocation30_spill] sm:$0xff] %v11544_v5  ;;  %v11551_v55 = vrot.slane %v1567_v6, %v10582_v38  ;;  %v11572_v2 = vrot.slane %v11107_v43, %v10582_v38  ;;  %v1618_v59 = vcombine.high %v11110_v57, %v11110_v57  ;;  %13950 = vst [vmem:[#allocation32_spill] sm:$0xff] %v11579_v51  ;;  %8473 = vmatprep.subr.bf16.mxu0 %v11579_v51 }
 0x285   :  { %13947 = vst [vmem:[#allocation29_spill] sm:$0xff] %v11540_v50  ;;  %v11568_v33 = vrot.slane %v1584_v15, %v10582_v38  ;;  %v11584_v6 = vrot.slane %v1601_v3, %v10582_v38  ;;  %v11588_v15 = vrot.slane %v11110_v57, %v10582_v38  ;;  %v1635_v43 = vcombine.high %v11113_v16, %v11113_v16 }
 0x286   :  { %13949 = vst [vmem:[#allocation31_spill] sm:$0xff] %v11551_v55  ;;  %v11597_v50 = vrot.slane %v1618_v59, %v10582_v38  ;;  %v11601_v3 = vrot.slane %v11113_v16, %v10582_v38  ;;  %v1652_v5 = vcombine.high %v11116_v61, %v11116_v61  ;;  %v11619_v51 = vrot.slane %v11116_v61, %v10582_v38 }
 0x287   :  { %13951 = vst [vmem:[#allocation33_spill] sm:$0xff] %v11588_v15  ;;  %v11609_v55 = vrot.slane %v1635_v43, %v10582_v38  ;;  %v1669_v57 = vcombine.high %v11122_v30, %v11122_v30  ;;  %v11630_v15 = vrot.slane %v11122_v30, %v10582_v38  ;;  %v1686_v16 = vcombine.high %v11125_v44, %v11125_v44 }
 0x288   :  { %13952 = vst [vmem:[#allocation34_spill] sm:$0xff] %v11601_v3  ;;  %13954 = vst [vmem:[#allocation36_spill] sm:$0xff] %v11619_v51  ;;  %v11626_v63 = vrot.slane %v1652_v5, %v10582_v38  ;;  %v11641_v3 = vrot.slane %v11125_v44, %v10582_v38  ;;  %v1703_v5 = vcombine.high %v11128_v62, %v11128_v62 }
 0x289   :  { %13953 = vst [vmem:[#allocation35_spill] sm:$0xff] %v11609_v55  ;;  %v11637_v59 = vrot.slane %v1669_v57, %v10582_v38  ;;  %v11650_v55 = vrot.slane %v1686_v16, %v10582_v38  ;;  %v11654_v57 = vrot.slane %v11128_v62, %v10582_v38  ;;  %v1720_v30 = vcombine.high %v11131_v48, %v11131_v48 }
 0x28a   :  { %13955 = vst [vmem:[#allocation37_spill] sm:$0xff] %v11641_v3  ;;  %v11661_v51 = vrot.slane %v1703_v5, %v10582_v38  ;;  %v11671_v62 = vrot.slane %v11131_v48, %v10582_v38  ;;  %v1737_v44 = vcombine.high %v11137_v56, %v11137_v56  ;;  %v11682_v3 = vrot.slane %v11137_v56, %v10582_v38 }
 0x28b   :  { %13956 = vst [vmem:[#allocation38_spill] sm:$0xff] %v11654_v57  ;;  %v11678_v61 = vrot.slane %v1720_v30, %v10582_v38  ;;  %v1754_v43 = vcombine.high %v11140_v60, %v11140_v60  ;;  %v11693_v57 = vrot.slane %v11140_v60, %v10582_v38  ;;  %v1771_v30 = vcombine.high %v11143_v0, %v11143_v0 }
 0x28c   :  { %13957 = vst [vmem:[#allocation39_spill] sm:$0xff] %v11661_v51  ;;  %13958 = vst [vmem:[#allocation40_spill] sm:$0xff] %v11671_v62  ;;  %v11689_v16 = vrot.slane %v1737_v44, %v10582_v38  ;;  %v11706_v44 = vrot.slane %v11143_v0, %v10582_v38  ;;  %v1788_v56 = vcombine.high %v11146_v18, %v11146_v18 }
 0x28d   :  { %13959 = vst [vmem:[#allocation41_spill] sm:$0xff] %v11693_v57  ;;  %v11702_v51 = vrot.slane %v1754_v43, %v10582_v38  ;;  %v11713_v62 = vrot.slane %v1771_v30, %v10582_v38  ;;  %v11723_v0 = vrot.slane %v11146_v18, %v10582_v38  ;;  %v1805_v60 = vcombine.high %v11149_v4, %v11149_v4 }
 0x28e   :  { %13960 = vst [vmem:[#allocation42_spill] sm:$0xff] %v11706_v44  ;;  %v11730_v48 = vrot.slane %v1788_v56, %v10582_v38  ;;  %v11734_v57 = vrot.slane %v11149_v4, %v10582_v38  ;;  %v1822_v5 = vcombine.high %v11152_v8, %v11152_v8  ;;  %v11745_v44 = vrot.slane %v11152_v8, %v10582_v38 }
 0x28f   :  { %13961 = vst [vmem:[#allocation43_spill] sm:$0xff] %v11713_v62  ;;  %13962 = vst [vmem:[#allocation44_spill] sm:$0xff] %v11723_v0  ;;  %v11741_v43 = vrot.slane %v1805_v60, %v10582_v38  ;;  %v1839_v56 = vcombine.high %v11155_v1, %v11155_v1  ;;  %v11758_v60 = vrot.slane %v11155_v1, %v10582_v38 }
 0x290   :  { %13963 = vst [vmem:[#allocation45_spill] sm:$0xff] %v11745_v44  ;;  %v11754_v62 = vrot.slane %v1822_v5, %v10582_v38  ;;  %v1856_v4 = vcombine.high %v11158_v53, %v11158_v53  ;;  %v11775_v1 = vrot.slane %v11158_v53, %v10582_v38  ;;  %v13968_v8 = vcombine.high %v11167_v10, %v11167_v10 }
 0x291   :  { %13965 = vst [vmem:[#allocation47_spill] sm:$0xff] %v11758_v60  ;;  %v11765_v0 = vrot.slane %v1839_v56, %v10582_v38  ;;  %v13970_v5 = vcombine.high %v11191_v9, %v11191_v9  ;;  %v13971_v53 = vcombine.high %v11173_v21, %v11173_v21 }
 0x292   :  { %13964 = vst [vmem:[#allocation46_spill] sm:$0xff] %v11754_v62  ;;  %13967 = vst [vmem:[#allocation49_spill] sm:$0xff] %v11775_v1  ;;  %v1907_v18 = vcombine.low %v11167_v10, %v13968_v8  ;;  %v11784_v44 = vrot.slane %v1856_v4, %v10582_v38  ;;  %v1938_v8 = vrot.slane %v11196_v34, %v10582_v38 }
 0x293   :  { %13966 = vst [vmem:[#allocation48_spill] sm:$0xff] %v11765_v0  ;;  %v1908_v30 = vcombine.low %v11191_v9, %v13970_v5  ;;  %v1924_v60 = vcombine.low %v11173_v21, %v13971_v53  ;;  %v13972_v4 = vcombine.high %v11196_v34, %v11196_v34  ;;  %v13973_v53 = vcombine.high %v11179_v27, %v11179_v27 }
 0x294   :  { %13969 = vst [vmem:[#allocation50_spill] sm:$0xff] %v11784_v44  ;;  %v1915_v10 = vrot.slane %v1907_v18, %v10582_v38  ;;  %v13974_v1 = vcombine.high %v11201_v31, %v11201_v31 }
 0x295   :  { %v1940_v56 = vcombine.low %v13972_v4, %v11179_v27  ;;  %v1922_v5 = vrot.slane %v1908_v30, %v10582_v38  ;;  %v1931_v21 = vrot.slane %v1924_v60, %v10582_v38  ;;  %v1941_v18 = vcombine.low %v13973_v53, %v11201_v31 }
 0x296   :  { %v1957_v34 = vcombine.low %v13974_v1, %v11185_v29  ;;  %v13975_v4 = vcombine.high %v11185_v29, %v11185_v29  ;;  %v13976_v30 = vcombine.high %v11206_v11, %v11206_v11  ;;  %v13978_v29 = vcombine.high %v11234_v26, %v11234_v26 }
 0x297   :  { %v1948_v62 = vrot.slane %v1940_v56, %v10582_v38  ;;  %v1923_v44 = vcombine.low %v1915_v10, %v1922_v5  ;;  %v1939_v27 = vcombine.low %v1931_v21, %v1938_v8  ;;  %v1955_v53 = vrot.slane %v1941_v18, %v10582_v38 }
 0x298   :  { %v1971_v9 = vrot.slane %v13975_v4, %v10582_v38  ;;  %v1973_v60 = vcombine.low %v11206_v11, %v13976_v30  ;;  %v13977_v56 = vcombine.high %v11221_v45, %v11221_v45  ;;  %v1964_v1 = vrot.slane %v1957_v34, %v10582_v38 }
 0x299   :  { %v1990_v4 = vcombine.low %v11234_v26, %v13978_v29  ;;  %v2004_v11 = vrot.slane %v11231_v25, %v10582_v38  ;;  %v1956_v10 = vcombine.low %v1948_v62, %v1955_v53  ;;  %v13979_v5 = vcombine.high %v11231_v25, %v11231_v25  ;;  %2887 = vst [vmem:[#allocation2] sm:$0xff] %v1923_v44  ;;  %v13983_v44 = vld [vmem:[#allocation7_spill] sm:$0xff]  ;;  %v13986_v29 = vld [vmem:[#allocation8_spill] sm:$0xff] }
 0x29a   :  { %v1974_v31 = vcombine.low %v11221_v45, %v13977_v56  ;;  %v1981_v0 = vrot.slane %v1973_v60, %v10582_v38  ;;  %v13980_v21 = vcombine.high %v11245_v24, %v11245_v24  ;;  %2888 = vst [vmem:[#allocation2 + $0x8] sm:$0x3f] %v1939_v27  ;;  %v1972_v34 = vcombine.low %v1964_v1, %v1971_v9 }
 0x29b   :  { %v2006_v45 = vcombine.low %v13979_v5, %v11245_v24  ;;  %v1997_v26 = vrot.slane %v1990_v4, %v10582_v38  ;;  %v13981_v62 = vcombine.high %v11242_v22, %v11242_v22  ;;  %v13982_v25 = vcombine.high %v11258_v46, %v11258_v46  ;;  %2889 = vst [vmem:[#allocation2 + $0x10] sm:$0xff] %v1956_v10 }
 0x29c   :  { %v1988_v8 = vrot.slane %v1974_v31, %v10582_v38  ;;  %v2007_v18 = vcombine.low %v13980_v21, %v11242_v22  ;;  %v13984_v9 = vcombine.high %v13983_v44, %v13983_v44  ;;  %v13985_v1 = vcombine.high %v11267_v32, %v11267_v32  ;;  %2890 = vst [vmem:[#allocation2 + $0x18] sm:$0x3f] %v1972_v34 }
 0x29d   :  { %v2023_v30 = vcombine.low %v13981_v62, %v11258_v46  ;;  %v2037_v60 = vrot.slane %v13982_v25, %v10582_v38  ;;  %v2014_v56 = vrot.slane %v2006_v45, %v10582_v38  ;;  %v2005_v31 = vcombine.low %v1997_v26, %v2004_v11  ;;  %v13988_v11 = vld [vmem:[#allocation9_spill] sm:$0xff]  ;;  %v13990_v62 = vld [vmem:[#allocation11_spill] sm:$0xff] }
 0x29e   :  { %v1989_v53 = vcombine.low %v1981_v0, %v1988_v8  ;;  %v2021_v24 = vrot.slane %v2007_v18, %v10582_v38  ;;  %v2039_v27 = vcombine.low %v13983_v44, %v13984_v9  ;;  %v2040_v46 = vcombine.low %v11267_v32, %v13985_v1 }
 0x29f   :  { %v2030_v22 = vrot.slane %v2023_v30, %v10582_v38  ;;  %v13987_v0 = vcombine.high %v13986_v29, %v13986_v29  ;;  %v2070_v10 = vrot.slane %v11278_v12, %v10582_v38  ;;  %v13989_v45 = vcombine.high %v11278_v12, %v11278_v12  ;;  %2892 = vst [vmem:[#allocation2 + $0x28] sm:$0x3f] %v2005_v31 }
 0x2a0   :  { %v2022_v8 = vcombine.low %v2014_v56, %v2021_v24  ;;  %v2047_v5 = vrot.slane %v2039_v27, %v10582_v38  ;;  %2891 = vst [vmem:[#allocation2 + $0x20] sm:$0xff] %v1989_v53  ;;  %v2054_v32 = vrot.slane %v2040_v46, %v10582_v38  ;;  %v13991_v34 = vcombine.high %v13988_v11, %v13988_v11  ;;  %v13992_v56 = vld [vmem:[#allocation10_spill] sm:$0xff] }
 0x2a1   :  { %v2056_v4 = vcombine.low %v13986_v29, %v13987_v0  ;;  %v2072_v21 = vcombine.low %v13989_v45, %v13988_v11  ;;  %v2038_v18 = vcombine.low %v2030_v22, %v2037_v60  ;;  %v13993_v24 = vcombine.high %v13990_v62, %v13990_v62 }
 0x2a2   :  { %v2073_v30 = vcombine.low %v13991_v34, %v13990_v62  ;;  %v13994_v60 = vcombine.high %v13992_v56, %v13992_v56  ;;  %v13995_v44 = vcombine.high %v11306_v54, %v11306_v54  ;;  %2893 = vst [vmem:[#allocation2 + $0x30] sm:$0xff] %v2022_v8  ;;  %v2055_v27 = vcombine.low %v2047_v5, %v2054_v32  ;;  %v13998_v8 = vld [vmem:[#allocation12_spill] sm:$0xff]  ;;  %v14002_v62 = vld [vmem:[#allocation14_spill] sm:$0xff] }
 0x2a3   :  { %v2063_v26 = vrot.slane %v2056_v4, %v10582_v38  ;;  %v2080_v25 = vrot.slane %v2072_v21, %v10582_v38  ;;  %v2089_v12 = vcombine.low %v13993_v24, %v13992_v56  ;;  %v13996_v1 = vcombine.high %v11312_v23, %v11312_v23  ;;  %2894 = vst [vmem:[#allocation2 + $0x38] sm:$0x3f] %v2038_v18  ;;  %v14000_v21 = vld [vmem:[#allocation13_spill] sm:$0xff] }
 0x2a4   :  { %v2103_v53 = vrot.slane %v13994_v60, %v10582_v38  ;;  %v2105_v9 = vcombine.low %v11306_v54, %v13995_v44  ;;  %v2087_v22 = vrot.slane %v2073_v30, %v10582_v38  ;;  %v13997_v4 = vcombine.high %v11319_v17, %v11319_v17  ;;  %2895 = vst [vmem:[#allocation2 + $0x40] sm:$0xff] %v2055_v27  ;;  %v14005_v60 = vld [vmem:[#allocation15_spill] sm:$0xff] }
 0x2a5   :  { %v2071_v31 = vcombine.low %v2063_v26, %v2070_v10  ;;  %v2106_v46 = vcombine.low %v11312_v23, %v13996_v1  ;;  %v2096_v29 = vrot.slane %v2089_v12, %v10582_v38  ;;  %v2136_v5 = vrot.slane %v13998_v8, %v10582_v38 }
 0x2a6   :  { %v2113_v0 = vrot.slane %v2105_v9, %v10582_v38  ;;  %v2122_v54 = vcombine.low %v11319_v17, %v13997_v4  ;;  %v2088_v10 = vcombine.low %v2080_v25, %v2087_v22  ;;  %v13999_v23 = vcombine.high %v13998_v8, %v13998_v8 }
 0x2a7   :  { %v11910_v11 = vrot.slane %v2106_v46, %v10582_v38  ;;  %v14001_v18 = vcombine.high %v11332_v7, %v11332_v7  ;;  %2896 = vst [vmem:[#allocation2 + $0x48] sm:$0x3f] %v2071_v31  ;;  %v2104_v17 = vcombine.low %v2096_v29, %v2103_v53  ;;  %v14003_v34 = vcombine.high %v14000_v21, %v14000_v21 }
 0x2a8   :  { %v2138_v45 = vcombine.low %v13999_v23, %v11332_v7  ;;  %v2129_v26 = vrot.slane %v2122_v54, %v10582_v38  ;;  %v14004_v25 = vcombine.high %v14002_v62, %v14002_v62  ;;  %v14006_v53 = vcombine.high %v14005_v60, %v14005_v60  ;;  %2897 = vst [vmem:[#allocation2 + $0x50] sm:$0xff] %v2088_v10  ;;  %v14009_v54 = vld [vmem:[#allocation16_spill] sm:$0xff] }
 0x2a9   :  { %v2139_v32 = vcombine.low %v14001_v18, %v14000_v21  ;;  %v2155_v30 = vcombine.low %v14003_v34, %v14002_v62  ;;  %v2121_v24 = vcombine.low %v2113_v0, %v11910_v11  ;;  %v14007_v31 = vcombine.high %v11360_v20, %v11360_v20  ;;  %2898 = vst [vmem:[#allocation2 + $0x58] sm:$0x3f] %v2104_v17  ;;  %v14012_v18 = vld [vmem:[#allocation17_spill] sm:$0xff]  ;;  %v14015_v62 = vld [vmem:[#allocation18_spill] sm:$0xff] }
 0x2aa   :  { %v2169_v56 = vrot.slane %v14004_v25, %v10582_v38  ;;  %v2146_v7 = vrot.slane %v2138_v45, %v10582_v38  ;;  %v2171_v44 = vcombine.low %v14005_v60, %v14006_v53  ;;  %v2137_v9 = vcombine.low %v2129_v26, %v2136_v5 }
 0x2ab   :  { %v2153_v12 = vrot.slane %v2139_v32, %v10582_v38  ;;  %v2162_v27 = vrot.slane %v2155_v30, %v10582_v38  ;;  %v2172_v22 = vcombine.low %v11360_v20, %v14007_v31  ;;  %v14008_v1 = vcombine.high %v11364_v40, %v11364_v40  ;;  %2899 = vst [vmem:[#allocation2 + $0x60] sm:$0xff] %v2121_v24 }
 0x2ac   :  { %v11948_v0 = vrot.slane %v2171_v44, %v10582_v38  ;;  %v2202_v4 = vrot.slane %v11371_v36, %v10582_v38  ;;  %v14010_v8 = vcombine.high %v11371_v36, %v11371_v36  ;;  %v14011_v23 = vcombine.high %v14009_v54, %v14009_v54  ;;  %2900 = vst [vmem:[#allocation2 + $0x68] sm:$0x3f] %v2137_v9 }
 0x2ad   :  { %v2188_v46 = vcombine.low %v11364_v40, %v14008_v1  ;;  %v11945_v29 = vcombine.low %v2146_v7, %v2153_v12  ;;  %v2170_v20 = vcombine.low %v2162_v27, %v2169_v56  ;;  %v11957_v10 = vrot.slane %v2172_v22, %v10582_v38 }
 0x2ae   :  { %v2204_v5 = vcombine.low %v14010_v8, %v14009_v54  ;;  %v2205_v45 = vcombine.low %v14011_v23, %v11384_v35  ;;  %v14013_v36 = vcombine.high %v11384_v35, %v11384_v35  ;;  %v14014_v17 = vcombine.high %v14012_v18, %v14012_v18  ;;  %v14017_v35 = vld [vmem:[#allocation19_spill] sm:$0xff] }
 0x2af   :  { %v2195_v40 = vrot.slane %v2188_v46, %v10582_v38  ;;  %v14016_v34 = vcombine.high %v14015_v62, %v14015_v62  ;;  %2901 = vst [vmem:[#allocation2 + $0x70] sm:$0xff] %v11945_v29  ;;  %v2187_v25 = vcombine.low %v11948_v0, %v11957_v10  ;;  %v14018_v7 = vcombine.high %v14017_v35, %v14017_v35 }
 0x2b0   :  { %v2212_v21 = vrot.slane %v2204_v5, %v10582_v38  ;;  %v2221_v32 = vcombine.low %v14013_v36, %v14012_v18  ;;  %v2235_v26 = vrot.slane %v14014_v17, %v10582_v38  ;;  %v2219_v24 = vrot.slane %v2205_v45, %v10582_v38  ;;  %2902 = vst [vmem:[#allocation2 + $0x78] sm:$0x3f] %v2170_v20  ;;  %v14025_v18 = vld [vmem:[#allocation21_spill] sm:$0xff] }
 0x2b1   :  { %v2237_v30 = vcombine.low %v14015_v62, %v14016_v34  ;;  %v2203_v56 = vcombine.low %v2195_v40, %v2202_v4  ;;  %v2238_v12 = vcombine.low %v14017_v35, %v14018_v7  ;;  %v14019_v44 = vcombine.high %v11412_v14, %v11412_v14  ;;  %v14021_v4 = vld [vmem:[#allocation20_spill] sm:$0xff]  ;;  %2903 = vst [vmem:[#allocation2 + $0x80] sm:$0xff] %v2187_v25  ;;  %v14027_v62 = vld [vmem:[#allocation22_spill] sm:$0xff] }
 0x2b2   :  { %v2228_v60 = vrot.slane %v2221_v32, %v10582_v38  ;;  %v2268_v27 = vrot.slane %v11416_v19, %v10582_v38  ;;  %v11995_v31 = vcombine.low %v2212_v21, %v2219_v24  ;;  %v14020_v1 = vcombine.high %v11416_v19, %v11416_v19 }
 0x2b3   :  { %v11987_v53 = vrot.slane %v2237_v30, %v10582_v38  ;;  %v2254_v9 = vcombine.low %v11412_v14, %v14019_v44  ;;  %v11998_v22 = vrot.slane %v2238_v12, %v10582_v38  ;;  %v14022_v54 = vcombine.high %v11423_v37, %v11423_v37  ;;  %2904 = vst [vmem:[#allocation2 + $0x88] sm:$0x3f] %v2203_v56  ;;  %v14029_v30 = vld [vmem:[#allocation23_spill] sm:$0xff] }
 0x2b4   :  { %v2270_v46 = vcombine.low %v14020_v1, %v11423_v37  ;;  %v2236_v14 = vcombine.low %v2228_v60, %v2235_v26  ;;  %v14023_v20 = vcombine.high %v14021_v4, %v14021_v4  ;;  %v14024_v19 = vcombine.high %v11436_v49, %v11436_v49  ;;  %2905 = vst [vmem:[#allocation2 + $0x90] sm:$0xff] %v11995_v31 }
 0x2b5   :  { %v2271_v8 = vcombine.low %v14022_v54, %v14021_v4  ;;  %v2261_v5 = vrot.slane %v2254_v9, %v10582_v38  ;;  %v2253_v45 = vcombine.low %v11987_v53, %v11998_v22  ;;  %v14026_v36 = vcombine.high %v14025_v18, %v14025_v18  ;;  %v14033_v54 = vld [vmem:[#allocation24_spill] sm:$0xff] }
 0x2b6   :  { %v2287_v40 = vcombine.low %v14023_v20, %v11436_v49  ;;  %v2301_v23 = vrot.slane %v14024_v19, %v10582_v38  ;;  %v2278_v37 = vrot.slane %v2270_v46, %v10582_v38  ;;  %v14028_v49 = vcombine.high %v14027_v62, %v14027_v62  ;;  %2906 = vst [vmem:[#allocation2 + $0x98] sm:$0x3f] %v2236_v14 }
 0x2b7   :  { %v2285_v21 = vrot.slane %v2271_v8, %v10582_v38  ;;  %v2303_v32 = vcombine.low %v14025_v18, %v14026_v36  ;;  %v2269_v17 = vcombine.low %v2261_v5, %v2268_v27  ;;  %v14030_v25 = vcombine.high %v14029_v30, %v14029_v30  ;;  %2907 = vst [vmem:[#allocation2 + $0xa0] sm:$0xff] %v2253_v45  ;;  %v14039_v36 = vld [vmem:[#allocation26_spill] sm:$0xff] }
 0x2b8   :  { %v2294_v26 = vrot.slane %v2287_v40, %v10582_v38  ;;  %v2304_v34 = vcombine.low %v14027_v62, %v14028_v49  ;;  %v2334_v7 = vrot.slane %v11464_v13, %v10582_v38  ;;  %v14031_v12 = vcombine.high %v11464_v13, %v11464_v13 }
 0x2b9   :  { %v2320_v56 = vcombine.low %v14029_v30, %v14030_v25  ;;  %v12035_v24 = vcombine.low %v2278_v37, %v2285_v21  ;;  %v12038_v35 = vrot.slane %v2303_v32, %v10582_v38  ;;  %v14032_v1 = vcombine.high %v11468_v47, %v11468_v47  ;;  %2908 = vst [vmem:[#allocation2 + $0xa8] sm:$0x3f] %v2269_v17  ;;  %v14041_v17 = vld [vmem:[#allocation27_spill] sm:$0xff] }
 0x2ba   :  { %v2336_v60 = vcombine.low %v14031_v12, %v11468_v47  ;;  %v2302_v44 = vcombine.low %v2294_v26, %v2301_v23  ;;  %v12047_v9 = vrot.slane %v2304_v34, %v10582_v38  ;;  %v14034_v13 = vcombine.high %v11475_v52, %v11475_v52 }
 0x2bb   :  { %v2327_v27 = vrot.slane %v2320_v56, %v10582_v38  ;;  %v2337_v46 = vcombine.low %v14032_v1, %v11475_v52  ;;  %v14035_v14 = vcombine.high %v14033_v54, %v14033_v54  ;;  %v14036_v20 = vcombine.high %v11488_v42, %v11488_v42  ;;  %2909 = vst [vmem:[#allocation2 + $0xb0] sm:$0xff] %v12035_v24  ;;  %v14037_v52 = vld [vmem:[#allocation25_spill] sm:$0xff] }
 0x2bc   :  { %v2344_v4 = vrot.slane %v2336_v60, %v10582_v38  ;;  %v2353_v8 = vcombine.low %v14034_v13, %v14033_v54  ;;  %v2319_v47 = vcombine.low %v12038_v35, %v12047_v9  ;;  %v14038_v45 = vcombine.high %v14037_v52, %v14037_v52  ;;  %2910 = vst [vmem:[#allocation2 + $0xb8] sm:$0x3f] %v2302_v44  ;;  %v14046_v54 = vld [vmem:[#allocation28_spill] sm:$0xff] }
 0x2bd   :  { %v2367_v5 = vrot.slane %v14035_v14, %v10582_v38  ;;  %v2369_v40 = vcombine.low %v11488_v42, %v14036_v20  ;;  %v2335_v19 = vcombine.low %v2327_v27, %v2334_v7  ;;  %v2351_v23 = vrot.slane %v2337_v46, %v10582_v38 }
 0x2be   :  { %v2370_v37 = vcombine.low %v14037_v52, %v14038_v45  ;;  %v2360_v21 = vrot.slane %v2353_v8, %v10582_v38  ;;  %v14040_v42 = vcombine.high %v14039_v36, %v14039_v36  ;;  %v2400_v26 = vrot.slane %v14041_v17, %v10582_v38  ;;  %2911 = vst [vmem:[#allocation2 + $0xc0] sm:$0xff] %v2319_v47  ;;  %v14052_v45 = vld [vmem:[#allocation31_spill] sm:$0xff] }
 0x2bf   :  { %v2377_v18 = vrot.slane %v2369_v40, %v10582_v38  ;;  %v2352_v62 = vcombine.low %v2344_v4, %v2351_v23  ;;  %v14042_v34 = vcombine.high %v14041_v17, %v14041_v17  ;;  %v14043_v25 = vcombine.high %v11516_v28, %v11516_v28  ;;  %2912 = vst [vmem:[#allocation2 + $0xc8] sm:$0x3f] %v2335_v19  ;;  %v14050_v40 = vld [vmem:[#allocation30_spill] sm:$0xff] }
 0x2c0   :  { %v2386_v32 = vcombine.low %v14039_v36, %v14040_v42  ;;  %v2384_v49 = vrot.slane %v2370_v37, %v10582_v38  ;;  %v2368_v7 = vcombine.low %v2360_v21, %v2367_v5  ;;  %v14044_v60 = vcombine.high %v11520_v41, %v11520_v41  ;;  %v14048_v5 = vld [vmem:[#allocation29_spill] sm:$0xff] }
 0x2c1   :  { %v2402_v30 = vcombine.low %v14042_v34, %v11516_v28  ;;  %v2403_v56 = vcombine.low %v14043_v25, %v11520_v41  ;;  %v14045_v27 = vcombine.high %v11527_v39, %v11527_v39  ;;  %v14047_v13 = vcombine.high %v14046_v54, %v14046_v54  ;;  %2913 = vst [vmem:[#allocation2 + $0xd0] sm:$0xff] %v2352_v62 }
 0x2c2   :  { %v2393_v12 = vrot.slane %v2386_v32, %v10582_v38  ;;  %v2419_v44 = vcombine.low %v14044_v60, %v11527_v39  ;;  %v2385_v46 = vcombine.low %v2377_v18, %v2384_v49  ;;  %v14049_v20 = vcombine.high %v14048_v5, %v14048_v5  ;;  %2914 = vst [vmem:[#allocation2 + $0xd8] sm:$0x3f] %v2368_v7 }
 0x2c3   :  { %v2433_v1 = vrot.slane %v14045_v27, %v10582_v38  ;;  %v2410_v4 = vrot.slane %v2402_v30, %v10582_v38  ;;  %v2417_v28 = vrot.slane %v2403_v56, %v10582_v38  ;;  %v2435_v8 = vcombine.low %v14046_v54, %v14047_v13 }
 0x2c4   :  { %v2401_v14 = vcombine.low %v2393_v12, %v2400_v26  ;;  %v2426_v41 = vrot.slane %v2419_v44, %v10582_v38  ;;  %v2436_v39 = vcombine.low %v14048_v5, %v14049_v20  ;;  %v14051_v47 = vcombine.high %v14050_v40, %v14050_v40  ;;  %2915 = vst [vmem:[#allocation2 + $0xe0] sm:$0xff] %v2385_v46  ;;  %v14064_v5 = vld [vmem:[#allocation36_spill] sm:$0xff] }
 0x2c5   :  { %v12116_v23 = vcombine.low %v2410_v4, %v2417_v28  ;;  %v12119_v52 = vrot.slane %v2435_v8, %v10582_v38  ;;  %v2466_v37 = vrot.slane %v14052_v45, %v10582_v38  ;;  %v14053_v21 = vcombine.high %v14052_v45, %v14052_v45  ;;  %v14061_v4 = vld [vmem:[#allocation34_spill] sm:$0xff]  ;;  %v14062_v8 = vld [vmem:[#allocation35_spill] sm:$0xff] }
 0x2c6   :  { %v2452_v19 = vcombine.low %v14050_v40, %v14051_v47  ;;  %v2434_v36 = vcombine.low %v2426_v41, %v2433_v1  ;;  %v12128_v42 = vrot.slane %v2436_v39, %v10582_v38  ;;  %v14054_v17 = vcombine.high %v11561_v58, %v11561_v58  ;;  %2916 = vst [vmem:[#allocation2 + $0xe8] sm:$0x3f] %v2401_v14 }
 0x2c7   :  { %v2468_v18 = vcombine.low %v14053_v21, %v11561_v58  ;;  %v14055_v49 = vcombine.high %v11568_v33, %v11568_v33  ;;  %v14056_v30 = vcombine.high %v11572_v2, %v11572_v2  ;;  %v14057_v56 = vcombine.high %v11584_v6, %v11584_v6  ;;  %2917 = vst [vmem:[#allocation2 + $0xf0] sm:$0xff] %v12116_v23 }
 0x2c8   :  { %v2459_v32 = vrot.slane %v2452_v19, %v10582_v38  ;;  %v2469_v26 = vcombine.low %v14054_v17, %v11568_v33  ;;  %v2451_v58 = vcombine.low %v12119_v52, %v12128_v42  ;;  %v14058_v33 = vld [vmem:[#allocation33_spill] sm:$0xff]  ;;  %2918 = vst [vmem:[#allocation2 + $0xf8] sm:$0x3f] %v2434_v36  ;;  %v2532_v28 = vrot.slane %v14061_v4, %v10582_v38 }
 0x2c9   :  { %v2476_v62 = vrot.slane %v2468_v18, %v10582_v38  ;;  %v2485_v34 = vcombine.low %v14055_v49, %v11572_v2  ;;  %v2499_v25 = vrot.slane %v14056_v30, %v10582_v38  ;;  %v2501_v7 = vcombine.low %v11584_v6, %v14057_v56 }
 0x2ca   :  { %v2467_v12 = vcombine.low %v2459_v32, %v2466_v37  ;;  %v2483_v60 = vrot.slane %v2469_v26, %v10582_v38  ;;  %v14059_v44 = vcombine.high %v14058_v33, %v14058_v33  ;;  %v14060_v6 = vcombine.high %v11597_v50, %v11597_v50  ;;  %2919 = vst [vmem:[#allocation2 + $0x100] sm:$0xff] %v2451_v58  ;;  %v14072_v58 = vld [vmem:[#allocation38_spill] sm:$0xff] }
 0x2cb   :  { %v2492_v2 = vrot.slane %v2485_v34, %v10582_v38  ;;  %v12158_v1 = vrot.slane %v2501_v7, %v10582_v38  ;;  %v14063_v14 = vcombine.high %v14061_v4, %v14061_v4  ;;  %v14065_v20 = vcombine.high %v14062_v8, %v14062_v8  ;;  %v14070_v34 = vld [vmem:[#allocation37_spill] sm:$0xff]  ;;  %v14076_v4 = vld [vmem:[#allocation40_spill] sm:$0xff] }
 0x2cc   :  { %v2502_v27 = vcombine.low %v14058_v33, %v14059_v44  ;;  %v2518_v46 = vcombine.low %v11597_v50, %v14060_v6  ;;  %v12166_v54 = vcombine.low %v2476_v62, %v2483_v60  ;;  %2920 = vst [vmem:[#allocation2 + $0x108] sm:$0x3f] %v2467_v12  ;;  %v14066_v47 = vcombine.high %v14064_v5, %v14064_v5 }
 0x2cd   :  { %v2534_v41 = vcombine.low %v14063_v14, %v14062_v8  ;;  %v2535_v39 = vcombine.low %v14065_v20, %v14064_v5  ;;  %v2500_v50 = vcombine.low %v2492_v2, %v2499_v25  ;;  %v14067_v45 = vcombine.high %v11626_v63, %v11626_v63 }
 0x2ce   :  { %v12169_v13 = vrot.slane %v2502_v27, %v10582_v38  ;;  %v2525_v40 = vrot.slane %v2518_v46, %v10582_v38  ;;  %v2551_v19 = vcombine.low %v14066_v47, %v11626_v63  ;;  %v14068_v32 = vcombine.high %v11630_v15, %v11630_v15  ;;  %2921 = vst [vmem:[#allocation2 + $0x110] sm:$0xff] %v12166_v54  ;;  %v14074_v27 = vld [vmem:[#allocation39_spill] sm:$0xff] }
 0x2cf   :  { %v2565_v37 = vrot.slane %v14067_v45, %v10582_v38  ;;  %v2542_v18 = vrot.slane %v2534_v41, %v10582_v38  ;;  %v2549_v36 = vrot.slane %v2535_v39, %v10582_v38  ;;  %v14069_v63 = vcombine.high %v11637_v59, %v11637_v59  ;;  %2922 = vst [vmem:[#allocation2 + $0x118] sm:$0x3f] %v2500_v50 }
 0x2d0   :  { %v2517_v21 = vcombine.low %v12158_v1, %v12169_v13  ;;  %v2567_v17 = vcombine.low %v11630_v15, %v14068_v32  ;;  %v2533_v26 = vcombine.low %v2525_v40, %v2532_v28  ;;  %v2558_v62 = vrot.slane %v2551_v19, %v10582_v38 }
 0x2d1   :  { %v2568_v49 = vcombine.low %v11637_v59, %v14069_v63  ;;  %v14071_v30 = vcombine.high %v14070_v34, %v14070_v34  ;;  %v12206_v56 = vcombine.low %v2542_v18, %v2549_v36  ;;  %v2598_v7 = vrot.slane %v11650_v55, %v10582_v38 }
 0x2d2   :  { %v12209_v15 = vrot.slane %v2567_v17, %v10582_v38  ;;  %v14073_v12 = vcombine.high %v11650_v55, %v11650_v55  ;;  %2923 = vst [vmem:[#allocation2 + $0x120] sm:$0xff] %v2517_v21  ;;  %v2566_v59 = vcombine.low %v2558_v62, %v2565_v37  ;;  %v14075_v2 = vcombine.high %v14072_v58, %v14072_v58  ;;  %v14082_v21 = vld [vmem:[#allocation41_spill] sm:$0xff] }
 0x2d3   :  { %v2584_v25 = vcombine.low %v14070_v34, %v14071_v30  ;;  %v12218_v33 = vrot.slane %v2568_v49, %v10582_v38  ;;  %2924 = vst [vmem:[#allocation2 + $0x128] sm:$0x3f] %v2533_v26  ;;  %v14077_v55 = vcombine.high %v14074_v27, %v14074_v27  ;;  %v14078_v8 = vcombine.high %v14076_v4, %v14076_v4  ;;  %v14084_v26 = vld [vmem:[#allocation42_spill] sm:$0xff]  ;;  %v14086_v34 = vld [vmem:[#allocation43_spill] sm:$0xff] }
 0x2d4   :  { %v2600_v60 = vcombine.low %v14073_v12, %v14072_v58  ;;  %v2601_v6 = vcombine.low %v14075_v2, %v14074_v27  ;;  %v14079_v41 = vcombine.high %v11678_v61, %v11678_v61  ;;  %2925 = vst [vmem:[#allocation2 + $0x130] sm:$0xff] %v12206_v56  ;;  %v14080_v40 = vcombine.high %v11682_v3, %v11682_v3 }
 0x2d5   :  { %v2591_v44 = vrot.slane %v2584_v25, %v10582_v38  ;;  %v2617_v28 = vcombine.low %v14077_v55, %v14076_v4  ;;  %v2631_v14 = vrot.slane %v14078_v8, %v10582_v38  ;;  %v2583_v20 = vcombine.low %v12209_v15, %v12218_v33  ;;  %2926 = vst [vmem:[#allocation2 + $0x138] sm:$0x3f] %v2566_v59  ;;  %v14089_v59 = vld [vmem:[#allocation44_spill] sm:$0xff] }
 0x2d6   :  { %v2608_v46 = vrot.slane %v2600_v60, %v10582_v38  ;;  %v2633_v5 = vcombine.low %v11678_v61, %v14079_v41  ;;  %v2615_v50 = vrot.slane %v2601_v6, %v10582_v38  ;;  %v2634_v47 = vcombine.low %v11682_v3, %v14080_v40  ;;  %v14095_v40 = vld [vmem:[#allocation46_spill] sm:$0xff] }
 0x2d7   :  { %v2599_v39 = vcombine.low %v2591_v44, %v2598_v7  ;;  %v2624_v19 = vrot.slane %v2617_v28, %v10582_v38  ;;  %v14081_v61 = vcombine.high %v11689_v16, %v11689_v16  ;;  %v2664_v18 = vrot.slane %v14082_v21, %v10582_v38  ;;  %2927 = vst [vmem:[#allocation2 + $0x140] sm:$0xff] %v2583_v20 }
 0x2d8   :  { %v12248_v45 = vrot.slane %v2633_v5, %v10582_v38  ;;  %v12256_v36 = vcombine.low %v2608_v46, %v2615_v50  ;;  %v12259_v32 = vrot.slane %v2634_v47, %v10582_v38  ;;  %v14083_v3 = vcombine.high %v14082_v21, %v14082_v21  ;;  %v14093_v5 = vld [vmem:[#allocation45_spill] sm:$0xff]  ;;  %v14097_v21 = vld [vmem:[#allocation47_spill] sm:$0xff] }
 0x2d9   :  { %v2650_v37 = vcombine.low %v11689_v16, %v14081_v61  ;;  %v14085_v62 = vcombine.high %v11702_v51, %v11702_v51  ;;  %2928 = vst [vmem:[#allocation2 + $0x148] sm:$0x3f] %v2599_v39  ;;  %v2632_v16 = vcombine.low %v2624_v19, %v2631_v14  ;;  %v14087_v30 = vcombine.high %v14084_v26, %v14084_v26  ;;  %v3169_v61 = vld [vmem:[#allocation2 + $0x1] sm:$0xff] }
 0x2da   :  { %v2666_v17 = vcombine.low %v14083_v3, %v11702_v51  ;;  %v14088_v7 = vcombine.high %v14086_v34, %v14086_v34  ;;  %v2649_v12 = vcombine.low %v12248_v45, %v12259_v32  ;;  %v14090_v44 = vcombine.high %v14089_v59, %v14089_v59  ;;  %2929 = vst [vmem:[#allocation2 + $0x150] sm:$0xff] %v12256_v36 }
 0x2db   :  { %v2667_v63 = vcombine.low %v14085_v62, %v14084_v26  ;;  %v2657_v49 = vrot.slane %v2650_v37, %v10582_v38  ;;  %v2683_v25 = vcombine.low %v14087_v30, %v14086_v34  ;;  %v14091_v46 = vcombine.high %v11730_v48, %v11730_v48  ;;  %2930 = vst [vmem:[#allocation2 + $0x158] sm:$0x3f] %v2632_v16  ;;  %v14100_v26 = vld [vmem:[#allocation48_spill] sm:$0xff] }
 0x2dc   :  { %v2697_v58 = vrot.slane %v14088_v7, %v10582_v38  ;;  %v2674_v51 = vrot.slane %v2666_v17, %v10582_v38  ;;  %v2699_v27 = vcombine.low %v14089_v59, %v14090_v44  ;;  %v14092_v55 = vcombine.high %v11734_v57, %v11734_v57  ;;  %2931 = vst [vmem:[#allocation2 + $0x160] sm:$0xff] %v2649_v12  ;;  %v12329_v16 = vld [vmem:[#allocation2 + $0x11] sm:$0xff] }
 0x2dd   :  { %v2681_v60 = vrot.slane %v2667_v63, %v10582_v38  ;;  %v2665_v2 = vcombine.low %v2657_v49, %v2664_v18  ;;  %v2690_v6 = vrot.slane %v2683_v25, %v10582_v38  ;;  %v2700_v4 = vcombine.low %v11730_v48, %v14091_v46  ;;  %v14102_v25 = vld [vmem:[#allocation49_spill] sm:$0xff] }
 0x2de   :  { %v2716_v28 = vcombine.low %v11734_v57, %v14092_v55  ;;  %v12299_v14 = vrot.slane %v2699_v27, %v10582_v38  ;;  %v2730_v41 = vrot.slane %v11741_v43, %v10582_v38  ;;  %v14094_v20 = vcombine.high %v11741_v43, %v11741_v43  ;;  %v3170_v27 = vld [vmem:[#allocation2 + $0x9] sm:$0xf] }
 0x2df   :  { %v12296_v8 = vcombine.low %v2674_v51, %v2681_v60  ;;  %v2698_v48 = vcombine.low %v2690_v6, %v2697_v58  ;;  %v12308_v50 = vrot.slane %v2700_v4, %v10582_v38  ;;  %v14096_v47 = vcombine.high %v14093_v5, %v14093_v5  ;;  %2932 = vst [vmem:[#allocation2 + $0x168] sm:$0x3f] %v2665_v2  ;;  %v14104_v60 = vld [vmem:[#allocation50_spill] sm:$0xff] }
 0x2e0   :  { %v2732_v39 = vcombine.low %v14094_v20, %v14093_v5  ;;  %v2723_v57 = vrot.slane %v2716_v28, %v10582_v38  ;;  %v14098_v43 = vcombine.high %v14095_v40, %v14095_v40  ;;  %v14099_v3 = vcombine.high %v14097_v21, %v14097_v21  ;;  %v12346_v6 = vld [vmem:[#allocation2 + $0x21] sm:$0xff] }
 0x2e1   :  { %v2733_v19 = vcombine.low %v14096_v47, %v14095_v40  ;;  %v14101_v62 = vcombine.high %v14100_v26, %v14100_v26  ;;  %2933 = vst [vmem:[#allocation2 + $0x170] sm:$0xff] %v12296_v8  ;;  %v2715_v49 = vcombine.low %v12299_v14, %v12308_v50  ;;  %v14103_v7 = vcombine.high %v14102_v25, %v14102_v25  ;;  %v12359_v40 = vld [vmem:[#allocation2 + $0x31] sm:$0xff] }
 0x2e2   :  { %v2740_v37 = vrot.slane %v2732_v39, %v10582_v38  ;;  %v2749_v18 = vcombine.low %v14098_v43, %v14097_v21  ;;  %v2763_v17 = vrot.slane %v14099_v3, %v10582_v38  ;;  %v2731_v34 = vcombine.low %v2723_v57, %v2730_v41  ;;  %2934 = vst [vmem:[#allocation2 + $0x178] sm:$0x3f] %v2698_v48  ;;  %v4346_v41 = vld [vmem:[#allocation2 + $0x68] sm:$0xf]  ;;  %v3172_v39 = vld [vmem:[#allocation2 + $0x19] sm:$0xf] }
 0x2e3   :  { %v2765_v63 = vcombine.low %v14100_v26, %v14101_v62  ;;  %v2747_v30 = vrot.slane %v2733_v19, %v10582_v38  ;;  %v2766_v58 = vcombine.low %v14102_v25, %v14103_v7  ;;  %v14105_v59 = vcombine.high %v14104_v60, %v14104_v60  ;;  %2935 = vst [vmem:[#allocation2 + $0x180] sm:$0xff] %v2715_v49  ;;  %v4348_v57 = vld [vmem:[#allocation2 + $0x78] sm:$0xf]  ;;  %v4350_v21 = vld [vmem:[#allocation2 + $0x88] sm:$0xf] }
 0x2e4   :  { %v2756_v12 = vrot.slane %v2749_v18, %v10582_v38  ;;  %v3265_v2 = vcombine.high %v3169_v61, %v3169_v61  ;;  %2936 = vst [vmem:[#allocation2 + $0x188] sm:$0x3f] %v2731_v34  ;;  %v12355_v55 = vcombine.high %v12329_v16, %v12329_v16  ;;  %v3290_v28 = vcombine.low %v3170_v27, %v12329_v16  ;;  %v3174_v43 = vld [vmem:[#allocation2 + $0x29] sm:$0xf]  ;;  %v4352_v18 = vld [vmem:[#allocation2 + $0x98] sm:$0xf] }
 0x2e5   :  { %v12340_v51 = vrot.slane %v2765_v63, %v10582_v38  ;;  %v2782_v44 = vcombine.low %v14104_v60, %v14105_v59  ;;  %v12348_v46 = vcombine.low %v2740_v37, %v2747_v30  ;;  %v12351_v4 = vrot.slane %v2766_v58, %v10582_v38  ;;  %v14106_v3 = vld [vmem:[#allocation6_spill] sm:$0xff]  ;;  %v3176_v25 = vld [vmem:[#allocation2 + $0x39] sm:$0xf]  ;;  %v12387_v59 = vld [vmem:[#allocation2 + $0x51] sm:$0xff] }
 0x2e6   :  { %v2764_v5 = vcombine.low %v2756_v12, %v2763_v17  ;;  %v3289_v48 = vcombine.low %v3169_v61, %v3265_v2  ;;  %v3291_v19 = vcombine.low %v12355_v55, %v3172_v39  ;;  %v12367_v37 = vcombine.high %v12346_v6, %v12346_v6  ;;  %v12373_v63 = vld [vmem:[#allocation2 + $0x41] sm:$0xff] }
 0x2e7   :  { %v2789_v20 = vrot.slane %v2782_v44, %v10582_v38  ;;  %v2781_v47 = vcombine.low %v12340_v51, %v12351_v4  ;;  %2937 = vst [vmem:[#allocation2 + $0x190] sm:$0xff] %v12348_v46  ;;  %v14107_v61 = vrot.slane %v14106_v3, %v10582_v38  ;;  %v9540_v62 = vcombine.low %v11910_v11, %v4346_v41  ;;  %v4354_v44 = vld [vmem:[#allocation2 + $0xa8] sm:$0xf]  ;;  %v12422_v3 = vld [vmem:[#allocation2 + $0x71] sm:$0xff] }
 0x2e8   :  { %2938 = vst [vmem:[#allocation2 + $0x198] sm:$0x3f] %v2764_v5  ;;  %v3361_v26 = vpack.c.bf16 %v3290_v28, %v3289_v48  ;;  %v3292_v49 = vcombine.low %v12346_v6, %v12367_v37  ;;  %v9543_v34 = vcombine.low %v4348_v57, %v11948_v0  ;;  %v12380_v30 = vcombine.high %v12359_v40, %v12359_v40  ;;  %v12393_v27 = vld [vmem:[#allocation2 + $0x61] sm:$0xff]  ;;  %v3180_v57 = vld [vmem:[#allocation2 + $0x59] sm:$0xf] }
 0x2e9   :  { %v2797_v17 = vcombine.low %v2789_v20, %v14107_v61  ;;  %2939 = vst [vmem:[#allocation2 + $0x1a0] sm:$0xff] %v2781_v47  ;;  %v9544_v38 = vcombine.low %v11957_v10, %v4350_v21  ;;  %v3293_v7 = vcombine.low %v3174_v43, %v12359_v40  ;;  %v9546_v11 = vcombine.low %v4352_v18, %v11987_v53  ;;  %v9229_v2 = vld [vmem:[%s13711_s5 + $0x108] sm:$0xff]   ;;  %v4356_v20 = vld [vmem:[#allocation2 + $0xb8] sm:$0xf]  ;;  %v9234_v18 = vld [vmem:[%s13711_s5 + $0x110] sm:$0xff]  }
 0x2ea   :  { %8437 = vmatprep.mubr.bf16.mxu0 %v3361_v26  ;;  %v4531_v58 = vpack.c.bf16 %v11945_v29, %v9540_v62  ;;  %v3362_v12 = vpack.c.bf16 %v3292_v49, %v3291_v19  ;;  %v3294_v60 = vcombine.low %v12380_v30, %v3176_v25  ;;  %v12391_v0 = vcombine.high %v12373_v63, %v12373_v63  ;;  %v4358_v39 = vld [vmem:[#allocation2 + $0xc8] sm:$0xf]  ;;  %v4360_v47 = vld [vmem:[#allocation2 + $0xf8] sm:$0xf] }
 0x2eb   :  { %2940 = vst [vmem:[#allocation2 + $0x1a8] sm:$0x3f] %v2797_v17  ;;  %v4532_v10 = vpack.c.bf16 %v9544_v38, %v9543_v34  ;;  %v4533_v53 = vpack.c.bf16 %v9546_v11, %v11995_v31  ;;  %v9550_v28 = vcombine.low %v11998_v22, %v4354_v44  ;;  %v12402_v41 = vcombine.high %v12387_v59, %v12387_v59  ;;  %v9256_v48 = vld [vmem:[%s13711_s5 + $0x8] sm:$0xff]   ;;  %v9526_v31 = vld [vmem:[%s13711_s5 + $0x100] sm:$0xff]   ;;  %v14108_v34 = vld [vmem:[#allocation32_spill] sm:$0xff] }
 0x2ec   :  { %8601 = vmatprep.mubr.bf16.mxu1 %v4531_v58  ;;  %8438 = vmatmul.mubr.bf16.vlgmr.msra.gmra.mrb[100].mxu0 %v3362_v12  ;;  %v3363_v29 = vpack.c.bf16 %v3294_v60, %v3293_v7  ;;  %v12406_v5 = vcombine.high %v12393_v27, %v12393_v27  ;;  %v3295_v22 = vcombine.low %v12373_v63, %v12391_v0  ;;  %v3178_v19 = vld [vmem:[#allocation2 + $0x49] sm:$0xf]  ;;  %v12428_v49 = vld [vmem:[#allocation2 + $0x81] sm:$0xff]  ;;  %v9259_v12 = vld [vmem:[%s13711_s5 + $0x10] sm:$0xff]  }
 0x2ed   :  { %8602 = vmatmul.mubr.bf16.vlgmr.msra.gmra.mrb[0].mxu1 %v4532_v10  ;;  %v3297_v21 = vcombine.low %v12402_v41, %v3180_v57  ;;  %v3296_v61 = vcombine.low %v3178_v19, %v12387_v59  ;;  %v4534_v17 = vpack.c.bf16 %v12035_v24, %v9550_v28  ;;  %v9553_v26 = vcombine.low %v4356_v20, %v12038_v35  ;;  %v4362_v25 = vld [vmem:[#allocation2 + $0x108] sm:$0xf]  ;;  %v9239_v35 = vld [vmem:[%s13711_s5 + $0x118] sm:$0xff]  }
 0x2ee   :  { %8630 = vmatpush3.bf16.msra.mxu1 %v9526_v31  ;;  %8441 = vmatprep.mubr.bf16.mxu0 %v3363_v29  ;;  %v3298_v43 = vcombine.low %v12393_v27, %v12406_v5  ;;  %v9554_v62 = vcombine.low %v12047_v9, %v4358_v39  ;;  %v9556_v38 = vcombine.low %v4360_v47, %v12119_v52  ;;  %v3182_v60 = vld [vmem:[#allocation2 + $0x69] sm:$0xf]  ;;  %v3184_v44 = vld [vmem:[#allocation2 + $0x79] sm:$0xf]  ;;  %v12451_v28 = vld [vmem:[#allocation2 + $0xa1] sm:$0xff] }
 0x2ef   :  { %8605 = vmatprep.mubr.bf16.mxu1 %v4533_v53  ;;  %8631 = vmatprep.subr.bf16.mxu1 %v9229_v2  ;;  %v3364_v7 = vpack.c.bf16 %v3296_v61, %v3295_v22  ;;  %v12434_v11 = vcombine.high %v12422_v3, %v12422_v3  ;;  %v12438_v24 = vcombine.high %v12428_v49, %v12428_v49  ;;  %v12449_v53 = vld [vmem:[#allocation2 + $0x91] sm:$0xff]  ;;  %v9244_v39 = vld [vmem:[%s13711_s5 + $0x120] sm:$0xff]   ;;  %v3186_v31 = vld [vmem:[#allocation2 + $0x89] sm:$0xf] }
 0x2f0   :  { %8474 = vmatpush3.bf16.msra.mxu0 %v14108_v34  ;;  %v3365_v58 = vpack.c.bf16 %v3298_v43, %v3297_v21  ;;  %v4535_v9 = vpack.c.bf16 %v9554_v62, %v9553_v26  ;;  %v9560_v52 = vcombine.low %v12128_v42, %v4362_v25  ;;  %v4536_v10 = vpack.c.bf16 %v9556_v38, %v12116_v23  ;;  %v12460_v22 = vld [vmem:[#allocation2 + $0xb1] sm:$0xff]  ;;  %v4370_v47 = vld [vmem:[#allocation2 + $0x148] sm:$0xf]  ;;  %v3188_v62 = vld [vmem:[#allocation2 + $0x99] sm:$0xf] }
 0x2f1   :  { %8475 = vmatprep.subr.bf16.mxu0 %v9256_v48  ;;  %v3300_v29 = vcombine.low %v12434_v11, %v3184_v44  ;;  %v3301_v42 = vcombine.low %v12428_v49, %v12438_v24  ;;  %v3299_v23 = vcombine.low %v3182_v60, %v12422_v3  ;;  %v3302_v19 = vcombine.low %v3186_v31, %v12449_v53  ;;  %v4364_v61 = vld [vmem:[#allocation2 + $0x118] sm:$0xf]  ;;  %v9249_v26 = vld [vmem:[%s13711_s5 + $0x128] sm:$0xff]   ;;  %v9255_v60 = vld [vmem:[%s13711_s5 + $0x130] sm:$0xff]  }
 0x2f2   :  { %8632 = vmatpush3.bf16.msra.mxu1 %v9229_v2  ;;  %v4368_v2 = vld [vmem:[#allocation2 + $0x138] sm:$0xf]  ;;  %v4537_v20 = vpack.c.bf16 %v12166_v54, %v9560_v52  ;;  %v12466_v21 = vcombine.high %v12449_v53, %v12449_v53  ;;  %v12470_v54 = vcombine.high %v12451_v28, %v12451_v28 }
 0x2f3   :  { %8633 = vmatprep.subr.bf16.mxu1 %v9234_v18  ;;  %v9563_v57 = vcombine.low %v4368_v2, %v12209_v15  ;;  %v3366_v43 = vpack.c.bf16 %v3300_v29, %v3299_v23  ;;  %v12474_v15 = vcombine.high %v12460_v22, %v12460_v22  ;;  %v4376_v38 = vld [vmem:[#allocation2 + $0x178] sm:$0xf] }
 0x2f4   :  { %8442 = vmatmul.mubr.bf16.gmra.mrb[104].mxu0 %v3364_v7  ;;  %v3303_v25 = vcombine.low %v12466_v21, %v3188_v62  ;;  %v3304_v7 = vcombine.low %v12451_v28, %v12470_v54  ;;  %v3192_v52 = vld [vmem:[#allocation2 + $0xb9] sm:$0xf]  ;;  %v12494_v2 = vld [vmem:[#allocation2 + $0xf1] sm:$0xff]  ;;  %v9573_v29 = vcombine.low %v4376_v38, %v12299_v14  ;;  %v12527_v38 = vld [vmem:[%s13711_s5 + $0x140] sm:$0xff]  }
 0x2f5   :  { %8606 = vmatmul.mubr.bf16.gmra.mrb[4].mxu1 %v4534_v17  ;;  %8445 = vmatprep.mubr.bf16.mxu0 %v3365_v58  ;;  %v4366_v17 = vld [vmem:[#allocation2 + $0x128] sm:$0xf]  ;;  %v4539_v34 = vpack.c.bf16 %v9563_v57, %v12206_v56  ;;  %v9570_v58 = vcombine.low %v4364_v61, %v12158_v1  ;;  %v3306_v44 = vcombine.low %v12474_v15, %v3192_v52  ;;  %v12522_v62 = vld [vmem:[#allocation2 + $0x111] sm:$0xff] }
 0x2f6   :  { %8609 = vmatprep.mubr.bf16.mxu1 %v4535_v9  ;;  %8634 = vmatpush3.bf16.msra.mxu1 %v9234_v18  ;;  %v3367_v18 = vpack.c.bf16 %v3302_v19, %v3301_v42  ;;  %v3190_v9 = vld [vmem:[#allocation2 + $0xa9] sm:$0xf]  ;;  %v12497_v42 = vld [vmem:[#allocation2 + $0x101] sm:$0xff]  ;;  %v12502_v23 = vcombine.high %v12494_v2, %v12494_v2 }
 0x2f7   :  { %8635 = vmatprep.subr.bf16.mxu1 %v9239_v35  ;;  %8476 = vmatpush3.bf16.msra.mxu0 %v9256_v48  ;;  %v9567_v48 = vcombine.low %v12218_v33, %v4370_v47  ;;  %v9264_v33 = vld [vmem:[%s13711_s5 + $0x18] sm:$0xff]   ;;  %v4378_v1 = vld [vmem:[#allocation2 + $0x188] sm:$0xf]  ;;  %v12507_v14 = vcombine.high %v12497_v42, %v12497_v42  ;;  %v9268_v19 = vld [vmem:[%s13711_s5 + $0x20] sm:$0xff]  }
 0x2f8   :  { %8477 = vmatprep.subr.bf16.mxu0 %v9259_v12  ;;  %v9577_v31 = vcombine.low %v12308_v50, %v4378_v1  ;;  %v9260_v47 = vld [vmem:[%s13711_s5 + $0x138] sm:$0xff]   ;;  %v3194_v50 = vld [vmem:[#allocation2 + $0xe9] sm:$0xf] }
 0x2f9   :  { %v4540_v56 = vpack.c.bf16 %v12256_v36, %v9567_v48  ;;  %v3198_v1 = vld [vmem:[#allocation2 + $0x109] sm:$0xf] }
 0x2fa   :  { %8636 = vmatpush3.bf16.msra.mxu1 %v9239_v35  ;;  %v9571_v35 = vcombine.low %v12169_v13, %v4366_v17  ;;  %v3368_v13 = vpack.c.bf16 %v3304_v7, %v3303_v25  ;;  %v4543_v61 = vpack.c.bf16 %v12348_v46, %v9577_v31  ;;  %v3196_v17 = vld [vmem:[#allocation2 + $0xf9] sm:$0xf]  ;;  %v3308_v46 = vcombine.low %v3194_v50, %v12494_v2  ;;  %v12532_v7 = vld [vmem:[#allocation2 + $0x121] sm:$0xff] }
 0x2fb   :  { %8637 = vmatprep.subr.bf16.mxu1 %v9244_v39  ;;  %8478 = vmatpush3.bf16.msra.mxu0 %v9259_v12  ;;  %v12510_v12 = vpack.c.bf16 %v9573_v29, %v12296_v8  ;;  %v3309_v48 = vcombine.low %v12502_v23, %v3196_v17  ;;  %v12543_v52 = vcombine.high %v12532_v7, %v12532_v7  ;;  %v12550_v29 = vld [vmem:[#allocation2 + $0x131] sm:$0xff]  ;;  %v12578_v17 = vld [vmem:[%s13711_s5 + $0x80] sm:$0xff]  }
 0x2fc   :  { %8446 = vmatmul.mubr.bf16.gmra.mrb[108].mxu0 %v3366_v43  ;;  %8479 = vmatprep.subr.bf16.mxu0 %v9264_v33  ;;  %v4538_v36 = vpack.c.bf16 %v9571_v35, %v9570_v58  ;;  %v4372_v43 = vld [vmem:[#allocation2 + $0x158] sm:$0xf]  ;;  %v9272_v58 = vld [vmem:[%s13711_s5 + $0x28] sm:$0xff]  }
 0x2fd   :  { %8610 = vmatmul.mubr.bf16.gmra.mrb[8].mxu1 %v4536_v10  ;;  %8449 = vmatprep.mubr.bf16.mxu0 %v3367_v18  ;;  %v3193_v10 = vld [vmem:[#allocation2 + $0xe1] sm:$0xff] }
 0x2fe   :  { %8613 = vmatprep.mubr.bf16.mxu1 %v4537_v20  ;;  %8638 = vmatpush3.bf16.msra.mxu1 %v9244_v39  ;;  %v3305_v20 = vcombine.low %v3190_v9, %v12460_v22  ;;  %v3277_v39 = vcombine.high %v3193_v10, %v3193_v10  ;;  %v4374_v18 = vld [vmem:[#allocation2 + $0x168] sm:$0xf] }
 0x2ff   :  { %8639 = vmatprep.subr.bf16.mxu1 %v9249_v26  ;;  %8480 = vmatpush3.bf16.msra.mxu0 %v9264_v33  ;;  %v9581_v25 = vcombine.low %v12259_v32, %v4374_v18  ;;  %v12539_v33 = vcombine.high %v12522_v62, %v12522_v62  ;;  %v9275_v32 = vld [vmem:[%s13711_s5 + $0x30] sm:$0xff]   ;;  %v4380_v18 = vld [vmem:[#allocation2 + $0x198] sm:$0xf] }
 0x300   :  { %v3369_v57 = vpack.c.bf16 %v3306_v44, %v3305_v20  ;;  %v3307_v8 = vcombine.low %v3193_v10, %v3277_v39  ;;  %8481 = vmatprep.subr.bf16.mxu0 %v9268_v19  ;;  %v3202_v10 = vld [vmem:[#allocation2 + $0x129] sm:$0xf]  ;;  %v12554_v20 = vld [vmem:[#allocation2 + $0x141] sm:$0xff]  ;;  %v12557_v39 = vld [vmem:[#allocation2 + $0x151] sm:$0xff] }
 0x301   :  { %v3314_v31 = vcombine.low %v3202_v10, %v12550_v29 }
 0x302   :  { %8640 = vmatpush3.bf16.msra.mxu1 %v9249_v26  ;;  %v3310_v26 = vcombine.low %v12497_v42, %v12507_v14  ;;  %v3370_v35 = vpack.c.bf16 %v3308_v46, %v3307_v8  ;;  %v4382_v8 = vld [vmem:[#allocation2 + $0x1a8] sm:$0xf] }
 0x303   :  { %8641 = vmatprep.subr.bf16.mxu1 %v9255_v60  ;;  %8482 = vmatpush3.bf16.msra.mxu0 %v9268_v19  ;;  %v12569_v19 = vcombine.high %v12554_v20, %v12554_v20 }
 0x304   :  { %8450 = vmatmul.mubr.bf16.gmra.mrb[112].mxu0 %v3368_v13  ;;  %v3371_v9 = vpack.c.bf16 %v3310_v26, %v3309_v48  ;;  %8483 = vmatprep.subr.bf16.mxu0 %v9272_v58  ;;  %v3313_v13 = vcombine.low %v12532_v7, %v12543_v52  ;;  %v3204_v48 = vld [vmem:[#allocation2 + $0x139] sm:$0xf] }
 0x305   :  { %8614 = vmatmul.mubr.bf16.gmra.mrb[12].mxu1 %v4538_v36  ;;  %8453 = vmatprep.mubr.bf16.mxu0 %v3369_v57  ;;  %v3311_v36 = vcombine.low %v3198_v1, %v12522_v62  ;;  %v3316_v46 = vcombine.low %v12554_v20, %v12569_v19 }
 0x306   :  { %8617 = vmatprep.mubr.bf16.mxu1 %v4539_v34  ;;  %8642 = vmatpush3.bf16.msra.mxu1 %v9255_v60  ;;  %v9580_v34 = vcombine.low %v4372_v43, %v12248_v45  ;;  %v3200_v60 = vld [vmem:[#allocation2 + $0x119] sm:$0xf]  ;;  %v3373_v50 = vpack.c.bf16 %v3314_v31, %v3313_v13  ;;  %v12573_v43 = vcombine.high %v12557_v39, %v12557_v39 }
 0x307   :  { %8643 = vmatprep.subr.bf16.mxu1 %v9260_v47  ;;  %v3312_v44 = vcombine.low %v12539_v33, %v3200_v60  ;;  %8484 = vmatpush3.bf16.msra.mxu0 %v9272_v58  ;;  %v9584_v58 = vcombine.low %v12351_v4, %v4382_v8  ;;  %v12593_v60 = vld [vmem:[#allocation2 + $0x181] sm:$0xff] }
 0x308   :  { %v4541_v45 = vpack.c.bf16 %v9581_v25, %v9580_v34  ;;  %8485 = vmatprep.subr.bf16.mxu0 %v9275_v32  ;;  %v3208_v34 = vld [vmem:[#allocation2 + $0x159] sm:$0xf]  ;;  %v9583_v25 = vcombine.low %v4380_v18, %v12340_v51  ;;  %v4946_v18 = vcombine.low %v12359_v40, %v12380_v30 }
 0x309   :  { %v3372_v57 = vpack.c.bf16 %v3312_v44, %v3311_v36 }
 0x30a   :  { %8644 = vmatpush3.bf16.msra.mxu1 %v9260_v47  ;;  %v12565_v47 = vcombine.high %v12550_v29, %v12550_v29  ;;  %v4544_v1 = vpack.c.bf16 %v9584_v58, %v9583_v25  ;;  %v4828_v58 = vld [vmem:[#allocation2 + $0x39] sm:$0xf] }
 0x30b   :  { %8681 = vmatprep.subr.bf16.mxu1 %v12527_v38  ;;  %8486 = vmatpush3.bf16.msra.mxu0 %v9275_v32  ;;  %v12591_v32 = vld [vmem:[#allocation2 + $0x171] sm:$0xff] }
 0x30c   :  { %8454 = vmatmul.mubr.bf16.gmra.mrb[116].mxu0 %v3370_v35  ;;  %v3315_v26 = vcombine.low %v12565_v47, %v3204_v48  ;;  %v3318_v35 = vcombine.low %v12573_v43, %v3208_v34 }
 0x30d   :  { %8618 = vmatmul.mubr.bf16.gmra.mrb[16].mxu1 %v4540_v56  ;;  %8457 = vmatprep.mubr.bf16.mxu0 %v3371_v9  ;;  %v9278_v56 = vld [vmem:[%s13711_s5 + $0x38] sm:$0xff]  }
 0x30e   :  { %8621 = vmatprep.mubr.bf16.mxu1 %v4541_v45  ;;  %8487 = vmatprep.subr.bf16.mxu0 %v9278_v56  ;;  %v4824_v9 = vld [vmem:[#allocation2 + $0x19] sm:$0xf]  ;;  %v12587_v45 = vld [vmem:[#allocation2 + $0x161] sm:$0xff]  ;;  %v3374_v44 = vpack.c.bf16 %v3316_v46, %v3315_v26  ;;  %v4830_v26 = vld [vmem:[#allocation2 + $0x49] sm:$0xf] }
 0x30f   :  { %8488 = vmatpush3.bf16.msra.mxu0 %v9278_v56  ;;  %v4944_v4 = vcombine.low %v4824_v9, %v12346_v6  ;;  %v12600_v10 = vcombine.high %v12587_v45, %v12587_v45  ;;  %v3210_v56 = vld [vmem:[#allocation2 + $0x169] sm:$0xf]  ;;  %v12618_v46 = vld [vmem:[#allocation2 + $0x191] sm:$0xff]  ;;  %v4948_v25 = vcombine.low %v12391_v0, %v4830_v26  ;;  %v4947_v9 = vcombine.low %v4828_v58, %v12373_v63  ;;  %v3216_v0 = vld [vmem:[#allocation2 + $0x199] sm:$0xf] }
 0x310   :  { %8525 = vmatprep.subr.bf16.mxu0 %v12578_v17  ;;  %v4826_v6 = vld [vmem:[#allocation2 + $0x29] sm:$0xf]  ;;  %v3320_v34 = vcombine.low %v3210_v56, %v12591_v32  ;;  %v4949_v56 = vcombine.low %v12387_v59, %v12402_v41 }
 0x311   :  { %v3319_v31 = vcombine.low %v12587_v45, %v12600_v10 }
 0x314   :  { %8458 = vmatmul.mubr.bf16.gmra.mrb[120].mxu0 %v3372_v57  ;;  %v3212_v57 = vld [vmem:[#allocation2 + $0x179] sm:$0xf] }
 0x315   :  { %8622 = vmatmul.mubr.bf16.gmra.mrb[20].mxu1 %v12510_v12  ;;  %8461 = vmatprep.mubr.bf16.mxu0 %v3373_v50  ;;  %v3206_v12 = vld [vmem:[#allocation2 + $0x149] sm:$0xf]  ;;  %v4945_v50 = vcombine.low %v12367_v37, %v4826_v6  ;;  %v12625_v37 = vcombine.high %v12618_v46, %v12618_v46  ;;  %v9528_v6 = vld [vmem:[#allocation2 + $0x10] sm:$0xff] }
 0x316   :  { %8625 = vmatprep.mubr.bf16.mxu1 %v4543_v61  ;;  %v4943_v61 = vcombine.low %v12329_v16, %v12355_v55  ;;  %v3317_v51 = vcombine.low %v3206_v12, %v12557_v39  ;;  %v12604_v16 = vcombine.high %v12591_v32, %v12591_v32  ;;  %v12608_v55 = vcombine.high %v12593_v60, %v12593_v60  ;;  %v9277_v12 = vld [vmem:[%s13711_s5 + $0x148] sm:$0xff]  }
 0x317   :  { %v5016_v40 = vpack.c.bf16 %v4946_v18, %v4945_v50  ;;  %v3324_v63 = vcombine.low %v12625_v37, %v3216_v0  ;;  %v2947_v50 = vld [vmem:[#allocation2 + $0x20] sm:$0xff]  ;;  %v4840_v0 = vld [vmem:[#allocation2 + $0x99] sm:$0xf] }
 0x318   :  { %v3375_v13 = vpack.c.bf16 %v3318_v35, %v3317_v51  ;;  %v5015_v36 = vpack.c.bf16 %v4944_v4, %v4943_v61  ;;  %v3321_v8 = vcombine.low %v12604_v16, %v3212_v57  ;;  %v3322_v48 = vcombine.low %v12593_v60, %v12608_v55  ;;  %v2944_v51 = vld [vmem:[#allocation2 + $0x8] sm:$0xf] }
 0x319   :  { %v3376_v35 = vpack.c.bf16 %v3320_v34, %v3319_v31  ;;  %v5017_v61 = vpack.c.bf16 %v4948_v25, %v4947_v9  ;;  %v3064_v31 = vcombine.low %v2944_v51, %v9528_v6  ;;  %v4834_v57 = vld [vmem:[#allocation2 + $0x69] sm:$0xf]  ;;  %v3041_v58 = vcombine.high %v2947_v50, %v2947_v50  ;;  %v9291_v9 = vld [vmem:[%s13711_s5 + $0x158] sm:$0xff]  }
 0x31a   :  { %v3377_v30 = vpack.c.bf16 %v3322_v48, %v3321_v8  ;;  %v4952_v8 = vcombine.low %v12422_v3, %v12434_v11  ;;  %v2949_v48 = vld [vmem:[#allocation2 + $0x30] sm:$0xff]  ;;  %v3040_v3 = vcombine.high %v9528_v6, %v9528_v6  ;;  %v4838_v11 = vld [vmem:[#allocation2 + $0x89] sm:$0xf]  ;;  %v2955_v6 = vld [vmem:[#allocation2 + $0x60] sm:$0xff] }
 0x31c   :  { %8462 = vmatmul.mubr.bf16.gmra.mrb[124].mxu0 %v3374_v44  ;;  %v9527_v44 = vld [vmem:[#allocation2] sm:$0xff] }
 0x31d   :  { %8626 = vmatmul.mubr.bf16.gmra.mrb[24].mxu1 %v4544_v1  ;;  %8465 = vmatprep.mubr.bf16.mxu0 %v3375_v13  ;;  %v3039_v4 = vcombine.high %v9527_v44, %v9527_v44  ;;  %v4832_v1 = vld [vmem:[#allocation2 + $0x59] sm:$0xf]  ;;  %v9284_v13 = vld [vmem:[%s13711_s5 + $0x150] sm:$0xff]  }
 0x31e   :  { %8645 = vmatprep.mubr.bf16.mxu1 %v5015_v36  ;;  %v3214_v36 = vld [vmem:[#allocation2 + $0x189] sm:$0xf]  ;;  %v4950_v26 = vcombine.low %v4832_v1, %v12393_v27  ;;  %v3066_v27 = vcombine.low %v2947_v50, %v3041_v58  ;;  %v4836_v1 = vld [vmem:[#allocation2 + $0x79] sm:$0xf]  ;;  %v4956_v50 = vcombine.low %v4840_v0, %v12451_v28 }
 0x31f   :  { %v3323_v18 = vcombine.low %v3214_v36, %v12618_v46  ;;  %v3063_v34 = vcombine.low %v9527_v44, %v3039_v4  ;;  %v2951_v44 = vld [vmem:[#allocation2 + $0x40] sm:$0xff]  ;;  %v4955_v36 = vcombine.low %v12449_v53, %v12466_v21  ;;  %v9304_v53 = vld [vmem:[%s13711_s5 + $0x168] sm:$0xff]  }
 0x320   :  { %v5018_v59 = vpack.c.bf16 %v4950_v26, %v4949_v56  ;;  %v9297_v4 = vld [vmem:[%s13711_s5 + $0x160] sm:$0xff]   ;;  %v2953_v56 = vld [vmem:[#allocation2 + $0x50] sm:$0xff]  ;;  %v4842_v28 = vld [vmem:[#allocation2 + $0xa9] sm:$0xf] }
 0x321   :  { %v3378_v25 = vpack.c.bf16 %v3324_v63, %v3323_v18  ;;  %v3135_v41 = vpack.c.bf16 %v3064_v31, %v3063_v34  ;;  %v4953_v31 = vcombine.low %v4836_v1, %v12428_v49  ;;  %v3043_v18 = vcombine.high %v2951_v44, %v2951_v44  ;;  %v9317_v49 = vld [vmem:[%s13711_s5 + $0x88] sm:$0xff]   ;;  %v9329_v1 = vld [vmem:[%s13711_s5 + $0x98] sm:$0xff]  }
 0x322   :  { %v3044_v26 = vcombine.high %v2953_v56, %v2953_v56  ;;  %v3045_v34 = vcombine.high %v2955_v6, %v2955_v6  ;;  %v5021_v21 = vpack.c.bf16 %v4956_v50, %v4955_v36  ;;  %v2956_v36 = vld [vmem:[#allocation2 + $0x68] sm:$0xf] }
 0x323   :  { %v3069_v58 = vcombine.low %v2951_v44, %v3043_v18  ;;  %v4850_v50 = vld [vmem:[#allocation2 + $0x109] sm:$0xf]  ;;  %v2963_v18 = vld [vmem:[#allocation2 + $0xa0] sm:$0xff] }
 0x324   :  { %8466 = vmatmul.mubr.bf16.gmra.mrb[128].mxu0 %v3376_v35  ;;  %v3042_v35 = vcombine.high %v2949_v48, %v2949_v48 }
 0x325   :  { %8646 = vmatmul.mubr.bf16.vlgmr.msra.gmra.mrb[28].mxu1 %v5016_v40  ;;  %8469 = vmatprep.mubr.bf16.mxu0 %v3377_v30  ;;  %v2946_v40 = vld [vmem:[#allocation2 + $0x18] sm:$0xf]  ;;  %v2948_v30 = vld [vmem:[#allocation2 + $0x28] sm:$0xf] }
 0x326   :  { %8682 = vmatpush3.bf16.msra.mxu1 %v12527_v38  ;;  %8649 = vmatprep.mubr.bf16.mxu1 %v5017_v61  ;;  %v4951_v38 = vcombine.low %v12406_v5, %v4834_v57  ;;  %v4954_v61 = vcombine.low %v12438_v24, %v4838_v11  ;;  %v3065_v63 = vcombine.low %v3040_v3, %v2946_v40  ;;  %v4845_v57 = vld [vmem:[#allocation2 + $0xc1] sm:$0xff]  ;;  %v4846_v40 = vld [vmem:[#allocation2 + $0xc9] sm:$0xf]  ;;  %v2957_v3 = vld [vmem:[#allocation2 + $0x70] sm:$0xff] }
 0x327   :  { %8683 = vmatprep.subr.bf16.mxu1 %v9277_v12 }
 0x328   :  { %v5019_v5 = vpack.c.bf16 %v4952_v8, %v4951_v38  ;;  %v3136_v24 = vpack.c.bf16 %v3066_v27, %v3065_v63  ;;  %v5020_v38 = vpack.c.bf16 %v4954_v61, %v4953_v31  ;;  %v9310_v27 = vld [vmem:[%s13711_s5 + $0x170] sm:$0xff]   ;;  %v2960_v31 = vld [vmem:[#allocation2 + $0x88] sm:$0xf] }
 0x32a   :  { %8684 = vmatpush3.bf16.msra.mxu1 %v9277_v12  ;;  %v2950_v12 = vld [vmem:[#allocation2 + $0x38] sm:$0xf] }
 0x32b   :  { %8685 = vmatprep.subr.bf16.mxu1 %v9284_v13  ;;  %v3068_v51 = vcombine.low %v3042_v35, %v2950_v12  ;;  %v4958_v35 = vcombine.low %v12460_v22, %v12474_v15  ;;  %v2959_v12 = vld [vmem:[#allocation2 + $0x80] sm:$0xff]  ;;  %v4844_v22 = vld [vmem:[#allocation2 + $0xb9] sm:$0xf] }
 0x32c   :  { %8470 = vmatmul.mubr.bf16.gmra.mrb[132].mxu0 %v3378_v25  ;;  %v4930_v25 = vcombine.high %v4845_v57, %v4845_v57  ;;  %v4959_v61 = vcombine.low %v4844_v22, %v4845_v57  ;;  %v4961_v57 = vcombine.low %v12494_v2, %v12502_v23  ;;  %v9333_v2 = vld [vmem:[%s13711_s5 + $0xa0] sm:$0xff]  }
 0x32d   :  { %8650 = vmatmul.mubr.bf16.gmra.mrb[32].mxu1 %v5018_v59  ;;  %8489 = vmatprep.mubr.bf16.mxu0 %v3135_v41  ;;  %v4957_v59 = vcombine.low %v12470_v54, %v4842_v28  ;;  %v2954_v41 = vld [vmem:[#allocation2 + $0x58] sm:$0xf]  ;;  %v9321_v54 = vld [vmem:[%s13711_s5 + $0x90] sm:$0xff]   ;;  %v2971_v22 = vld [vmem:[#allocation2 + $0x100] sm:$0xff] }
 0x32e   :  { %8653 = vmatprep.mubr.bf16.mxu1 %v5019_v5  ;;  %8686 = vmatpush3.bf16.msra.mxu1 %v9284_v13  ;;  %v3067_v13 = vcombine.low %v2948_v30, %v2949_v48  ;;  %v2952_v48 = vld [vmem:[#allocation2 + $0x48] sm:$0xf]  ;;  %v3072_v5 = vcombine.low %v2955_v6, %v3045_v34  ;;  %v4960_v30 = vcombine.low %v4930_v25, %v4846_v40 }
 0x32f   :  { %8687 = vmatprep.subr.bf16.mxu1 %v9291_v9  ;;  %v3070_v11 = vcombine.low %v2952_v48, %v2953_v56  ;;  %v5022_v0 = vpack.c.bf16 %v4958_v35, %v4957_v59  ;;  %v2958_v56 = vld [vmem:[#allocation2 + $0x78] sm:$0xf]  ;;  %v4963_v34 = vcombine.low %v12507_v14, %v4850_v50  ;;  %v3049_v48 = vcombine.high %v2963_v18, %v2963_v18  ;;  %v4854_v40 = vld [vmem:[#allocation2 + $0x129] sm:$0xf] }
 0x330   :  { %v3137_v8 = vpack.c.bf16 %v3068_v51, %v3067_v13  ;;  %v3046_v51 = vcombine.high %v2957_v3, %v2957_v3  ;;  %v5023_v63 = vpack.c.bf16 %v4960_v30, %v4959_v61  ;;  %v2961_v13 = vld [vmem:[#allocation2 + $0x90] sm:$0xff]  ;;  %v2967_v30 = vld [vmem:[#allocation2 + $0xe0] sm:$0xff]  ;;  %v4860_v50 = vld [vmem:[#allocation2 + $0x159] sm:$0xf] }
 0x331   :  { %v3138_v15 = vpack.c.bf16 %v3070_v11, %v3069_v58  ;;  %v3076_v25 = vcombine.low %v2960_v31, %v2961_v13  ;;  %v3048_v28 = vcombine.high %v2961_v13, %v2961_v13  ;;  %v4970_v13 = vcombine.low %v12557_v39, %v12573_v43  ;;  %v12712_v43 = vld [vmem:[%s13711_s5 + $0xc0] sm:$0xff]  }
 0x332   :  { %8688 = vmatpush3.bf16.msra.mxu1 %v9291_v9  ;;  %v3071_v9 = vcombine.low %v3044_v26, %v2954_v41  ;;  %v3074_v6 = vcombine.low %v3046_v51, %v2958_v56  ;;  %v4848_v26 = vld [vmem:[#allocation2 + $0xf9] sm:$0xf] }
 0x333   :  { %8689 = vmatprep.subr.bf16.mxu1 %v9297_v4  ;;  %v4962_v23 = vcombine.low %v4848_v26, %v12497_v42  ;;  %v2962_v42 = vld [vmem:[#allocation2 + $0x98] sm:$0xf] }
 0x334   :  { %8490 = vmatmul.mubr.bf16.vlgmr.msra.gmra.mrb[100].mxu0 %v3136_v24  ;;  %v3139_v44 = vpack.c.bf16 %v3072_v5, %v3071_v9  ;;  %v3077_v35 = vcombine.low %v3048_v28, %v2962_v42  ;;  %v3078_v9 = vcombine.low %v2963_v18, %v3049_v48  ;;  %v4852_v5 = vld [vmem:[#allocation2 + $0x119] sm:$0xf]  ;;  %v4862_v18 = vld [vmem:[#allocation2 + $0x169] sm:$0xf]  ;;  %v4869_v42 = vld [vmem:[#allocation2 + $0x1a1] sm:$0xff] }
 0x335   :  { %8654 = vmatmul.mubr.bf16.gmra.mrb[0].mxu1 %v5020_v38  ;;  %8493 = vmatprep.mubr.bf16.mxu0 %v3137_v8  ;;  %v12680_v38 = vld [vmem:[%s13711_s5 + $0x180] sm:$0xff]   ;;  %v3073_v8 = vcombine.low %v2956_v36, %v2957_v3  ;;  %v5024_v58 = vpack.c.bf16 %v4962_v23, %v4961_v57  ;;  %v2966_v3 = vld [vmem:[#allocation2 + $0xb8] sm:$0xf]  ;;  %v4965_v61 = vcombine.low %v4852_v5, %v12532_v7  ;;  %v2968_v7 = vld [vmem:[#allocation2 + $0xe8] sm:$0xf] }
 0x336   :  { %8657 = vmatprep.mubr.bf16.mxu1 %v5021_v21  ;;  %8690 = vmatpush3.bf16.msra.mxu1 %v9297_v4  ;;  %v3047_v4 = vcombine.high %v2959_v12, %v2959_v12  ;;  %v2965_v21 = vld [vmem:[#allocation2 + $0xb0] sm:$0xff]  ;;  %v3053_v36 = vcombine.high %v2971_v22, %v2971_v22  ;;  %v2972_v28 = vld [vmem:[#allocation2 + $0x108] sm:$0xf]  ;;  %v4976_v5 = vcombine.low %v12618_v46, %v12625_v37  ;;  %v2978_v46 = vld [vmem:[#allocation2 + $0x138] sm:$0xf] }
 0x337   :  { %8691 = vmatprep.subr.bf16.mxu1 %v9304_v53  ;;  %8526 = vmatpush3.bf16.msra.mxu0 %v12578_v17  ;;  %v9318_v17 = vld [vmem:[%s13711_s5 + $0x178] sm:$0xff]   ;;  %v3050_v41 = vcombine.high %v2965_v21, %v2965_v21  ;;  %v2976_v48 = vld [vmem:[#allocation2 + $0x128] sm:$0xf] }
 0x338   :  { %8527 = vmatprep.subr.bf16.mxu0 %v9317_v49  ;;  %v3075_v24 = vcombine.low %v2959_v12, %v3047_v4  ;;  %v4967_v12 = vcombine.low %v12550_v29, %v12565_v47  ;;  %v3051_v4 = vcombine.high %v2967_v30, %v2967_v30  ;;  %v9350_v47 = vld [vmem:[%s13711_s5 + $0xb8] sm:$0xff]   ;;  %v4870_v37 = vld [vmem:[#allocation2 + $0x1a9] sm:$0xf] }
 0x339   :  { %v3080_v11 = vcombine.low %v3050_v41, %v2966_v3 }
 0x33a   :  { %8692 = vmatpush3.bf16.msra.mxu1 %v9304_v53  ;;  %v4964_v53 = vcombine.low %v12522_v62, %v12539_v33  ;;  %v3141_v59 = vpack.c.bf16 %v3076_v25, %v3075_v24  ;;  %v9339_v62 = vld [vmem:[%s13711_s5 + $0xa8] sm:$0xff]   ;;  %v3081_v56 = vcombine.low %v2967_v30, %v3051_v4  ;;  %v3084_v24 = vcombine.low %v2971_v22, %v3053_v36  ;;  %v12729_v36 = vld [vmem:[#allocation2 + $0x32] sm:$0xff] }
 0x33b   :  { %8693 = vmatprep.subr.bf16.mxu1 %v9310_v27  ;;  %8528 = vmatpush3.bf16.msra.mxu0 %v9317_v49  ;;  %v3140_v49 = vpack.c.bf16 %v3074_v6, %v3073_v8  ;;  %v2964_v33 = vld [vmem:[#allocation2 + $0xa8] sm:$0xf]  ;;  %v2973_v8 = vld [vmem:[#allocation2 + $0x110] sm:$0xff] }
 0x33c   :  { %8494 = vmatmul.mubr.bf16.gmra.mrb[104].mxu0 %v3138_v15  ;;  %8529 = vmatprep.subr.bf16.mxu0 %v9321_v54  ;;  %v5025_v14 = vpack.c.bf16 %v4964_v53, %v4963_v34  ;;  %v9342_v15 = vld [vmem:[%s13711_s5 + $0xb0] sm:$0xff]   ;;  %v3079_v51 = vcombine.low %v2964_v33, %v2965_v21  ;;  %v4858_v6 = vld [vmem:[#allocation2 + $0x149] sm:$0xf]  ;;  %v4972_v34 = vcombine.low %v12600_v10, %v4862_v18  ;;  %v2975_v53 = vld [vmem:[#allocation2 + $0x120] sm:$0xff] }
 0x33d   :  { %8658 = vmatmul.mubr.bf16.gmra.mrb[4].mxu1 %v5022_v0  ;;  %8497 = vmatprep.mubr.bf16.mxu0 %v3139_v44  ;;  %v4856_v0 = vld [vmem:[#allocation2 + $0x139] sm:$0xf]  ;;  %v3142_v44 = vpack.c.bf16 %v3078_v9, %v3077_v35  ;;  %v4969_v31 = vcombine.low %v12569_v19, %v4858_v6  ;;  %v3054_v23 = vcombine.high %v2973_v8, %v2973_v8  ;;  %v12727_v4 = vld [vmem:[#allocation2 + $0x22] sm:$0xff] }
 0x33e   :  { %8661 = vmatprep.mubr.bf16.mxu1 %v5023_v63  ;;  %8694 = vmatpush3.bf16.msra.mxu1 %v9310_v27  ;;  %v4966_v27 = vcombine.low %v12543_v52, %v4854_v40  ;;  %v4968_v52 = vcombine.low %v4856_v0, %v12554_v20  ;;  %v3143_v63 = vpack.c.bf16 %v3080_v11, %v3079_v51  ;;  %v2970_v20 = vld [vmem:[#allocation2 + $0xf8] sm:$0xf]  ;;  %v2981_v40 = vld [vmem:[#allocation2 + $0x150] sm:$0xff]  ;;  %v2987_v6 = vld [vmem:[#allocation2 + $0x180] sm:$0xff] }
 0x33f   :  { %8695 = vmatprep.subr.bf16.mxu1 %v9318_v17  ;;  %8530 = vmatpush3.bf16.msra.mxu0 %v9321_v54  ;;  %v2969_v54 = vld [vmem:[#allocation2 + $0xf0] sm:$0xff]  ;;  %v5028_v25 = vpack.c.bf16 %v4970_v13, %v4969_v31  ;;  %v2974_v10 = vld [vmem:[#allocation2 + $0x118] sm:$0xf]  ;;  %v3085_v33 = vcombine.low %v2972_v28, %v2973_v8  ;;  %v12735_v31 = vcombine.high %v12727_v4, %v12727_v4  ;;  %v12737_v13 = vld [vmem:[#allocation2 + $0x42] sm:$0xff] }
 0x340   :  { %8531 = vmatprep.subr.bf16.mxu0 %v9329_v1  ;;  %v5027_v29 = vpack.c.bf16 %v4968_v52, %v4967_v12  ;;  %v3082_v26 = vcombine.low %v2968_v7, %v2969_v54  ;;  %v4864_v35 = vld [vmem:[#allocation2 + $0x179] sm:$0xf] }
 0x341   :  { %v4974_v3 = vcombine.low %v4864_v35, %v12593_v60  ;;  %v12721_v11 = vld [vmem:[#allocation2 + $0x12] sm:$0xff] }
 0x342   :  { %8696 = vmatpush3.bf16.msra.mxu1 %v9318_v17  ;;  %v5026_v17 = vpack.c.bf16 %v4966_v27, %v4965_v61  ;;  %v3144_v21 = vpack.c.bf16 %v3082_v26, %v3081_v56  ;;  %v4868_v60 = vld [vmem:[#allocation2 + $0x199] sm:$0xf]  ;;  %v2985_v56 = vld [vmem:[#allocation2 + $0x170] sm:$0xff]  ;;  %v12742_v26 = vcombine.high %v12729_v36, %v12729_v36 }
 0x343   :  { %8532 = vmatpush3.bf16.msra.mxu0 %v9329_v1  ;;  %8733 = vmatprep.subr.bf16.mxu1 %v12680_v38  ;;  %v3052_v1 = vcombine.high %v2969_v54, %v2969_v54  ;;  %v2982_v52 = vld [vmem:[#allocation2 + $0x158] sm:$0xf] }
 0x344   :  { %8498 = vmatmul.mubr.bf16.gmra.mrb[108].mxu0 %v3140_v49  ;;  %8533 = vmatprep.subr.bf16.mxu0 %v9333_v2  ;;  %v3055_v49 = vcombine.high %v2975_v53, %v2975_v53  ;;  %v12756_v35 = vld [vmem:[#allocation2 + $0x72] sm:$0xff] }
 0x345   :  { %8662 = vmatmul.mubr.bf16.gmra.mrb[8].mxu1 %v5024_v58  ;;  %8501 = vmatprep.mubr.bf16.mxu0 %v3141_v59  ;;  %v3083_v57 = vcombine.low %v3052_v1, %v2970_v20  ;;  %v2977_v58 = vld [vmem:[#allocation2 + $0x130] sm:$0xff]  ;;  %v4973_v59 = vcombine.low %v12591_v32, %v12604_v16  ;;  %v4942_v16 = vcombine.high %v4869_v42, %v4869_v42  ;;  %v2983_v1 = vld [vmem:[#allocation2 + $0x160] sm:$0xff] }
 0x346   :  { %8665 = vmatprep.mubr.bf16.mxu1 %v5025_v14  ;;  %v3087_v41 = vcombine.low %v2975_v53, %v3055_v49  ;;  %v4866_v14 = vld [vmem:[#allocation2 + $0x189] sm:$0xf]  ;;  %v3088_v27 = vcombine.low %v2976_v48, %v2977_v58  ;;  %v3056_v12 = vcombine.high %v2977_v58, %v2977_v58  ;;  %v3059_v18 = vcombine.high %v2983_v1, %v2983_v1  ;;  %v2986_v49 = vld [vmem:[#allocation2 + $0x178] sm:$0xf]  ;;  %v2989_v58 = vld [vmem:[#allocation2 + $0x190] sm:$0xff] }
 0x347   :  { %8534 = vmatpush3.bf16.msra.mxu0 %v9333_v2  ;;  %v4971_v2 = vcombine.low %v4860_v50, %v12587_v45  ;;  %v3145_v19 = vpack.c.bf16 %v3084_v24, %v3083_v57  ;;  %v3086_v45 = vcombine.low %v3054_v23, %v2974_v10  ;;  %v4975_v9 = vcombine.low %v12608_v55, %v4866_v14  ;;  %v2984_v23 = vld [vmem:[#allocation2 + $0x168] sm:$0xf]  ;;  %v12752_v14 = vld [vmem:[#allocation2 + $0x52] sm:$0xff] }
 0x348   :  { %8535 = vmatprep.subr.bf16.mxu0 %v9339_v62  ;;  %v5030_v54 = vpack.c.bf16 %v4974_v3, %v4973_v59  ;;  %v3147_v22 = vpack.c.bf16 %v3088_v27, %v3087_v41  ;;  %v12725_v55 = vcombine.high %v12721_v11, %v12721_v11  ;;  %v3089_v51 = vcombine.low %v3056_v12, %v2978_v46  ;;  %v5318_v48 = vld [vmem:[#allocation2 + $0x4a] sm:$0xf]  ;;  %v5320_v46 = vld [vmem:[#allocation2 + $0x5a] sm:$0xf] }
 0x349   :  { %v5029_v39 = vpack.c.bf16 %v4972_v34, %v4971_v2  ;;  %v3146_v30 = vpack.c.bf16 %v3086_v45, %v3085_v33  ;;  %v5031_v61 = vpack.c.bf16 %v4976_v5, %v4975_v9  ;;  %v3060_v34 = vcombine.high %v2985_v56, %v2985_v56  ;;  %v12754_v33 = vld [vmem:[#allocation2 + $0x62] sm:$0xff] }
 0x34a   :  { %v5431_v7 = vcombine.low %v12721_v11, %v12725_v55  ;;  %v3061_v53 = vcombine.high %v2987_v6, %v2987_v6  ;;  %v12746_v2 = vcombine.high %v12737_v13, %v12737_v13  ;;  %v5434_v10 = vcombine.low %v12729_v36, %v12742_v26  ;;  %v9345_v12 = vld [vmem:[%s13711_s5 + $0x188] sm:$0xff]  }
 0x34b   :  { %8536 = vmatpush3.bf16.msra.mxu0 %v9339_v62  ;;  %v2979_v62 = vld [vmem:[#allocation2 + $0x140] sm:$0xff]  ;;  %v3095_v28 = vcombine.low %v3060_v34, %v2986_v49  ;;  %v3094_v59 = vcombine.low %v2984_v23, %v2985_v56  ;;  %v3969_v34 = vcombine.low %v12727_v4, %v12735_v31  ;;  %v3853_v23 = vld [vmem:[#allocation2 + $0x3a] sm:$0xf] }
 0x34c   :  { %8502 = vmatmul.mubr.bf16.gmra.mrb[112].mxu0 %v3142_v44  ;;  %8537 = vmatprep.subr.bf16.mxu0 %v9342_v15  ;;  %v3057_v32 = vcombine.high %v2979_v62, %v2979_v62  ;;  %v4978_v44 = vcombine.low %v4942_v16, %v4870_v37  ;;  %v3096_v45 = vcombine.low %v2987_v6, %v3061_v53  ;;  %v5326_v53 = vld [vmem:[#allocation2 + $0x8a] sm:$0xf]  ;;  %v5328_v49 = vld [vmem:[#allocation2 + $0x9a] sm:$0xf] }
 0x34d   :  { %8666 = vmatmul.mubr.bf16.gmra.mrb[12].mxu1 %v5026_v17  ;;  %8505 = vmatprep.mubr.bf16.mxu0 %v3143_v63  ;;  %v5312_v63 = vld [vmem:[#allocation2 + $0x1a] sm:$0xf]  ;;  %v5436_v41 = vcombine.low %v12746_v2, %v5318_v48  ;;  %v5333_v48 = vld [vmem:[#allocation2 + $0xc2] sm:$0xff] }
 0x34e   :  { %8669 = vmatprep.mubr.bf16.mxu1 %v5027_v29  ;;  %v3090_v0 = vcombine.low %v2979_v62, %v3057_v32  ;;  %v4977_v29 = vcombine.low %v4868_v60, %v4869_v42  ;;  %v5432_v50 = vcombine.low %v5312_v63, %v12727_v4  ;;  %v3846_v62 = vld [vmem:[#allocation2 + $0x2] sm:$0xff]  ;;  %v5316_v42 = vld [vmem:[#allocation2 + $0x3a] sm:$0xf]  ;;  %v3151_v27 = vpack.c.bf16 %v3096_v45, %v3095_v28 }
 0x34f   :  { %8538 = vmatpush3.bf16.msra.mxu0 %v9342_v15  ;;  %v3058_v15 = vcombine.high %v2981_v40, %v2981_v40  ;;  %v5435_v5 = vcombine.low %v5316_v42, %v12737_v13  ;;  %v3942_v32 = vcombine.high %v3846_v62, %v3846_v62  ;;  %v2988_v60 = vld [vmem:[#allocation2 + $0x188] sm:$0xf] }
 0x350   :  { %8539 = vmatprep.subr.bf16.mxu0 %v9350_v47  ;;  %v3148_v57 = vpack.c.bf16 %v3090_v0, %v3089_v51  ;;  %v5032_v24 = vpack.c.bf16 %v4978_v44, %v4977_v29  ;;  %v5322_v0 = vld [vmem:[#allocation2 + $0x6a] sm:$0xf]  ;;  %v9356_v44 = vld [vmem:[%s13711_s5 + $0x190] sm:$0xff]   ;;  %v5438_v29 = vcombine.low %v5320_v46, %v12754_v33 }
 0x351   :  { %v3092_v17 = vcombine.low %v3058_v15, %v2982_v52  ;;  %v5505_v16 = vpack.c.bf16 %v5436_v41, %v5435_v5  ;;  %v2990_v15 = vld [vmem:[#allocation2 + $0x198] sm:$0xf]  ;;  %v3966_v51 = vcombine.low %v3846_v62, %v3942_v32  ;;  %v3097_v52 = vcombine.low %v2988_v60, %v2989_v58  ;;  %v3855_v32 = vld [vmem:[#allocation2 + $0x4a] sm:$0xf]  ;;  %v9382_v60 = vld [vmem:[%s13711_s5 + $0x1b0] sm:$0xff]  }
 0x352   :  { %v5418_v5 = vcombine.high %v5333_v48, %v5333_v48  ;;  %v5334_v46 = vld [vmem:[#allocation2 + $0xca] sm:$0xf] }
 0x353   :  { %8540 = vmatpush3.bf16.msra.mxu0 %v9350_v47  ;;  %v2980_v47 = vld [vmem:[#allocation2 + $0x148] sm:$0xf] }
 0x354   :  { %8506 = vmatmul.mubr.bf16.gmra.mrb[116].mxu0 %v3144_v21  ;;  %8577 = vmatprep.subr.bf16.mxu0 %v12712_v43  ;;  %v3091_v20 = vcombine.low %v2980_v47, %v2981_v40  ;;  %v5503_v21 = vpack.c.bf16 %v5432_v50, %v5431_v7  ;;  %v3062_v40 = vcombine.high %v2989_v58, %v2989_v58  ;;  %v12787_v7 = vld [vmem:[#allocation2 + $0x92] sm:$0xff] }
 0x355   :  { %8670 = vmatmul.mubr.bf16.gmra.mrb[16].mxu1 %v5028_v25  ;;  %8509 = vmatprep.mubr.bf16.mxu0 %v3145_v19  ;;  %v5314_v25 = vld [vmem:[#allocation2 + $0x2a] sm:$0xf]  ;;  %v3093_v19 = vcombine.low %v2983_v1, %v3059_v18  ;;  %v12783_v1 = vld [vmem:[#allocation2 + $0x82] sm:$0xff]  ;;  %v3849_v18 = vld [vmem:[#allocation2 + $0x1a] sm:$0xf] }
 0x356   :  { %8673 = vmatprep.mubr.bf16.mxu1 %v5029_v39  ;;  %v3149_v8 = vpack.c.bf16 %v3092_v17, %v3091_v20  ;;  %v5433_v39 = vcombine.low %v12735_v31, %v5314_v25  ;;  %v3847_v17 = vld [vmem:[#allocation2 + $0xa] sm:$0xf]  ;;  %v12812_v31 = vld [vmem:[#allocation2 + $0xb2] sm:$0xff] }
 0x357   :  { %v3150_v9 = vpack.c.bf16 %v3094_v59, %v3093_v19  ;;  %v3967_v47 = vcombine.low %v3847_v17, %v12721_v11  ;;  %v12798_v11 = vcombine.high %v12787_v7, %v12787_v7  ;;  %v3971_v19 = vcombine.low %v12742_v26, %v3853_v23  ;;  %v9389_v17 = vld [vmem:[%s13711_s5 + $0x1b8] sm:$0xff]  }
 0x358   :  { %v5504_v3 = vpack.c.bf16 %v5434_v10, %v5433_v39  ;;  %v12805_v39 = vld [vmem:[#allocation2 + $0xa2] sm:$0xff]  ;;  %v5324_v10 = vld [vmem:[#allocation2 + $0x7a] sm:$0xf]  ;;  %v12823_v42 = vcombine.high %v12812_v31, %v12812_v31 }
 0x359   :  { %v4038_v20 = vpack.c.bf16 %v3967_v47, %v3966_v51  ;;  %v5443_v4 = vcombine.low %v12787_v7, %v12798_v11  ;;  %v5441_v28 = vcombine.low %v5324_v10, %v12783_v1  ;;  %v5444_v58 = vcombine.low %v5328_v49, %v12805_v39  ;;  %v5332_v51 = vld [vmem:[#allocation2 + $0xba] sm:$0xf]  ;;  %v9531_v47 = vld [vmem:[%s13711_s5 + $0xd0] sm:$0xff]  }
 0x35a   :  { %v12819_v62 = vcombine.high %v12805_v39, %v12805_v39  ;;  %v12889_v49 = vld [vmem:[#allocation2 + $0x132] sm:$0xff] }
 0x35c   :  { %8510 = vmatmul.mubr.bf16.gmra.mrb[120].mxu0 %v3146_v30  ;;  %v12761_v30 = vcombine.high %v12752_v14, %v12752_v14 }
 0x35d   :  { %8674 = vmatmul.mubr.bf16.gmra.mrb[20].mxu1 %v5030_v54  ;;  %8513 = vmatprep.mubr.bf16.mxu0 %v3147_v22  ;;  %v12768_v54 = vcombine.high %v12754_v33, %v12754_v33  ;;  %v12772_v22 = vcombine.high %v12756_v35, %v12756_v35 }
 0x35e   :  { %8677 = vmatprep.mubr.bf16.mxu1 %v5031_v61  ;;  %v3098_v61 = vcombine.low %v3062_v40, %v2990_v15  ;;  %v5437_v37 = vcombine.low %v12752_v14, %v12761_v30  ;;  %v3857_v40 = vld [vmem:[#allocation2 + $0x5a] sm:$0xf]  ;;  %v5446_v15 = vcombine.low %v12812_v31, %v12823_v42 }
 0x35f   :  { %v5439_v63 = vcombine.low %v12768_v54, %v5322_v0 }
 0x360   :  { %v3152_v56 = vpack.c.bf16 %v3098_v61, %v3097_v52  ;;  %v5506_v6 = vpack.c.bf16 %v5438_v29, %v5437_v37  ;;  %v3975_v61 = vcombine.low %v12754_v33, %v12768_v54  ;;  %v9530_v37 = vld [vmem:[%s13711_s5 + $0xc8] sm:$0xff]   ;;  %v12848_v54 = vld [vmem:[#allocation2 + $0x112] sm:$0xff] }
 0x361   :  { %v12846_v33 = vld [vmem:[#allocation2 + $0x102] sm:$0xff]  ;;  %v12863_v29 = vcombine.high %v12848_v54, %v12848_v54 }
 0x363   :  { %v5452_v23 = vcombine.low %v12848_v54, %v12863_v29 }
 0x364   :  { %8514 = vmatmul.mubr.bf16.gmra.mrb[124].mxu0 %v3148_v57  ;;  %v12791_v57 = vcombine.high %v12783_v1, %v12783_v1 }
 0x365   :  { %8678 = vmatmul.mubr.bf16.gmra.mrb[24].mxu1 %v5032_v24  ;;  %8517 = vmatprep.mubr.bf16.mxu0 %v3149_v8  ;;  %v9362_v24 = vld [vmem:[%s13711_s5 + $0x198] sm:$0xff]   ;;  %v3968_v8 = vcombine.low %v12725_v55, %v3849_v18  ;;  %v9369_v55 = vld [vmem:[%s13711_s5 + $0x1a0] sm:$0xff]   ;;  %v5338_v18 = vld [vmem:[#allocation2 + $0x10a] sm:$0xf] }
 0x366   :  { %8697 = vmatprep.mubr.bf16.mxu1 %v5503_v21  ;;  %v3851_v21 = vld [vmem:[#allocation2 + $0x2a] sm:$0xf]  ;;  %v5442_v25 = vcombine.low %v12791_v57, %v5326_v53  ;;  %v5336_v53 = vld [vmem:[#allocation2 + $0xfa] sm:$0xf] }
 0x367   :  { %v3970_v45 = vcombine.low %v3851_v21, %v12729_v36  ;;  %v4039_v26 = vpack.c.bf16 %v3969_v34, %v3968_v8  ;;  %v9375_v36 = vld [vmem:[%s13711_s5 + $0x1a8] sm:$0xff]   ;;  %v12876_v8 = vld [vmem:[%s13711_s5 + $0x1c0] sm:$0xff]  }
 0x368   :  { %v5508_v59 = vpack.c.bf16 %v5442_v25, %v5441_v28  ;;  %v3863_v21 = vld [vmem:[#allocation2 + $0x8a] sm:$0xf]  ;;  %v12882_v25 = vld [vmem:[#allocation2 + $0x122] sm:$0xff] }
 0x369   :  { %v4040_v41 = vpack.c.bf16 %v3971_v19, %v3970_v45  ;;  %v3979_v19 = vcombine.low %v3863_v21, %v12787_v7  ;;  %v12898_v45 = vcombine.high %v12889_v49, %v12889_v49  ;;  %v9533_v7 = vld [vmem:[%s13711_s5 + $0xe0] sm:$0xff]  }
 0x36a   :  { %v12950_v21 = vld [vmem:[#allocation2 + $0x182] sm:$0xff] }
 0x36c   :  { %8518 = vmatmul.mubr.bf16.gmra.mrb[128].mxu0 %v3150_v9  ;;  %v5509_v9 = vpack.c.bf16 %v5444_v58, %v5443_v4  ;;  %v12893_v4 = vcombine.high %v12882_v25, %v12882_v25 }
 0x36d   :  { %8698 = vmatmul.mubr.bf16.vlgmr.msra.gmra.mrb[28].mxu1 %v5504_v3  ;;  %8521 = vmatprep.mubr.bf16.mxu0 %v3151_v27  ;;  %v3972_v3 = vcombine.low %v12737_v13, %v12746_v2  ;;  %v5330_v27 = vld [vmem:[#allocation2 + $0xaa] sm:$0xf]  ;;  %v3973_v13 = vcombine.low %v3855_v32, %v12752_v14  ;;  %v5448_v2 = vcombine.low %v5418_v5, %v5334_v46  ;;  %v12912_v32 = vld [vmem:[#allocation2 + $0x152] sm:$0xff] }
 0x36e   :  { %8734 = vmatpush3.bf16.msra.mxu1 %v12680_v38  ;;  %8701 = vmatprep.mubr.bf16.mxu1 %v5505_v16  ;;  %v5440_v38 = vcombine.low %v12756_v35, %v12772_v22  ;;  %v5445_v16 = vcombine.low %v12819_v62, %v5330_v27  ;;  %v3870_v27 = vld [vmem:[#allocation2 + $0xe2] sm:$0xff] }
 0x36f   :  { %8735 = vmatprep.subr.bf16.mxu1 %v9345_v12  ;;  %v4041_v0 = vpack.c.bf16 %v3973_v13, %v3972_v3  ;;  %v12908_v3 = vld [vmem:[#allocation2 + $0x142] sm:$0xff]  ;;  %v3954_v46 = vcombine.high %v3870_v27, %v3870_v27 }
 0x370   :  { %v5507_v50 = vpack.c.bf16 %v5440_v38, %v5439_v63  ;;  %v5510_v52 = vpack.c.bf16 %v5446_v15, %v5445_v16  ;;  %v12859_v38 = vcombine.high %v12846_v33, %v12846_v33  ;;  %v5344_v16 = vld [vmem:[#allocation2 + $0x13a] sm:$0xf] }
 0x372   :  { %8736 = vmatpush3.bf16.msra.mxu1 %v9345_v12  ;;  %v3974_v12 = vcombine.low %v12761_v30, %v3857_v40  ;;  %v12841_v30 = vld [vmem:[#allocation2 + $0xf2] sm:$0xff] }
 0x373   :  { %8737 = vmatprep.subr.bf16.mxu1 %v9356_v44  ;;  %v12852_v14 = vcombine.high %v12841_v30, %v12841_v30 }
 0x374   :  { %8522 = vmatmul.mubr.bf16.gmra.mrb[132].mxu0 %v3152_v56  ;;  %v3859_v56 = vld [vmem:[#allocation2 + $0x6a] sm:$0xf] }
 0x375   :  { %8702 = vmatmul.mubr.bf16.gmra.mrb[32].mxu1 %v5506_v6  ;;  %8541 = vmatprep.mubr.bf16.mxu0 %v4038_v20  ;;  %v3861_v6 = vld [vmem:[#allocation2 + $0x7a] sm:$0xf]  ;;  %v3976_v34 = vcombine.low %v3859_v56, %v12756_v35 }
 0x376   :  { %8705 = vmatprep.mubr.bf16.mxu1 %v5507_v50  ;;  %8738 = vmatpush3.bf16.msra.mxu1 %v9356_v44  ;;  %v5447_v44 = vcombine.low %v5332_v51, %v5333_v48  ;;  %v3977_v20 = vcombine.low %v12772_v22, %v3861_v6  ;;  %v3978_v50 = vcombine.low %v12783_v1, %v12791_v57  ;;  %v9532_v1 = vld [vmem:[%s13711_s5 + $0xd8] sm:$0xff]  }
 0x377   :  { %8739 = vmatprep.subr.bf16.mxu1 %v9362_v24  ;;  %v5451_v22 = vcombine.low %v12859_v38, %v5338_v18  ;;  %v5450_v57 = vcombine.low %v5336_v53, %v12846_v33  ;;  %v3865_v48 = vld [vmem:[#allocation2 + $0x9a] sm:$0xf]  ;;  %v3987_v6 = vcombine.low %v12846_v33, %v12859_v38 }
 0x378   :  { %v5511_v63 = vpack.c.bf16 %v5448_v2, %v5447_v44  ;;  %v4043_v35 = vpack.c.bf16 %v3977_v20, %v3976_v34  ;;  %v4044_v10 = vpack.c.bf16 %v3979_v19, %v3978_v50  ;;  %v3980_v58 = vcombine.low %v12798_v11, %v3865_v48  ;;  %v9534_v11 = vld [vmem:[%s13711_s5 + $0xe8] sm:$0xff]   ;;  %v5348_v20 = vld [vmem:[#allocation2 + $0x15a] sm:$0xf]  ;;  %v12945_v34 = vld [vmem:[#allocation2 + $0x172] sm:$0xff] }
 0x379   :  { %v5513_v28 = vpack.c.bf16 %v5452_v23, %v5451_v22  ;;  %v12924_v2 = vcombine.high %v12908_v3, %v12908_v3  ;;  %v3871_v44 = vld [vmem:[#allocation2 + $0xea] sm:$0xf]  ;;  %v9536_v53 = vld [vmem:[%s13711_s5 + $0xf8] sm:$0xff]   ;;  %v3990_v48 = vcombine.low %v12882_v25, %v12893_v4 }
 0x37a   :  { %8740 = vmatpush3.bf16.msra.mxu1 %v9362_v24  ;;  %v5449_v24 = vcombine.low %v12841_v30, %v12852_v14  ;;  %v3985_v50 = vcombine.low %v3871_v44, %v12841_v30  ;;  %v12957_v30 = vcombine.high %v12945_v34, %v12945_v34 }
 0x37b   :  { %8741 = vmatprep.subr.bf16.mxu1 %v9369_v55 }
 0x37c   :  { %8542 = vmatmul.mubr.bf16.vlgmr.msra.gmra.mrb[100].mxu0 %v4039_v26  ;;  %v5340_v26 = vld [vmem:[#allocation2 + $0x11a] sm:$0xf] }
 0x37d   :  { %8706 = vmatmul.mubr.bf16.gmra.mrb[0].mxu1 %v5508_v59  ;;  %8545 = vmatprep.mubr.bf16.mxu0 %v4040_v41  ;;  %v3981_v59 = vcombine.low %v12805_v39, %v12819_v62  ;;  %v5342_v41 = vld [vmem:[#allocation2 + $0x12a] sm:$0xf]  ;;  %v5453_v39 = vcombine.low %v5340_v26, %v12882_v25 }
 0x37e   :  { %8709 = vmatprep.mubr.bf16.mxu1 %v5509_v9  ;;  %8742 = vmatpush3.bf16.msra.mxu1 %v9369_v55  ;;  %v5512_v55 = vpack.c.bf16 %v5450_v57, %v5449_v24  ;;  %v3869_v9 = vld [vmem:[#allocation2 + $0xba] sm:$0xf]  ;;  %v5454_v5 = vcombine.low %v12893_v4, %v5342_v41  ;;  %v5350_v24 = vld [vmem:[#allocation2 + $0x16a] sm:$0xf]  ;;  %v12961_v57 = vcombine.high %v12950_v21, %v12950_v21 }
 0x37f   :  { %8743 = vmatprep.subr.bf16.mxu1 %v9375_v36  ;;  %8578 = vmatpush3.bf16.msra.mxu0 %v12712_v43  ;;  %v4042_v43 = vpack.c.bf16 %v3975_v61, %v3974_v12  ;;  %v3983_v40 = vcombine.low %v12823_v42, %v3869_v9  ;;  %v5455_v12 = vcombine.low %v12889_v49, %v12898_v45  ;;  %v12919_v42 = vld [vmem:[#allocation2 + $0x162] sm:$0xff]  ;;  %v5354_v26 = vld [vmem:[#allocation2 + $0x18a] sm:$0xf] }
 0x380   :  { %8579 = vmatprep.subr.bf16.mxu0 %v9530_v37  ;;  %v4045_v15 = vpack.c.bf16 %v3981_v59, %v3980_v58  ;;  %v5456_v61 = vcombine.low %v5344_v16, %v12908_v3  ;;  %v12932_v51 = vcombine.high %v12919_v42, %v12919_v42  ;;  %v5459_v33 = vcombine.low %v5348_v20, %v12919_v42  ;;  %v5352_v59 = vld [vmem:[#allocation2 + $0x17a] sm:$0xf]  ;;  %v5357_v9 = vld [vmem:[#allocation2 + $0x1a2] sm:$0xff]  ;;  %v3887_v20 = vld [vmem:[#allocation2 + $0x16a] sm:$0xf] }
 0x381   :  { %v5463_v41 = vcombine.low %v12961_v57, %v5354_v26  ;;  %v5430_v25 = vcombine.high %v5357_v9, %v5357_v9  ;;  %v5356_v16 = vld [vmem:[#allocation2 + $0x19a] sm:$0xf] }
 0x382   :  { %8744 = vmatpush3.bf16.msra.mxu1 %v9375_v36  ;;  %v3867_v36 = vld [vmem:[#allocation2 + $0xaa] sm:$0xf]  ;;  %v5460_v18 = vcombine.low %v12932_v51, %v5350_v24  ;;  %v5803_v24 = vld [vmem:[#allocation2 + $0x38] sm:$0xf] }
 0x383   :  { %8745 = vmatprep.subr.bf16.mxu1 %v9382_v60  ;;  %8580 = vmatpush3.bf16.msra.mxu0 %v9530_v37  ;;  %v3982_v62 = vcombine.low %v3867_v36, %v12812_v31  ;;  %v12928_v37 = vcombine.high %v12912_v32, %v12912_v32  ;;  %v5515_v31 = vpack.c.bf16 %v5456_v61, %v5455_v12  ;;  %v3885_v61 = vld [vmem:[#allocation2 + $0x15a] sm:$0xf] }
 0x384   :  { %8546 = vmatmul.mubr.bf16.gmra.mrb[104].mxu0 %v4041_v0  ;;  %8581 = vmatprep.subr.bf16.mxu0 %v9531_v47  ;;  %v9535_v0 = vld [vmem:[%s13711_s5 + $0xf0] sm:$0xff]  }
 0x385   :  { %8710 = vmatmul.mubr.bf16.gmra.mrb[4].mxu1 %v5510_v52  ;;  %8549 = vmatprep.mubr.bf16.mxu0 %v4042_v43  ;;  %v4046_v13 = vpack.c.bf16 %v3983_v40, %v3982_v62  ;;  %v3984_v52 = vcombine.low %v3870_v27, %v3954_v46  ;;  %v5346_v43 = vld [vmem:[#allocation2 + $0x14a] sm:$0xf]  ;;  %v12978_v40 = vld [vmem:[#allocation2 + $0x20] sm:$0xff] }
 0x386   :  { %8713 = vmatprep.mubr.bf16.mxu1 %v5511_v63  ;;  %8746 = vmatpush3.bf16.msra.mxu1 %v9382_v60  ;;  %v5514_v60 = vpack.c.bf16 %v5454_v5, %v5453_v39  ;;  %v5457_v63 = vcombine.low %v12924_v2, %v5346_v43  ;;  %v3881_v39 = vld [vmem:[#allocation2 + $0x13a] sm:$0xf]  ;;  %v5465_v43 = vcombine.low %v5356_v16, %v5357_v9  ;;  %v5814_v16 = vld [vmem:[#allocation2 + $0x90] sm:$0xff] }
 0x387   :  { %8747 = vmatprep.subr.bf16.mxu1 %v9389_v17  ;;  %8582 = vmatpush3.bf16.msra.mxu0 %v9531_v47  ;;  %v5458_v47 = vcombine.low %v12912_v32, %v12928_v37  ;;  %v4047_v22 = vpack.c.bf16 %v3985_v50, %v3984_v52  ;;  %v3992_v62 = vcombine.low %v12898_v45, %v3881_v39  ;;  %v12992_v52 = vld [vmem:[#allocation2 + $0x40] sm:$0xff] }
 0x388   :  { %8583 = vmatprep.subr.bf16.mxu0 %v9532_v1  ;;  %v3996_v50 = vcombine.low %v12919_v42, %v12932_v51  ;;  %v5810_v42 = vld [vmem:[#allocation2 + $0x70] sm:$0xff]  ;;  %v5812_v51 = vld [vmem:[#allocation2 + $0x80] sm:$0xff] }
 0x389   :  { %v5516_v38 = vpack.c.bf16 %v5458_v47, %v5457_v63 }
 0x38a   :  { %8748 = vmatpush3.bf16.msra.mxu1 %v9389_v17  ;;  %v3873_v17 = vld [vmem:[#allocation2 + $0xfa] sm:$0xf] }
 0x38b   :  { %8584 = vmatpush3.bf16.msra.mxu0 %v9532_v1  ;;  %8785 = vmatprep.subr.bf16.mxu1 %v12876_v8  ;;  %v3986_v56 = vcombine.low %v12852_v14, %v3873_v17  ;;  %v12952_v14 = vld [vmem:[#allocation2 + $0x192] sm:$0xff]  ;;  %v5517_v1 = vpack.c.bf16 %v5460_v18, %v5459_v33  ;;  %v3889_v18 = vld [vmem:[#allocation2 + $0x17a] sm:$0xf] }
 0x38c   :  { %8550 = vmatmul.mubr.bf16.gmra.mrb[108].mxu0 %v4043_v35  ;;  %8585 = vmatprep.subr.bf16.mxu0 %v9533_v7  ;;  %v12965_v19 = vcombine.high %v12952_v14, %v12952_v14  ;;  %v3877_v35 = vld [vmem:[#allocation2 + $0x11a] sm:$0xf]  ;;  %v12995_v17 = vld [vmem:[#allocation2 + $0x50] sm:$0xff]  ;;  %v3998_v33 = vcombine.low %v12957_v30, %v3889_v18 }
 0x38d   :  { %8714 = vmatmul.mubr.bf16.gmra.mrb[8].mxu1 %v5512_v55  ;;  %8553 = vmatprep.mubr.bf16.mxu0 %v4044_v10  ;;  %v4048_v23 = vpack.c.bf16 %v3987_v6, %v3986_v56  ;;  %v3989_v55 = vcombine.low %v12863_v29, %v3877_v35  ;;  %v3879_v10 = vld [vmem:[#allocation2 + $0x12a] sm:$0xf]  ;;  %v5462_v29 = vcombine.low %v5352_v59, %v12950_v21  ;;  %v4340_v18 = vld [vmem:[#allocation2 + $0x38] sm:$0xf] }
 0x38e   :  { %8717 = vmatprep.mubr.bf16.mxu1 %v5513_v28  ;;  %v3875_v28 = vld [vmem:[#allocation2 + $0x10a] sm:$0xf]  ;;  %v5464_v36 = vcombine.low %v12952_v14, %v12965_v19  ;;  %v3991_v5 = vcombine.low %v3879_v10, %v12889_v49  ;;  %v3993_v49 = vcombine.low %v12908_v3, %v12924_v2  ;;  %v13004_v56 = vcombine.high %v12992_v52, %v12992_v52  ;;  %v4335_v10 = vld [vmem:[#allocation2 + $0x10] sm:$0xff] }
 0x38f   :  { %8586 = vmatpush3.bf16.msra.mxu0 %v9533_v7  ;;  %v5461_v7 = vcombine.low %v12945_v34, %v12957_v30  ;;  %v3988_v58 = vcombine.low %v3875_v28, %v12848_v54  ;;  %v12982_v54 = vcombine.high %v12978_v40, %v12978_v40  ;;  %v5805_v28 = vld [vmem:[#allocation2 + $0x48] sm:$0xf]  ;;  %v4431_v30 = vcombine.high %v4335_v10, %v4335_v10 }
 0x390   :  { %8587 = vmatprep.subr.bf16.mxu0 %v9534_v11  ;;  %v5519_v4 = vpack.c.bf16 %v5464_v36, %v5463_v41  ;;  %v4051_v3 = vpack.c.bf16 %v3993_v49, %v3992_v62  ;;  %v5902_v41 = vcombine.high %v5812_v51, %v5812_v51  ;;  %v3893_v36 = vld [vmem:[#allocation2 + $0x19a] sm:$0xf] }
 0x391   :  { %v4049_v27 = vpack.c.bf16 %v3989_v55, %v3988_v58  ;;  %v5518_v12 = vpack.c.bf16 %v5462_v29, %v5461_v7  ;;  %v5920_v44 = vcombine.low %v12978_v40, %v12982_v54  ;;  %v5808_v55 = vld [vmem:[#allocation2 + $0x60] sm:$0xff]  ;;  %v4001_v9 = vcombine.low %v12965_v19, %v3893_v36  ;;  %v5809_v29 = vld [vmem:[#allocation2 + $0x68] sm:$0xf] }
 0x392   :  { %v5900_v59 = vcombine.high %v5808_v55, %v5808_v55  ;;  %v5929_v49 = vcombine.low %v5812_v51, %v5902_v41  ;;  %v5816_v19 = vld [vmem:[#allocation2 + $0xa0] sm:$0xff]  ;;  %v5819_v51 = vld [vmem:[#allocation2 + $0xb8] sm:$0xf]  ;;  %v5826_v41 = vld [vmem:[#allocation2 + $0x110] sm:$0xff] }
 0x393   :  { %8588 = vmatpush3.bf16.msra.mxu0 %v9534_v11  ;;  %v4050_v11 = vpack.c.bf16 %v3991_v5, %v3990_v48  ;;  %v5924_v48 = vcombine.low %v5805_v28, %v12995_v17  ;;  %v4336_v5 = vld [vmem:[#allocation2 + $0x18] sm:$0xf]  ;;  %v5828_v36 = vld [vmem:[#allocation2 + $0x120] sm:$0xff] }
 0x394   :  { %8554 = vmatmul.mubr.bf16.gmra.mrb[112].mxu0 %v4045_v15  ;;  %8589 = vmatprep.subr.bf16.mxu0 %v9535_v0  ;;  %v5358_v15 = vld [vmem:[#allocation2 + $0x1aa] sm:$0xf] }
 0x395   :  { %8718 = vmatmul.mubr.bf16.gmra.mrb[12].mxu1 %v5514_v60  ;;  %8557 = vmatprep.mubr.bf16.mxu0 %v4046_v13  ;;  %v5466_v46 = vcombine.low %v5430_v25, %v5358_v15  ;;  %v3995_v60 = vcombine.low %v12928_v37, %v3885_v61  ;;  %v5801_v13 = vld [vmem:[#allocation2 + $0x28] sm:$0xf]  ;;  %v5811_v25 = vld [vmem:[#allocation2 + $0x78] sm:$0xf]  ;;  %v4456_v15 = vcombine.low %v4336_v5, %v12978_v40 }
 0x396   :  { %8721 = vmatprep.mubr.bf16.mxu1 %v5515_v31  ;;  %v12988_v31 = vld [vmem:[#allocation2 + $0x30] sm:$0xff]  ;;  %v9439_v5 = vld [vmem:[%s13711_s5 + $0x1f8] sm:$0xff]  }
 0x397   :  { %8590 = vmatpush3.bf16.msra.mxu0 %v9535_v0  ;;  %v3883_v0 = vld [vmem:[#allocation2 + $0x14a] sm:$0xf]  ;;  %v5921_v2 = vcombine.low %v5801_v13, %v12988_v31  ;;  %v5520_v63 = vpack.c.bf16 %v5466_v46, %v5465_v43  ;;  %v13000_v37 = vcombine.high %v12988_v31, %v12988_v31  ;;  %v5903_v13 = vcombine.high %v5814_v16, %v5814_v16 }
 0x398   :  { %8591 = vmatprep.subr.bf16.mxu0 %v9536_v53  ;;  %v3994_v45 = vcombine.low %v3883_v0, %v12912_v32  ;;  %v13008_v32 = vcombine.high %v12995_v17, %v12995_v17  ;;  %v9419_v0 = vld [vmem:[%s13711_s5 + $0x1d8] sm:$0xff]   ;;  %v4338_v43 = vld [vmem:[#allocation2 + $0x28] sm:$0xf] }
 0x399   :  { %v5992_v6 = vpack.c.bf16 %v5921_v2, %v5920_v44  ;;  %v4458_v40 = vcombine.low %v12988_v31, %v13000_v37  ;;  %v4342_v2 = vld [vmem:[#allocation2 + $0x48] sm:$0xf]  ;;  %v4459_v31 = vcombine.low %v4340_v18, %v12992_v52 }
 0x39a   :  { %v4052_v47 = vpack.c.bf16 %v3995_v60, %v3994_v45  ;;  %v4457_v45 = vcombine.low %v12982_v54, %v4338_v43  ;;  %v5834_v43 = vld [vmem:[#allocation2 + $0x150] sm:$0xff] }
 0x39b   :  { %8592 = vmatpush3.bf16.msra.mxu0 %v9536_v53  ;;  %v5922_v53 = vcombine.low %v13000_v37, %v5803_v24  ;;  %v9424_v24 = vld [vmem:[%s13711_s5 + $0x1e0] sm:$0xff]   ;;  %v5822_v37 = vld [vmem:[#allocation2 + $0xd0] sm:$0xff] }
 0x39c   :  { %8558 = vmatmul.mubr.bf16.gmra.mrb[116].mxu0 %v4047_v22  ;;  %v5923_v22 = vcombine.low %v12992_v52, %v13004_v56  ;;  %v5907_v28 = vcombine.high %v5822_v37, %v5822_v37  ;;  %v4461_v52 = vcombine.low %v12995_v17, %v13008_v32 }
 0x39d   :  { %8722 = vmatmul.mubr.bf16.gmra.mrb[16].mxu1 %v5516_v38  ;;  %8561 = vmatprep.mubr.bf16.mxu0 %v4048_v23  ;;  %v3999_v38 = vcombine.low %v12950_v21, %v12961_v57  ;;  %v5807_v23 = vld [vmem:[#allocation2 + $0x58] sm:$0xf]  ;;  %v9404_v21 = vld [vmem:[%s13711_s5 + $0x1c8] sm:$0xff]   ;;  %v5901_v57 = vcombine.high %v5810_v42, %v5810_v42 }
 0x39e   :  { %8725 = vmatprep.mubr.bf16.mxu1 %v5517_v1  ;;  %v3997_v1 = vcombine.low %v3887_v20, %v12945_v34  ;;  %v5925_v35 = vcombine.low %v13008_v32, %v5807_v23  ;;  %v5993_v26 = vpack.c.bf16 %v5923_v22, %v5922_v53  ;;  %v5818_v20 = vld [vmem:[#allocation2 + $0xb0] sm:$0xff]  ;;  %v5820_v53 = vld [vmem:[#allocation2 + $0xc0] sm:$0xff] }
 0x39f   :  { %v4054_v58 = vpack.c.bf16 %v3999_v38, %v3998_v33  ;;  %v5928_v62 = vcombine.low %v5901_v57, %v5811_v25  ;;  %v4528_v33 = vpack.c.bf16 %v4458_v40, %v4457_v45  ;;  %v5821_v57 = vld [vmem:[#allocation2 + $0xc8] sm:$0xf]  ;;  %v5836_v40 = vld [vmem:[#allocation2 + $0x160] sm:$0xff] }
 0x3a0   :  { %v4053_v7 = vpack.c.bf16 %v3997_v1, %v3996_v50  ;;  %v5994_v34 = vpack.c.bf16 %v5925_v35, %v5924_v48  ;;  %v5813_v50 = vld [vmem:[#allocation2 + $0x88] sm:$0xf]  ;;  %v5905_v1 = vcombine.high %v5818_v20, %v5818_v20  ;;  %v5906_v35 = vcombine.high %v5820_v53, %v5820_v53 }
 0x3a1   :  { %v5996_v44 = vpack.c.bf16 %v5929_v49, %v5928_v62  ;;  %v5930_v22 = vcombine.low %v5813_v50, %v5814_v16  ;;  %v5825_v62 = vld [vmem:[#allocation2 + $0x108] sm:$0xf] }
 0x3a2   :  { %v5935_v48 = vcombine.low %v5820_v53, %v5906_v35 }
 0x3a4   :  { %8562 = vmatmul.mubr.bf16.gmra.mrb[120].mxu0 %v4049_v27  ;;  %v3891_v27 = vld [vmem:[#allocation2 + $0x18a] sm:$0xf] }
 0x3a5   :  { %8726 = vmatmul.mubr.bf16.gmra.mrb[20].mxu1 %v5518_v12  ;;  %8565 = vmatprep.mubr.bf16.mxu0 %v4050_v11  ;;  %v5926_v12 = vcombine.low %v5808_v55, %v5900_v59  ;;  %v4455_v11 = vcombine.low %v4335_v10, %v4431_v30  ;;  %v4000_v39 = vcombine.low %v3891_v27, %v12952_v14  ;;  %v9429_v55 = vld [vmem:[%s13711_s5 + $0x1e8] sm:$0xff]   ;;  %v9537_v59 = vld [vmem:[#allocation2 + $0x60] sm:$0xff] }
 0x3a6   :  { %8729 = vmatprep.mubr.bf16.mxu1 %v5519_v4  ;;  %v9414_v4 = vld [vmem:[%s13711_s5 + $0x1d0] sm:$0xff]   ;;  %v5904_v14 = vcombine.high %v5816_v19, %v5816_v19 }
 0x3a7   :  { %v4055_v61 = vpack.c.bf16 %v4001_v9, %v4000_v39  ;;  %v4527_v60 = vpack.c.bf16 %v4456_v15, %v4455_v11  ;;  %v5910_v11 = vcombine.high %v5828_v36, %v5828_v36  ;;  %v13056_v39 = vld [vmem:[%s13711_s5 + $0x200] sm:$0xff]   ;;  %v5939_v15 = vcombine.low %v5825_v62, %v5826_v41 }
 0x3a8   :  { %v5932_v54 = vcombine.low %v5816_v19, %v5904_v14  ;;  %v5832_v19 = vld [vmem:[#allocation2 + $0x140] sm:$0xff] }
 0x3a9   :  { %v5941_v16 = vcombine.low %v5828_v36, %v5910_v11  ;;  %v5845_v36 = vld [vmem:[#allocation2 + $0x1a8] sm:$0xf]  ;;  %v6294_v11 = vld [vmem:[#allocation2 + $0x51] sm:$0xff] }
 0x3ac   :  { %8566 = vmatmul.mubr.bf16.gmra.mrb[124].mxu0 %v4051_v3  ;;  %v5815_v3 = vld [vmem:[#allocation2 + $0x98] sm:$0xf] }
 0x3ad   :  { %8730 = vmatmul.mubr.bf16.gmra.mrb[24].mxu1 %v5520_v63  ;;  %8569 = vmatprep.mubr.bf16.mxu0 %v4052_v47  ;;  %v5931_v63 = vcombine.low %v5903_v13, %v5815_v3  ;;  %v4460_v47 = vcombine.low %v13004_v56, %v4342_v2  ;;  %v5912_v13 = vcombine.high %v5832_v19, %v5832_v19  ;;  %v5833_v2 = vld [vmem:[#allocation2 + $0x148] sm:$0xf] }
 0x3ae   :  { %8749 = vmatprep.mubr.bf16.mxu1 %v5992_v6  ;;  %v5817_v6 = vld [vmem:[#allocation2 + $0xa8] sm:$0xf] }
 0x3af   :  { %v5933_v38 = vcombine.low %v5817_v6, %v5818_v20  ;;  %v5997_v23 = vpack.c.bf16 %v5931_v63, %v5930_v22  ;;  %v4529_v56 = vpack.c.bf16 %v4460_v47, %v4459_v31  ;;  %v5944_v45 = vcombine.low %v5832_v19, %v5912_v13  ;;  %v5838_v63 = vld [vmem:[#allocation2 + $0x170] sm:$0xff]  ;;  %v5837_v31 = vld [vmem:[#allocation2 + $0x168] sm:$0xf] }
 0x3b0   :  { %v5945_v47 = vcombine.low %v5833_v2, %v5834_v43  ;;  %v5913_v20 = vcombine.high %v5834_v43, %v5834_v43  ;;  %v5915_v18 = vcombine.high %v5838_v63, %v5838_v63  ;;  %v6296_v13 = vld [vmem:[#allocation2 + $0x61] sm:$0xff] }
 0x3b1   :  { %v5998_v10 = vpack.c.bf16 %v5933_v38, %v5932_v54  ;;  %v5835_v54 = vld [vmem:[#allocation2 + $0x158] sm:$0xf]  ;;  %v5840_v38 = vld [vmem:[#allocation2 + $0x180] sm:$0xff] }
 0x3b2   :  { %v6004_v50 = vpack.c.bf16 %v5945_v47, %v5944_v45  ;;  %v5946_v53 = vcombine.low %v5913_v20, %v5835_v54 }
 0x3b4   :  { %8570 = vmatmul.mubr.bf16.gmra.mrb[128].mxu0 %v4053_v7  ;;  %v5934_v7 = vcombine.low %v5905_v1, %v5819_v51  ;;  %v5948_v1 = vcombine.low %v5837_v31, %v5838_v63  ;;  %v5843_v51 = vld [vmem:[#allocation2 + $0x198] sm:$0xf]  ;;  %v6304_v31 = vld [vmem:[#allocation2 + $0xa1] sm:$0xff] }
 0x3b5   :  { %8750 = vmatmul.mubr.bf16.vlgmr.msra.gmra.mrb[28].mxu1 %v5993_v26  ;;  %8573 = vmatprep.mubr.bf16.mxu0 %v4054_v58  ;;  %v5823_v26 = vld [vmem:[#allocation2 + $0xd8] sm:$0xf]  ;;  %v9434_v58 = vld [vmem:[%s13711_s5 + $0x1f0] sm:$0xff]  }
 0x3b6   :  { %8786 = vmatpush3.bf16.msra.mxu1 %v12876_v8  ;;  %8753 = vmatprep.mubr.bf16.mxu1 %v5994_v34  ;;  %v5927_v8 = vcombine.low %v5809_v29, %v5810_v42  ;;  %v4344_v42 = vld [vmem:[#allocation2 + $0x58] sm:$0xf]  ;;  %v5937_v30 = vcombine.low %v5907_v28, %v5823_v26  ;;  %v5824_v34 = vld [vmem:[#allocation2 + $0x100] sm:$0xff]  ;;  %v5936_v29 = vcombine.low %v5821_v57, %v5822_v37 }
 0x3b7   :  { %8787 = vmatprep.subr.bf16.mxu1 %v9404_v21  ;;  %v5999_v17 = vpack.c.bf16 %v5935_v48, %v5934_v7  ;;  %v5908_v32 = vcombine.high %v5824_v34, %v5824_v34  ;;  %v5839_v37 = vld [vmem:[#allocation2 + $0x178] sm:$0xf]  ;;  %v5841_v7 = vld [vmem:[#allocation2 + $0x188] sm:$0xf] }
 0x3b8   :  { %v5995_v46 = vpack.c.bf16 %v5927_v8, %v5926_v12  ;;  %v6000_v27 = vpack.c.bf16 %v5937_v30, %v5936_v29  ;;  %v5909_v12 = vcombine.high %v5826_v41, %v5826_v41  ;;  %v5830_v8 = vld [vmem:[#allocation2 + $0x130] sm:$0xff] }
 0x3b9   :  { %v5938_v25 = vcombine.low %v5824_v34, %v5908_v32  ;;  %v6290_v32 = vld [vmem:[#allocation2 + $0x31] sm:$0xff] }
 0x3ba   :  { %8788 = vmatpush3.bf16.msra.mxu1 %v9404_v21  ;;  %v4462_v21 = vcombine.low %v4344_v42, %v9537_v59  ;;  %v6385_v62 = vcombine.high %v6290_v32, %v6290_v32 }
 0x3bb   :  { %8789 = vmatprep.subr.bf16.mxu1 %v9414_v4 }
 0x3bc   :  { %8574 = vmatmul.mubr.bf16.gmra.mrb[132].mxu0 %v4055_v61  ;;  %v4530_v9 = vpack.c.bf16 %v4462_v21, %v4461_v52  ;;  %v6001_v61 = vpack.c.bf16 %v5939_v15, %v5938_v25  ;;  %v6288_v21 = vld [vmem:[#allocation2 + $0x21] sm:$0xff]  ;;  %v6291_v15 = vld [vmem:[#allocation2 + $0x39] sm:$0xf] }
 0x3bd   :  { %8754 = vmatmul.mubr.bf16.gmra.mrb[32].mxu1 %v5995_v46  ;;  %8593 = vmatprep.mubr.bf16.mxu0 %v4527_v60  ;;  %v5911_v46 = vcombine.high %v5830_v8, %v5830_v8  ;;  %v6384_v41 = vcombine.high %v6288_v21, %v6288_v21  ;;  %v6410_v19 = vcombine.low %v6385_v62, %v6291_v15  ;;  %v9483_v62 = vld [vmem:[%s13711_s5 + $0x238] sm:$0xff]  }
 0x3be   :  { %8757 = vmatprep.mubr.bf16.mxu1 %v5996_v44  ;;  %8790 = vmatpush3.bf16.msra.mxu1 %v9414_v4  ;;  %v5827_v4 = vld [vmem:[#allocation2 + $0x118] sm:$0xf] }
 0x3bf   :  { %8791 = vmatprep.subr.bf16.mxu1 %v9419_v0  ;;  %v5940_v49 = vcombine.low %v5909_v12, %v5827_v4  ;;  %v5831_v44 = vld [vmem:[#allocation2 + $0x138] sm:$0xf] }
 0x3c0   :  { %v5943_v14 = vcombine.low %v5911_v46, %v5831_v44  ;;  %v6295_v46 = vld [vmem:[#allocation2 + $0x59] sm:$0xf]  ;;  %v6298_v44 = vld [vmem:[#allocation2 + $0x71] sm:$0xff] }
 0x3c1   :  { %v6002_v60 = vpack.c.bf16 %v5941_v16, %v5940_v49  ;;  %v6389_v63 = vcombine.high %v6298_v44, %v6298_v44 }
 0x3c2   :  { %8792 = vmatpush3.bf16.msra.mxu1 %v9419_v0  ;;  %v5829_v0 = vld [vmem:[#allocation2 + $0x128] sm:$0xf] }
 0x3c3   :  { %8793 = vmatprep.subr.bf16.mxu1 %v9424_v24  ;;  %v5942_v3 = vcombine.low %v5829_v0, %v5830_v8  ;;  %v6387_v8 = vcombine.high %v6294_v11, %v6294_v11  ;;  %v6293_v0 = vld [vmem:[#allocation2 + $0x49] sm:$0xf] }
 0x3c4   :  { %8594 = vmatmul.mubr.bf16.vlgmr.msra.gmra.mrb[100].mxu0 %v4528_v33  ;;  %v5949_v33 = vcombine.low %v5915_v18, %v5839_v37  ;;  %v6412_v43 = vcombine.low %v6293_v0, %v6294_v11 }
 0x3c5   :  { %8758 = vmatmul.mubr.bf16.gmra.mrb[0].mxu1 %v5997_v23  ;;  %8597 = vmatprep.mubr.bf16.mxu0 %v4529_v56  ;;  %v6003_v6 = vpack.c.bf16 %v5943_v14, %v5942_v3  ;;  %v5842_v23 = vld [vmem:[#allocation2 + $0x190] sm:$0xff]  ;;  %v5844_v56 = vld [vmem:[#allocation2 + $0x1a0] sm:$0xff]  ;;  %v9451_v3 = vld [vmem:[%s13711_s5 + $0x208] sm:$0xff]  }
 0x3c6   :  { %8761 = vmatprep.mubr.bf16.mxu1 %v5998_v10  ;;  %8794 = vmatpush3.bf16.msra.mxu1 %v9424_v24  ;;  %v5914_v24 = vcombine.high %v5836_v40, %v5836_v40  ;;  %v6006_v10 = vpack.c.bf16 %v5949_v33, %v5948_v1  ;;  %v5917_v28 = vcombine.high %v5842_v23, %v5842_v23  ;;  %v6300_v14 = vld [vmem:[#allocation2 + $0x81] sm:$0xff] }
 0x3c7   :  { %8795 = vmatprep.subr.bf16.mxu1 %v9429_v55  ;;  %v5918_v42 = vcombine.high %v5844_v56, %v5844_v56  ;;  %v5951_v59 = vcombine.low %v5841_v7, %v5842_v23  ;;  %v6390_v47 = vcombine.high %v6300_v14, %v6300_v14  ;;  %v6392_v23 = vcombine.high %v6304_v31, %v6304_v31  ;;  %v6310_v7 = vld [vmem:[#allocation2 + $0xd1] sm:$0xff] }
 0x3c8   :  { %v5947_v22 = vcombine.low %v5836_v40, %v5914_v24  ;;  %v5952_v48 = vcombine.low %v5917_v28, %v5843_v51  ;;  %v6388_v40 = vcombine.high %v6296_v13, %v6296_v13  ;;  %v6299_v24 = vld [vmem:[#allocation2 + $0x79] sm:$0xf]  ;;  %v6301_v28 = vld [vmem:[#allocation2 + $0x89] sm:$0xf] }
 0x3c9   :  { %v5953_v26 = vcombine.low %v5844_v56, %v5918_v42  ;;  %v6416_v18 = vcombine.low %v6389_v63, %v6299_v24  ;;  %v6417_v54 = vcombine.low %v6300_v14, %v6390_v47  ;;  %v6303_v56 = vld [vmem:[#allocation2 + $0x99] sm:$0xf]  ;;  %v6420_v42 = vcombine.low %v6304_v31, %v6392_v23  ;;  %v6322_v47 = vld [vmem:[#allocation2 + $0x151] sm:$0xff] }
 0x3ca   :  { %8796 = vmatpush3.bf16.msra.mxu1 %v9429_v55  ;;  %v6005_v35 = vpack.c.bf16 %v5947_v22, %v5946_v53  ;;  %v5916_v55 = vcombine.high %v5840_v38, %v5840_v38  ;;  %v6414_v20 = vcombine.low %v6296_v13, %v6388_v40  ;;  %v6302_v53 = vld [vmem:[#allocation2 + $0x91] sm:$0xff] }
 0x3cb   :  { %8797 = vmatprep.subr.bf16.mxu1 %v9434_v58  ;;  %v6008_v57 = vpack.c.bf16 %v5953_v26, %v5952_v48  ;;  %v6391_v33 = vcombine.high %v6302_v53, %v6302_v53  ;;  %v6418_v51 = vcombine.low %v6301_v28, %v6302_v53  ;;  %v6318_v13 = vld [vmem:[#allocation2 + $0x131] sm:$0xff]  ;;  %v6332_v28 = vld [vmem:[#allocation2 + $0x1a1] sm:$0xff] }
 0x3cc   :  { %8598 = vmatmul.mubr.bf16.gmra.mrb[104].mxu0 %v4530_v9  ;;  %v5950_v52 = vcombine.low %v5840_v38, %v5916_v55  ;;  %v5847_v9 = vld [vmem:[#allocation2 + $0x1b8] sm:$0xf]  ;;  %v6484_v38 = vpack.c.bf16 %v6417_v54, %v6416_v18 }
 0x3cd   :  { %8762 = vmatmul.mubr.bf16.gmra.mrb[4].mxu1 %v5999_v17  ;;  %v6289_v17 = vld [vmem:[#allocation2 + $0x29] sm:$0xf]  ;;  %v6419_v1 = vcombine.low %v6391_v33, %v6303_v56  ;;  %v6306_v55 = vld [vmem:[#allocation2 + $0xb1] sm:$0xff] }
 0x3ce   :  { %8765 = vmatprep.mubr.bf16.mxu1 %v6000_v27  ;;  %8798 = vmatpush3.bf16.msra.mxu1 %v9434_v58  ;;  %v5846_v58 = vld [vmem:[#allocation2 + $0x1b0] sm:$0xff]  ;;  %v6007_v30 = vpack.c.bf16 %v5951_v59, %v5950_v52  ;;  %v6292_v27 = vld [vmem:[#allocation2 + $0x41] sm:$0xff]  ;;  %v6409_v25 = vcombine.low %v6289_v17, %v6290_v32  ;;  %v6325_v56 = vld [vmem:[#allocation2 + $0x169] sm:$0xf] }
 0x3cf   :  { %8799 = vmatprep.subr.bf16.mxu1 %v9439_v5  ;;  %v5919_v34 = vcombine.high %v5846_v58, %v5846_v58  ;;  %v5954_v12 = vcombine.low %v5845_v36, %v5846_v58  ;;  %v6386_v49 = vcombine.high %v6292_v27, %v6292_v27  ;;  %v6308_v52 = vld [vmem:[#allocation2 + $0xc1] sm:$0xff]  ;;  %v6485_v26 = vpack.c.bf16 %v6419_v1, %v6418_v51  ;;  %v6326_v18 = vld [vmem:[#allocation2 + $0x171] sm:$0xff]  ;;  %v6327_v1 = vld [vmem:[#allocation2 + $0x179] sm:$0xf] }
 0x3d0   :  { %v6393_v58 = vcombine.high %v6306_v55, %v6306_v55  ;;  %v6394_v59 = vcombine.high %v6308_v52, %v6308_v52  ;;  %v6312_v32 = vld [vmem:[#allocation2 + $0x101] sm:$0xff]  ;;  %v6403_v33 = vcombine.high %v6326_v18, %v6326_v18 }
 0x3d1   :  { %v5955_v29 = vcombine.low %v5919_v34, %v5847_v9  ;;  %v6395_v34 = vcombine.high %v6310_v7, %v6310_v7  ;;  %v6311_v9 = vld [vmem:[#allocation2 + $0xd9] sm:$0xf] }
 0x3d2   :  { %8800 = vmatpush3.bf16.msra.mxu1 %v9439_v5  ;;  %v6408_v5 = vcombine.low %v6288_v21, %v6384_v41  ;;  %v9473_v21 = vld [vmem:[%s13711_s5 + $0x228] sm:$0xff]   ;;  %v6423_v36 = vcombine.low %v6308_v52, %v6394_v59  ;;  %v6331_v59 = vld [vmem:[#allocation2 + $0x199] sm:$0xf] }
 0x3d3   :  { %8837 = vmatprep.subr.bf16.mxu1 %v13056_v39  ;;  %v6009_v4 = vpack.c.bf16 %v5955_v29, %v5954_v12  ;;  %v9478_v29 = vld [vmem:[%s13711_s5 + $0x230] sm:$0xff]   ;;  %v6425_v17 = vcombine.low %v6395_v34, %v6311_v9  ;;  %v6316_v12 = vld [vmem:[#allocation2 + $0x121] sm:$0xff] }
 0x3d4   :  { %v6480_v16 = vpack.c.bf16 %v6409_v25, %v6408_v5  ;;  %v6309_v5 = vld [vmem:[#allocation2 + $0xc9] sm:$0xf] }
 0x3d5   :  { %8766 = vmatmul.mubr.bf16.gmra.mrb[8].mxu1 %v6001_v61  ;;  %v6411_v61 = vcombine.low %v6292_v27, %v6386_v49  ;;  %v6314_v27 = vld [vmem:[#allocation2 + $0x111] sm:$0xff]  ;;  %v6424_v11 = vcombine.low %v6309_v5, %v6310_v7  ;;  %v6333_v5 = vld [vmem:[#allocation2 + $0x1a9] sm:$0xf] }
 0x3d6   :  { %8769 = vmatprep.mubr.bf16.mxu1 %v6002_v60  ;;  %v6413_v60 = vcombine.low %v6387_v8, %v6295_v46  ;;  %v6398_v8 = vcombine.high %v6316_v12, %v6316_v12 }
 0x3d7   :  { %v6481_v45 = vpack.c.bf16 %v6411_v61, %v6410_v19  ;;  %v6488_v49 = vpack.c.bf16 %v6425_v17, %v6424_v11  ;;  %v6315_v19 = vld [vmem:[#allocation2 + $0x119] sm:$0xf]  ;;  %v6313_v61 = vld [vmem:[#allocation2 + $0x109] sm:$0xf] }
 0x3d8   :  { %v6482_v2 = vpack.c.bf16 %v6413_v60, %v6412_v43  ;;  %v6429_v60 = vcombine.low %v6316_v12, %v6398_v8  ;;  %v6427_v0 = vcombine.low %v6313_v61, %v6314_v27  ;;  %v6399_v43 = vcombine.high %v6318_v13, %v6318_v13  ;;  %v6777_v11 = vld [vmem:[#allocation2 + $0x2a] sm:$0xf] }
 0x3dd   :  { %8770 = vmatmul.mubr.bf16.gmra.mrb[12].mxu1 %v6003_v6  ;;  %v6297_v6 = vld [vmem:[#allocation2 + $0x69] sm:$0xf] }
 0x3de   :  { %8773 = vmatprep.mubr.bf16.mxu1 %v6004_v50  ;;  %v9458_v50 = vld [vmem:[%s13711_s5 + $0x210] sm:$0xff]   ;;  %v6415_v22 = vcombine.low %v6297_v6, %v6298_v44  ;;  %v6320_v44 = vld [vmem:[#allocation2 + $0x141] sm:$0xff] }
 0x3df   :  { %v6400_v40 = vcombine.high %v6320_v44, %v6320_v44 }
 0x3e0   :  { %v6483_v37 = vpack.c.bf16 %v6415_v22, %v6414_v20  ;;  %v6324_v20 = vld [vmem:[#allocation2 + $0x161] sm:$0xff]  ;;  %v6401_v22 = vcombine.high %v6322_v47, %v6322_v47 }
 0x3e1   :  { %v6432_v6 = vcombine.low %v6320_v44, %v6400_v40  ;;  %v6402_v31 = vcombine.high %v6324_v20, %v6324_v20  ;;  %v6781_v40 = vld [vmem:[#allocation2 + $0x4a] sm:$0xf] }
 0x3e3   :  { %v6435_v23 = vcombine.low %v6324_v20, %v6402_v31 }
 0x3e5   :  { %8774 = vmatmul.mubr.bf16.gmra.mrb[16].mxu1 %v6005_v35  ;;  %v6305_v35 = vld [vmem:[#allocation2 + $0xa9] sm:$0xf] }
 0x3e6   :  { %8777 = vmatprep.mubr.bf16.mxu1 %v6006_v10  ;;  %v9468_v10 = vld [vmem:[%s13711_s5 + $0x220] sm:$0xff]   ;;  %v6421_v48 = vcombine.low %v6305_v35, %v6306_v55  ;;  %v6437_v35 = vcombine.low %v6403_v33, %v6327_v1 }
 0x3e7   :  { %v6328_v55 = vld [vmem:[#allocation2 + $0x181] sm:$0xff] }
 0x3e8   :  { %v6404_v51 = vcombine.high %v6328_v55, %v6328_v55 }
 0x3ed   :  { %8778 = vmatmul.mubr.bf16.gmra.mrb[20].mxu1 %v6007_v30  ;;  %v6486_v30 = vpack.c.bf16 %v6421_v48, %v6420_v42  ;;  %v6436_v42 = vcombine.low %v6325_v56, %v6326_v18  ;;  %v6785_v18 = vld [vmem:[#allocation2 + $0x6a] sm:$0xf] }
 0x3ee   :  { %8781 = vmatprep.mubr.bf16.mxu1 %v6008_v57  ;;  %v6307_v57 = vld [vmem:[#allocation2 + $0xb9] sm:$0xf] }
 0x3ef   :  { %v6422_v41 = vcombine.low %v6393_v58, %v6307_v57  ;;  %v6494_v7 = vpack.c.bf16 %v6437_v35, %v6436_v42  ;;  %v6438_v58 = vcombine.low %v6328_v55, %v6404_v51  ;;  %v6334_v57 = vld [vmem:[#allocation2 + $0x1b1] sm:$0xff]  ;;  %v6791_v35 = vld [vmem:[#allocation2 + $0x9a] sm:$0xf]  ;;  %v6789_v42 = vld [vmem:[#allocation2 + $0x8a] sm:$0xf] }
 0x3f0   :  { %v6796_v51 = vld [vmem:[#allocation2 + $0xc2] sm:$0xff] }
 0x3f1   :  { %v6487_v25 = vpack.c.bf16 %v6423_v36, %v6422_v41  ;;  %v6776_v36 = vld [vmem:[#allocation2 + $0x22] sm:$0xff] }
 0x3f5   :  { %8782 = vmatmul.mubr.bf16.gmra.mrb[24].mxu1 %v6009_v4  ;;  %v6396_v4 = vcombine.high %v6312_v32, %v6312_v32 }
 0x3f6   :  { %8801 = vmatprep.mubr.bf16.mxu1 %v6480_v16  ;;  %v6397_v16 = vcombine.high %v6314_v27, %v6314_v27  ;;  %v6335_v27 = vld [vmem:[#allocation2 + $0x1b9] sm:$0xf] }
 0x3f7   :  { %v6426_v15 = vcombine.low %v6312_v32, %v6396_v4  ;;  %v6872_v32 = vcombine.high %v6776_v36, %v6776_v36 }
 0x3f8   :  { %v6428_v46 = vcombine.low %v6397_v16, %v6315_v19  ;;  %v6782_v16 = vld [vmem:[#allocation2 + $0x52] sm:$0xff] }
 0x3f9   :  { %v6489_v14 = vpack.c.bf16 %v6427_v0, %v6426_v15  ;;  %v6896_v4 = vcombine.low %v6776_v36, %v6872_v32  ;;  %v6797_v32 = vld [vmem:[#allocation2 + $0xca] sm:$0xf] }
 0x3fd   :  { %8802 = vmatmul.mubr.bf16.vlgmr.msra.gmra.mrb[28].mxu1 %v6481_v45  ;;  %v6490_v45 = vpack.c.bf16 %v6429_v60, %v6428_v46  ;;  %v6875_v60 = vcombine.high %v6782_v16, %v6782_v16 }
 0x3fe   :  { %8838 = vmatpush3.bf16.msra.mxu1 %v13056_v39  ;;  %8805 = vmatprep.mubr.bf16.mxu1 %v6482_v2  ;;  %v9463_v39 = vld [vmem:[%s13711_s5 + $0x218] sm:$0xff]  }
 0x3ff   :  { %8839 = vmatprep.subr.bf16.mxu1 %v9451_v3  ;;  %v6319_v2 = vld [vmem:[#allocation2 + $0x139] sm:$0xf] }
 0x400   :  { %v6431_v63 = vcombine.low %v6399_v43, %v6319_v2  ;;  %v6788_v2 = vld [vmem:[#allocation2 + $0x82] sm:$0xff] }
 0x402   :  { %8840 = vmatpush3.bf16.msra.mxu1 %v9451_v3  ;;  %v6317_v3 = vld [vmem:[#allocation2 + $0x129] sm:$0xf] }
 0x403   :  { %8841 = vmatprep.subr.bf16.mxu1 %v9458_v50  ;;  %v6430_v24 = vcombine.low %v6317_v3, %v6318_v13  ;;  %v6779_v13 = vld [vmem:[#allocation2 + $0x3a] sm:$0xf]  ;;  %v6786_v3 = vld [vmem:[#allocation2 + $0x72] sm:$0xff] }
 0x404   :  { %v6903_v33 = vcombine.low %v6785_v18, %v6786_v3 }
 0x405   :  { %8806 = vmatmul.mubr.bf16.gmra.mrb[32].mxu1 %v6483_v37  ;;  %v6491_v53 = vpack.c.bf16 %v6431_v63, %v6430_v24  ;;  %v6900_v63 = vcombine.low %v6781_v40, %v6782_v16  ;;  %v6877_v24 = vcombine.high %v6786_v3, %v6786_v3 }
 0x406   :  { %8809 = vmatprep.mubr.bf16.mxu1 %v6484_v38  ;;  %8842 = vmatpush3.bf16.msra.mxu1 %v9458_v50  ;;  %v6321_v50 = vld [vmem:[#allocation2 + $0x149] sm:$0xf] }
 0x407   :  { %8843 = vmatprep.subr.bf16.mxu1 %v9463_v39  ;;  %v6433_v54 = vcombine.low %v6321_v50, %v6322_v47  ;;  %v6878_v50 = vcombine.high %v6788_v2, %v6788_v2 }
 0x409   :  { %v6492_v37 = vpack.c.bf16 %v6433_v54, %v6432_v6  ;;  %v6905_v31 = vcombine.low %v6788_v2, %v6878_v50 }
 0x40a   :  { %8844 = vmatpush3.bf16.msra.mxu1 %v9463_v39  ;;  %v6323_v39 = vld [vmem:[#allocation2 + $0x159] sm:$0xf] }
 0x40b   :  { %8845 = vmatprep.subr.bf16.mxu1 %v9468_v10  ;;  %v6434_v38 = vcombine.low %v6401_v22, %v6323_v39  ;;  %v6792_v39 = vld [vmem:[#allocation2 + $0xa2] sm:$0xff] }
 0x40c   :  { %v6880_v1 = vcombine.high %v6792_v39, %v6792_v39 }
 0x40d   :  { %8810 = vmatmul.mubr.bf16.gmra.mrb[0].mxu1 %v6485_v26  ;;  %v6493_v52 = vpack.c.bf16 %v6435_v23, %v6434_v38  ;;  %v6406_v26 = vcombine.high %v6332_v28, %v6332_v28 }
 0x40e   :  { %8813 = vmatprep.mubr.bf16.mxu1 %v6486_v30  ;;  %8846 = vmatpush3.bf16.msra.mxu1 %v9468_v10  ;;  %v6330_v10 = vld [vmem:[#allocation2 + $0x191] sm:$0xff] }
 0x40f   :  { %8847 = vmatprep.subr.bf16.mxu1 %v9473_v21  ;;  %v6405_v48 = vcombine.high %v6330_v10, %v6330_v10  ;;  %v6441_v34 = vcombine.low %v6332_v28, %v6406_v26  ;;  %v6794_v28 = vld [vmem:[#allocation2 + $0xb2] sm:$0xff] }
 0x411   :  { %v6440_v30 = vcombine.low %v6405_v48, %v6331_v59  ;;  %v6798_v48 = vld [vmem:[#allocation2 + $0xd2] sm:$0xff]  ;;  %v6881_v59 = vcombine.high %v6794_v28, %v6794_v28 }
 0x412   :  { %8848 = vmatpush3.bf16.msra.mxu1 %v9473_v21  ;;  %v6329_v21 = vld [vmem:[#allocation2 + $0x189] sm:$0xf] }
 0x413   :  { %8849 = vmatprep.subr.bf16.mxu1 %v9478_v29  ;;  %v6439_v41 = vcombine.low %v6329_v21, %v6330_v10  ;;  %v6496_v17 = vpack.c.bf16 %v6441_v34, %v6440_v30  ;;  %v6793_v10 = vld [vmem:[#allocation2 + $0xaa] sm:$0xf]  ;;  %v6882_v21 = vcombine.high %v6796_v51, %v6796_v51  ;;  %v6883_v34 = vcombine.high %v6798_v48, %v6798_v48 }
 0x414   :  { %v6909_v26 = vcombine.low %v6793_v10, %v6794_v28 }
 0x415   :  { %8814 = vmatmul.mubr.bf16.gmra.mrb[4].mxu1 %v6487_v25  ;;  %v6495_v9 = vpack.c.bf16 %v6439_v41, %v6438_v58  ;;  %v6778_v25 = vld [vmem:[#allocation2 + $0x32] sm:$0xff]  ;;  %v6911_v36 = vcombine.low %v6796_v51, %v6882_v21  ;;  %v6815_v51 = vld [vmem:[#allocation2 + $0x17a] sm:$0xf]  ;;  %v6820_v21 = vld [vmem:[#allocation2 + $0x1a2] sm:$0xff] }
 0x416   :  { %8817 = vmatprep.mubr.bf16.mxu1 %v6488_v49  ;;  %8850 = vmatpush3.bf16.msra.mxu1 %v9478_v29  ;;  %v6407_v29 = vcombine.high %v6334_v57, %v6334_v57  ;;  %v6442_v49 = vcombine.low %v6333_v5, %v6334_v57  ;;  %v6897_v8 = vcombine.low %v6777_v11, %v6778_v25  ;;  %v6795_v57 = vld [vmem:[#allocation2 + $0xba] sm:$0xf]  ;;  %v6802_v5 = vld [vmem:[#allocation2 + $0x112] sm:$0xff] }
 0x417   :  { %8851 = vmatprep.subr.bf16.mxu1 %v9483_v62  ;;  %v6873_v19 = vcombine.high %v6778_v25, %v6778_v25  ;;  %v6910_v41 = vcombine.low %v6881_v59, %v6795_v57  ;;  %v6818_v59 = vld [vmem:[#allocation2 + $0x192] sm:$0xff] }
 0x418   :  { %v6443_v12 = vcombine.low %v6407_v29, %v6335_v27  ;;  %v6968_v46 = vpack.c.bf16 %v6897_v8, %v6896_v4  ;;  %v6804_v27 = vld [vmem:[#allocation2 + $0x122] sm:$0xff] }
 0x419   :  { %v6898_v0 = vcombine.low %v6873_v19, %v6779_v13  ;;  %v6975_v11 = vpack.c.bf16 %v6911_v36, %v6910_v41  ;;  %v6806_v13 = vld [vmem:[#allocation2 + $0x132] sm:$0xff] }
 0x41a   :  { %8852 = vmatpush3.bf16.msra.mxu1 %v9483_v62  ;;  %v6780_v62 = vld [vmem:[#allocation2 + $0x42] sm:$0xff]  ;;  %v6497_v15 = vpack.c.bf16 %v6443_v12, %v6442_v49  ;;  %v6912_v12 = vcombine.low %v6797_v32, %v6798_v48  ;;  %v6886_v49 = vcombine.high %v6804_v27, %v6804_v27  ;;  %v6887_v40 = vcombine.high %v6806_v13, %v6806_v13 }
 0x41b   :  { %v6874_v61 = vcombine.high %v6780_v62, %v6780_v62 }
 0x41d   :  { %8818 = vmatmul.mubr.bf16.gmra.mrb[8].mxu1 %v6489_v14  ;;  %v6899_v44 = vcombine.low %v6780_v62, %v6874_v61  ;;  %v6783_v14 = vld [vmem:[#allocation2 + $0x5a] sm:$0xf]  ;;  %v6885_v62 = vcombine.high %v6802_v5, %v6802_v5  ;;  %v6801_v61 = vld [vmem:[#allocation2 + $0x10a] sm:$0xf] }
 0x41e   :  { %8821 = vmatprep.mubr.bf16.mxu1 %v6490_v45  ;;  %v6901_v43 = vcombine.low %v6875_v60, %v6783_v14  ;;  %v6784_v45 = vld [vmem:[#allocation2 + $0x62] sm:$0xff]  ;;  %v6917_v60 = vcombine.low %v6804_v27, %v6886_v49 }
 0x41f   :  { %v6969_v47 = vpack.c.bf16 %v6899_v44, %v6898_v0  ;;  %v6876_v6 = vcombine.high %v6784_v45, %v6784_v45  ;;  %v6915_v44 = vcombine.low %v6801_v61, %v6802_v5  ;;  %v6808_v14 = vld [vmem:[#allocation2 + $0x142] sm:$0xff]  ;;  %v6819_v5 = vld [vmem:[#allocation2 + $0x19a] sm:$0xf] }
 0x420   :  { %v6970_v20 = vpack.c.bf16 %v6901_v43, %v6900_v63  ;;  %v6888_v2 = vcombine.high %v6808_v14, %v6808_v14  ;;  %v6805_v63 = vld [vmem:[#allocation2 + $0x12a] sm:$0xf] }
 0x421   :  { %v6902_v54 = vcombine.low %v6784_v45, %v6876_v6 }
 0x422   :  { %v6920_v18 = vcombine.low %v6808_v14, %v6888_v2 }
 0x423   :  { %v6971_v38 = vpack.c.bf16 %v6903_v33, %v6902_v54  ;;  %v6812_v54 = vld [vmem:[#allocation2 + $0x162] sm:$0xff] }
 0x425   :  { %8822 = vmatmul.mubr.bf16.gmra.mrb[12].mxu1 %v6491_v53  ;;  %v6787_v53 = vld [vmem:[#allocation2 + $0x7a] sm:$0xf] }
 0x426   :  { %8825 = vmatprep.mubr.bf16.mxu1 %v6492_v37  ;;  %v6904_v22 = vcombine.low %v6877_v24, %v6787_v53  ;;  %v6790_v37 = vld [vmem:[#allocation2 + $0x92] sm:$0xff] }
 0x427   :  { %v6879_v23 = vcombine.high %v6790_v37, %v6790_v37  ;;  %v6810_v24 = vld [vmem:[#allocation2 + $0x152] sm:$0xff] }
 0x428   :  { %v6972_v56 = vpack.c.bf16 %v6905_v31, %v6904_v22  ;;  %v6918_v22 = vcombine.low %v6805_v63, %v6806_v13  ;;  %v6809_v31 = vld [vmem:[#allocation2 + $0x14a] sm:$0xf]  ;;  %v6823_v13 = vld [vmem:[#allocation2 + $0x1ba] sm:$0xf] }
 0x429   :  { %v6907_v55 = vcombine.low %v6879_v23, %v6791_v35  ;;  %v6889_v23 = vcombine.high %v6810_v24, %v6810_v24 }
 0x42d   :  { %8826 = vmatmul.mubr.bf16.gmra.mrb[16].mxu1 %v6493_v52  ;;  %v6908_v52 = vcombine.low %v6792_v39, %v6880_v1  ;;  %v6921_v39 = vcombine.low %v6809_v31, %v6810_v24 }
 0x42e   :  { %8829 = vmatprep.mubr.bf16.mxu1 %v6494_v7  ;;  %v6906_v7 = vcombine.low %v6789_v42, %v6790_v37  ;;  %v6814_v37 = vld [vmem:[#allocation2 + $0x172] sm:$0xff] }
 0x42f   :  { %v6974_v30 = vpack.c.bf16 %v6909_v26, %v6908_v52  ;;  %v6980_v1 = vpack.c.bf16 %v6921_v39, %v6920_v18  ;;  %v6891_v35 = vcombine.high %v6814_v37, %v6814_v37  ;;  %v6813_v52 = vld [vmem:[#allocation2 + $0x16a] sm:$0xf]  ;;  %v6816_v26 = vld [vmem:[#allocation2 + $0x182] sm:$0xff] }
 0x430   :  { %v6973_v58 = vpack.c.bf16 %v6907_v55, %v6906_v7  ;;  %v6811_v55 = vld [vmem:[#allocation2 + $0x15a] sm:$0xf]  ;;  %v6892_v41 = vcombine.high %v6816_v26, %v6816_v26 }
 0x431   :  { %v6922_v28 = vcombine.low %v6889_v23, %v6811_v55  ;;  %v6925_v48 = vcombine.low %v6891_v35, %v6815_v51  ;;  %v13140_v51 = vld [vmem:[%s13712_s6] ss:$0 sm:$0xff] }
 0x432   :  { %v6926_v32 = vcombine.low %v6816_v26, %v6892_v41 }
 0x435   :  { %8830 = vmatmul.mubr.bf16.gmra.mrb[20].mxu1 %v6495_v9  ;;  %v6799_v9 = vld [vmem:[#allocation2 + $0xda] sm:$0xf] }
 0x436   :  { %8833 = vmatprep.mubr.bf16.mxu1 %v6496_v17  ;;  %v6913_v29 = vcombine.low %v6883_v34, %v6799_v9  ;;  %v6800_v17 = vld [vmem:[#allocation2 + $0x102] sm:$0xff]  ;;  %v6924_v34 = vcombine.low %v6813_v52, %v6814_v37  ;;  %v6893_v9 = vcombine.high %v6818_v59, %v6818_v59 }
 0x437   :  { %v6884_v25 = vcombine.high %v6800_v17, %v6800_v17 }
 0x438   :  { %v6976_v4 = vpack.c.bf16 %v6913_v29, %v6912_v12  ;;  %v6982_v36 = vpack.c.bf16 %v6925_v48, %v6924_v34  ;;  %v6894_v29 = vcombine.high %v6820_v21, %v6820_v21  ;;  %v6817_v12 = vld [vmem:[#allocation2 + $0x18a] sm:$0xf] }
 0x439   :  { %v6914_v8 = vcombine.low %v6800_v17, %v6884_v25  ;;  %v6927_v49 = vcombine.low %v6817_v12, %v6818_v59 }
 0x43a   :  { %v6929_v25 = vcombine.low %v6820_v21, %v6894_v29 }
 0x43b   :  { %v6977_v45 = vpack.c.bf16 %v6915_v44, %v6914_v8 }
 0x43d   :  { %8834 = vmatmul.mubr.bf16.gmra.mrb[24].mxu1 %v6497_v15  ;;  %v6803_v15 = vld [vmem:[#allocation2 + $0x11a] sm:$0xf] }
 0x43e   :  { %8853 = vmatprep.mubr.bf16.mxu1 %v6968_v46  ;;  %v6916_v46 = vcombine.low %v6885_v62, %v6803_v15  ;;  %v6983_v15 = vpack.c.bf16 %v6927_v49, %v6926_v32 }
 0x440   :  { %v6978_v3 = vpack.c.bf16 %v6917_v60, %v6916_v46  ;;  %v6821_v60 = vld [vmem:[#allocation2 + $0x1aa] sm:$0xf] }
 0x445   :  { %8854 = vmatmul.mubr.bf16.vlgmr.msra.gmra.mrb[28].mxu1 %v6969_v47  ;;  %v6807_v47 = vld [vmem:[#allocation2 + $0x13a] sm:$0xf] }
 0x446   :  { %8857 = vmatprep.mubr.bf16.mxu1 %v6970_v20  ;;  %v6919_v20 = vcombine.low %v6887_v40, %v6807_v47 }
 0x44d   :  { %8858 = vmatmul.mubr.bf16.gmra.mrb[32].mxu1 %v6971_v38  ;;  %v6979_v38 = vpack.c.bf16 %v6919_v20, %v6918_v22 }
 0x44e   :  { %8861 = vmatprep.mubr.bf16.mxu1 %v6972_v56  ;;  %v6890_v56 = vcombine.high %v6812_v54, %v6812_v54 }
 0x450   :  { %v6923_v42 = vcombine.low %v6812_v54, %v6890_v56 }
 0x452   :  { %v6981_v57 = vpack.c.bf16 %v6923_v42, %v6922_v28 }
 0x455   :  { %8862 = vmatmul.mubr.bf16.gmra.mrb[0].mxu1 %v6973_v58 }
 0x456   :  { %8865 = vmatprep.mubr.bf16.mxu1 %v6974_v30 }
 0x45d   :  { %8866 = vmatmul.mubr.bf16.gmra.mrb[4].mxu1 %v6975_v11  ;;  %v6928_v11 = vcombine.low %v6893_v9, %v6819_v5 }
 0x45e   :  { %8869 = vmatprep.mubr.bf16.mxu1 %v6976_v4  ;;  %v6822_v4 = vld [vmem:[#allocation2 + $0x1b2] sm:$0xff] }
 0x45f   :  { %v13081_v16 = vpop.f32.mrb[108].mxu0  ;;  %v6895_v61 = vcombine.high %v6822_v4, %v6822_v4  ;;  %v6984_v46 = vpack.c.bf16 %v6929_v25, %v6928_v11 }
 0x460   :  { %v13083_v19 = vpop.f32.mrb[109].mxu0 }
 0x461   :  { %v13085_v0 = vpop.f32.mrb[110].mxu0  ;;  %v6931_v14 = vcombine.low %v6895_v61, %v6823_v13 }
 0x462   :  { %v13087_v43 = vpop.f32.mrb[111].mxu0 }
 0x465   :  { %8870 = vmatmul.mubr.bf16.gmra.mrb[8].mxu1 %v6977_v45 }
 0x466   :  { %8873 = vmatprep.mubr.bf16.mxu1 %v6978_v3  ;;  %v6930_v3 = vcombine.low %v6821_v60, %v6822_v4 }
 0x467   :  { %v13089_v6 = vpop.f32.mrb[112].mxu0 }
 0x468   :  { %v13091_v50 = vpop.f32.mrb[113].mxu0  ;;  %v6985_v63 = vpack.c.bf16 %v6931_v14, %v6930_v3 }
 0x469   :  { %v13093_v53 = vpop.f32.mrb[114].mxu0 }
 0x46a   :  { %v13095_v33 = vpop.f32.mrb[115].mxu0 }
 0x46d   :  { %8874 = vmatmul.mubr.bf16.gmra.mrb[12].mxu1 %v6979_v38 }
 0x46e   :  { %8877 = vmatprep.mubr.bf16.mxu1 %v6980_v1 }
 0x46f   :  { %v13097_v10 = vpop.f32.mrb[116].mxu0 }
 0x470   :  { %v13099_v7 = vpop.f32.mrb[117].mxu0 }
 0x471   :  { %v13101_v58 = vpop.f32.mrb[118].mxu0 }
 0x472   :  { %v13103_v30 = vpop.f32.mrb[119].mxu0 }
 0x475   :  { %8878 = vmatmul.mubr.bf16.gmra.mrb[16].mxu1 %v6981_v57 }
 0x476   :  { %8881 = vmatprep.mubr.bf16.mxu1 %v6982_v36 }
 0x477   :  { %v13105_v17 = vpop.f32.mrb[120].mxu0 }
 0x478   :  { %v13107_v27 = vpop.f32.mrb[121].mxu0 }
 0x479   :  { %v13109_v62 = vpop.f32.mrb[122].mxu0 }
 0x47a   :  { %v13111_v8 = vpop.f32.mrb[123].mxu0 }
 0x47d   :  { %8882 = vmatmul.mubr.bf16.gmra.mrb[20].mxu1 %v6983_v15 }
 0x47e   :  { %8885 = vmatprep.mubr.bf16.mxu1 %v6984_v46 }
 0x47f   :  { %v13113_v44 = vpop.f32.mrb[124].mxu0 }
 0x480   :  { %v13115_v45 = vpop.f32.mrb[125].mxu0 }
 0x481   :  { %v13117_v40 = vpop.f32.mrb[126].mxu0 }
 0x482   :  { %v13119_v2 = vpop.f32.mrb[127].mxu0 }
 0x485   :  { %8886 = vmatmul.mubr.bf16.gmra.mrb[24].mxu1 %v6985_v63 }
 0x487   :  { %v13121_v47 = vpop.f32.mrb[128].mxu0 }
 0x488   :  { %v13123_v20 = vpop.f32.mrb[129].mxu0 }
 0x489   :  { %v13125_v24 = vpop.f32.mrb[130].mxu0 }
 0x48a   :  { %v13127_v18 = vpop.f32.mrb[131].mxu0 }
 0x48f   :  { %v13129_v54 = vpop.f32.mrb[132].mxu0 }
 0x490   :  { %v13131_v22 = vpop.f32.mrb[133].mxu0 }
 0x491   :  { %v13133_v31 = vpop.f32.mrb[134].mxu0 }
 0x492   :  { %v13135_v37 = vpop.f32.mrb[135].mxu0 }
 0x497   :  { %v8595_v39 = vpop.f32.mrb[100].mxu0 }
 0x498   :  { %v4644_v38 = vpop.f32.mrb[101].mxu0 }
 0x499   :  { %v8596_v23 = vpop.f32.mrb[102].mxu0 }
 0x49a   :  { %v4647_v56 = vpop.f32.mrb[103].mxu0 }
 0x49f   :  { %v8599_v1 = vpop.f32.mrb[104].mxu0 }
 0x4a0   :  { %v4660_v35 = vpop.f32.mrb[105].mxu0 }
 0x4a1   :  { %v8600_v55 = vpop.f32.mrb[106].mxu0 }
 0x4a2   :  { %v4663_v28 = vpop.f32.mrb[107].mxu0 }
 0x518   :  { %v8855_v42 = vpop.f32.mrb[28].mxu1 }
 0x519   :  { %v8912_v52 = vadd.f32 %v8855_v42, %v8595_v39  ;;  %v7085_v48 = vpop.f32.mrb[29].mxu1 }
 0x51a   :  { %v8913_v26 = vadd.f32 %v7085_v48, %v4644_v38  ;;  %v8856_v59 = vpop.f32.mrb[30].mxu1 }
 0x51b   :  { %v8914_v21 = vadd.f32 %v8856_v59, %v8596_v23  ;;  %v7088_v34 = vpop.f32.mrb[31].mxu1  ;;  %v13146_v36 = vadd.f32 %v8912_v52, %v13140_v51 }
 0x51c   :  { %v13143_v57 = vadd.f32 %v8913_v26, %v13140_v51  ;;  %v8915_v41 = vadd.f32 %v7088_v34, %v4647_v56 }
 0x51d   :  { %v13153_v32 = vadd.f32 %v8914_v21, %v13140_v51  ;;  %v13861_v4 = vmax.f32 %v13146_v36, 0.0 }
 0x51e   :  { %v13149_v9 = vadd.f32 %v8915_v41, %v13140_v51  ;;  %v13863_v29 = vmax.f32 %v13143_v57, 0.0 }
 0x51f   :  { %v13860_v13 = vmax.f32 %v13153_v32, 0.0 }
 0x520   :  { %v13862_v5 = vmax.f32 %v13149_v9, 0.0  ;;  %v8859_v12 = vpop.f32.mrb[32].mxu1 }
 0x521   :  { %v8916_v11 = vadd.f32 %v8859_v12, %v8599_v1  ;;  %v7101_v25 = vpop.f32.mrb[33].mxu1 }
 0x522   :  { %v7343_v49 = vadd.f32 %v13862_v5, %v13863_v29  ;;  %v8917_v15 = vadd.f32 %v7101_v25, %v4660_v35  ;;  %v8860_v61 = vpop.f32.mrb[34].mxu1 }
 0x523   :  { %v8918_v46 = vadd.f32 %v8860_v61, %v8600_v55  ;;  %v7104_v60 = vpop.f32.mrb[35].mxu1  ;;  %v13168_v39 = vadd.f32 %v8916_v11, %v13140_v51 }
 0x524   :  { %v7344_v14 = vadd.f32 %v7343_v49, %v13861_v4  ;;  %v13165_v3 = vadd.f32 %v8917_v15, %v13140_v51  ;;  %v8919_v63 = vadd.f32 %v7104_v60, %v4663_v28 }
 0x525   :  { %v13179_v35 = vadd.f32 %v8918_v46, %v13140_v51  ;;  %v13857_v48 = vmax.f32 %v13168_v39, 0.0 }
 0x526   :  { %v13859_v38 = vmax.f32 %v13165_v3, 0.0  ;;  %v7345_v23 = vadd.f32 %v7344_v14, %v13860_v13  ;;  %v13174_v56 = vadd.f32 %v8919_v63, %v13140_v51 }
 0x527   :  { %v13856_v12 = vmax.f32 %v13179_v35, 0.0 }
 0x528   :  { %v7346_v1 = vadd.f32 %v7345_v23, %v13859_v38  ;;  %v13858_v55 = vmax.f32 %v13174_v56, 0.0  ;;  %v8863_v28 = vpop.f32.mrb[0].mxu1 }
 0x529   :  { %v8920_v42 = vadd.f32 %v8863_v28, %v13081_v16  ;;  %v7117_v52 = vpop.f32.mrb[1].mxu1 }
 0x52a   :  { %v7347_v26 = vadd.f32 %v7346_v1, %v13858_v55  ;;  %v8921_v59 = vadd.f32 %v7117_v52, %v13083_v19  ;;  %v8864_v21 = vpop.f32.mrb[2].mxu1 }
 0x52b   :  { %v8922_v34 = vadd.f32 %v8864_v21, %v13085_v0  ;;  %v7120_v41 = vpop.f32.mrb[3].mxu1  ;;  %v13196_v49 = vadd.f32 %v8920_v42, %v13140_v51 }
 0x52c   :  { %v7348_v11 = vadd.f32 %v7347_v26, %v13857_v48  ;;  %v13192_v25 = vadd.f32 %v8921_v59, %v13140_v51  ;;  %v8923_v16 = vadd.f32 %v7120_v41, %v13087_v43 }
 0x52d   :  { %v13207_v46 = vadd.f32 %v8922_v34, %v13140_v51  ;;  %v13853_v23 = vmax.f32 %v13196_v49, 0.0 }
 0x52e   :  { %v13855_v15 = vmax.f32 %v13192_v25, 0.0  ;;  %v7349_v19 = vadd.f32 %v7348_v11, %v13856_v12  ;;  %v13202_v0 = vadd.f32 %v8923_v16, %v13140_v51 }
 0x52f   :  { %v13852_v59 = vmax.f32 %v13207_v46, 0.0 }
 0x530   :  { %v7350_v61 = vadd.f32 %v7349_v19, %v13855_v15  ;;  %v13854_v60 = vmax.f32 %v13202_v0, 0.0  ;;  %v8867_v43 = vpop.f32.mrb[4].mxu1 }
 0x531   :  { %v8924_v14 = vadd.f32 %v8867_v43, %v13089_v6  ;;  %v7133_v63 = vpop.f32.mrb[5].mxu1 }
 0x532   :  { %v7351_v1 = vadd.f32 %v7350_v61, %v13854_v60  ;;  %v8925_v28 = vadd.f32 %v7133_v63, %v13091_v50  ;;  %v8868_v42 = vpop.f32.mrb[6].mxu1 }
 0x533   :  { %v8926_v52 = vadd.f32 %v8868_v42, %v13093_v53  ;;  %v7136_v26 = vpop.f32.mrb[7].mxu1  ;;  %v13224_v41 = vadd.f32 %v8924_v14, %v13140_v51 }
 0x534   :  { %v7352_v21 = vadd.f32 %v7351_v1, %v13853_v23  ;;  %v13220_v34 = vadd.f32 %v8925_v28, %v13140_v51  ;;  %v8927_v6 = vadd.f32 %v7136_v26, %v13095_v33 }
 0x535   :  { %v13235_v19 = vadd.f32 %v8926_v52, %v13140_v51  ;;  %v7321_v63 = vmax.f32 %v13224_v41, 0.0 }
 0x536   :  { %v13851_v11 = vmax.f32 %v13220_v34, 0.0  ;;  %v7353_v50 = vadd.f32 %v7352_v21, %v13852_v59  ;;  %v13230_v53 = vadd.f32 %v8927_v6, %v13140_v51 }
 0x537   :  { %v7322_v52 = vmax.f32 %v13235_v19, 0.0 }
 0x538   :  { %v7354_v16 = vadd.f32 %v7353_v50, %v13851_v11  ;;  %v7320_v61 = vmax.f32 %v13230_v53, 0.0  ;;  %v8871_v33 = vpop.f32.mrb[8].mxu1 }
 0x539   :  { %v8928_v43 = vadd.f32 %v8871_v33, %v13097_v10  ;;  %v7149_v14 = vpop.f32.mrb[9].mxu1 }
 0x53a   :  { %v7355_v1 = vadd.f32 %v7354_v16, %v7320_v61  ;;  %v8929_v28 = vadd.f32 %v7149_v14, %v13099_v7  ;;  %v8872_v42 = vpop.f32.mrb[10].mxu1 }
 0x53b   :  { %v8930_v26 = vadd.f32 %v8872_v42, %v13101_v58  ;;  %v7152_v21 = vpop.f32.mrb[11].mxu1  ;;  %v13252_v33 = vadd.f32 %v8928_v43, %v13140_v51 }
 0x53c   :  { %v7356_v6 = vadd.f32 %v7355_v1, %v7321_v63  ;;  %v13248_v50 = vadd.f32 %v8929_v28, %v13140_v51  ;;  %v8931_v10 = vadd.f32 %v7152_v21, %v13103_v30 }
 0x53d   :  { %v13263_v1 = vadd.f32 %v8930_v26, %v13140_v51  ;;  %v7325_v21 = vmax.f32 %v13252_v33, 0.0 }
 0x53e   :  { %v7323_v16 = vmax.f32 %v13248_v50, 0.0  ;;  %v7357_v7 = vadd.f32 %v7356_v6, %v7322_v52  ;;  %v13258_v58 = vadd.f32 %v8931_v10, %v13140_v51 }
 0x53f   :  { %v7326_v26 = vmax.f32 %v13263_v1, 0.0 }
 0x540   :  { %v7358_v14 = vadd.f32 %v7357_v7, %v7323_v16  ;;  %v7324_v28 = vmax.f32 %v13258_v58, 0.0  ;;  %v8875_v30 = vpop.f32.mrb[12].mxu1 }
 0x541   :  { %v8932_v43 = vadd.f32 %v8875_v30, %v13105_v17  ;;  %v7165_v42 = vpop.f32.mrb[13].mxu1 }
 0x542   :  { %v7359_v6 = vadd.f32 %v7358_v14, %v7324_v28  ;;  %v8933_v10 = vadd.f32 %v7165_v42, %v13107_v27  ;;  %v8876_v11 = vpop.f32.mrb[14].mxu1 }
 0x543   :  { %v8934_v59 = vadd.f32 %v8876_v11, %v13109_v62  ;;  %v7168_v7 = vpop.f32.mrb[15].mxu1  ;;  %v13280_v30 = vadd.f32 %v8932_v43, %v13140_v51 }
 0x544   :  { %v7360_v23 = vadd.f32 %v7359_v6, %v7325_v21  ;;  %v13276_v60 = vadd.f32 %v8933_v10, %v13140_v51  ;;  %v8935_v17 = vadd.f32 %v7168_v7, %v13111_v8 }
 0x545   :  { %v13291_v42 = vadd.f32 %v8934_v59, %v13140_v51  ;;  %v13867_v7 = vmax.f32 %v13280_v30, 0.0 }
 0x546   :  { %v7327_v14 = vmax.f32 %v13276_v60, 0.0  ;;  %v7361_v27 = vadd.f32 %v7360_v23, %v7326_v26  ;;  %v13286_v62 = vadd.f32 %v8935_v17, %v13140_v51 }
 0x547   :  { %v13866_v59 = vmax.f32 %v13291_v42, 0.0  ;;  %v14111_v33 = vmax.f32 %v13291_v42, 0.0 }
 0x548   :  { %v7362_v11 = vadd.f32 %v7361_v27, %v7327_v14  ;;  %v13868_v6 = vmax.f32 %v13286_v62, 0.0  ;;  %v8879_v8 = vpop.f32.mrb[16].mxu1 }
 0x549   :  { %v8936_v43 = vadd.f32 %v8879_v8, %v13113_v44  ;;  %v7181_v10 = vpop.f32.mrb[17].mxu1 }
 0x54a   :  { %v7363_v23 = vadd.f32 %v7362_v11, %v13868_v6  ;;  %v8937_v17 = vadd.f32 %v7181_v10, %v13115_v45  ;;  %v8880_v15 = vpop.f32.mrb[18].mxu1 }
 0x54b   :  { %v8938_v12 = vadd.f32 %v8880_v15, %v13117_v40  ;;  %v7184_v27 = vpop.f32.mrb[19].mxu1  ;;  %v13308_v8 = vadd.f32 %v8936_v43, %v13140_v51 }
 0x54c   :  { %v7364_v48 = vadd.f32 %v7363_v23, %v13867_v7  ;;  %v13304_v55 = vadd.f32 %v8937_v17, %v13140_v51  ;;  %v8939_v44 = vadd.f32 %v7184_v27, %v13119_v2 }
 0x54d   :  { %v13319_v10 = vadd.f32 %v8938_v12, %v13140_v51  ;;  %v7333_v27 = vmax.f32 %v13308_v8, 0.0 }
 0x54e   :  { %v13864_v11 = vmax.f32 %v13304_v55, 0.0  ;;  %v7365_v45 = vadd.f32 %v7364_v48, %v13866_v59  ;;  %v13314_v40 = vadd.f32 %v8939_v44, %v13140_v51  ;;  %v14112_v58 = vmax.f32 %v13304_v55, 0.0 }
 0x54f   :  { %v7334_v12 = vmax.f32 %v13319_v10, 0.0 }
 0x550   :  { %v7366_v15 = vadd.f32 %v7365_v45, %v13864_v11  ;;  %v13865_v23 = vmax.f32 %v13314_v40, 0.0  ;;  %v8883_v2 = vpop.f32.mrb[20].mxu1  ;;  %v14113_v60 = vmax.f32 %v13314_v40, 0.0 }
 0x551   :  { %v8940_v43 = vadd.f32 %v8883_v2, %v13121_v47  ;;  %v7197_v17 = vpop.f32.mrb[21].mxu1 }
 0x552   :  { %v7367_v48 = vadd.f32 %v7366_v15, %v13865_v23  ;;  %v8941_v44 = vadd.f32 %v7197_v17, %v13123_v20  ;;  %v8884_v38 = vpop.f32.mrb[22].mxu1 }
 0x553   :  { %v8942_v13 = vadd.f32 %v8884_v38, %v13125_v24  ;;  %v7200_v45 = vpop.f32.mrb[23].mxu1  ;;  %v7301_v47 = vadd.f32 %v8940_v43, %v13140_v51 }
 0x554   :  { %v7368_v4 = vadd.f32 %v7367_v48, %v7333_v27  ;;  %v7299_v5 = vadd.f32 %v8941_v44, %v13140_v51  ;;  %v8943_v29 = vadd.f32 %v7200_v45, %v13127_v18 }
 0x555   :  { %v7302_v20 = vadd.f32 %v8942_v13, %v13140_v51  ;;  %v7337_v10 = vmax.f32 %v7301_v47, 0.0 }
 0x556   :  { %v7335_v2 = vmax.f32 %v7299_v5, 0.0  ;;  %v7369_v8 = vadd.f32 %v7368_v4, %v7334_v12  ;;  %v7300_v11 = vadd.f32 %v8943_v29, %v13140_v51 }
 0x557   :  { %v7338_v5 = vmax.f32 %v7302_v20, 0.0 }
 0x558   :  { %v7370_v15 = vadd.f32 %v7369_v8, %v7335_v2  ;;  %v7336_v17 = vmax.f32 %v7300_v11, 0.0  ;;  %v8887_v23 = vpop.f32.mrb[24].mxu1 }
 0x559   :  { %v8944_v24 = vadd.f32 %v8887_v23, %v13129_v54  ;;  %v7213_v38 = vpop.f32.mrb[25].mxu1 }
 0x55a   :  { %v7371_v48 = vadd.f32 %v7370_v15, %v7336_v17  ;;  %v8945_v44 = vadd.f32 %v7213_v38, %v13131_v22  ;;  %v8888_v59 = vpop.f32.mrb[26].mxu1 }
 0x55b   :  { %v8946_v18 = vadd.f32 %v8888_v59, %v13133_v31  ;;  %v7216_v43 = vpop.f32.mrb[27].mxu1  ;;  %v7305_v13 = vadd.f32 %v8944_v24, %v13140_v51 }
 0x55c   :  { %v7372_v4 = vadd.f32 %v7371_v48, %v7337_v10  ;;  %v7303_v29 = vadd.f32 %v8945_v44, %v13140_v51  ;;  %v8947_v45 = vadd.f32 %v7216_v43, %v13135_v37 }
 0x55d   :  { %v7306_v47 = vadd.f32 %v8946_v18, %v13140_v51  ;;  %v7341_v15 = vmax.f32 %v7305_v13, 0.0 }
 0x55e   :  { %v7339_v11 = vmax.f32 %v7303_v29, 0.0  ;;  %v7373_v8 = vadd.f32 %v7372_v4, %v7338_v5  ;;  %v7304_v54 = vadd.f32 %v8947_v45, %v13140_v51 }
 0x55f   :  { %v7342_v31 = vmax.f32 %v7306_v47, 0.0  ;;  %v14119_v47 = vmax.f32 %v13174_v56, 0.0 }
 0x560   :  { %v7374_v23 = vadd.f32 %v7373_v8, %v7339_v11  ;;  %v7340_v22 = vmax.f32 %v7304_v54, 0.0  ;;  %v14117_v8 = vmax.f32 %v13153_v32, 0.0  ;;  %v14120_v32 = vmax.f32 %v13168_v39, 0.0 }
 0x562   :  { %v7375_v38 = vadd.f32 %v7374_v23, %v7340_v22 }
 0x564   :  { %v7376_v59 = vadd.f32 %v7375_v38, %v7341_v15 }
 0x566   :  { %v7377_v20 = vadd.f32 %v7376_v59, %v7342_v31 }
 0x568   :  { %v7378_v48 = vrot.slane %v7377_v20, 4 }
 0x56a   :  { %v7379_v7 = vadd.f32 %v7378_v48, %v7377_v20  ;;  %v14121_v20 = vmax.f32 %v13179_v35, 0.0 }
 0x56c   :  { %v7380_v44 = vrot.slane %v7379_v7, 2 }
 0x56e   :  { %v7381_v6 = vadd.f32 %v7380_v44, %v7379_v7 }
 0x570   :  { %v7382_v37 = vrot.slane %v7381_v6, 1 }
 0x572   :  { %v7383_v43 = vadd.f32 %v7382_v37, %v7381_v6  ;;  %v14122_v37 = vmax.f32 %v13192_v25, 0.0 }
 0x574   :  { %v7384_v24 = vmul.f32 0.0034722222, %v7383_v43 }
 0x576   :  { %v13344_v4 = vsub.f32 %v7320_v61, %v7384_v24  ;;  %v13348_v51 = vsub.f32 %v7321_v63, %v7384_v24  ;;  %v13352_v18 = vsub.f32 %v7322_v52, %v7384_v24  ;;  %v13356_v29 = vsub.f32 %v7323_v16, %v7384_v24 }
 0x577   :  { %v13360_v6 = vsub.f32 %v7324_v28, %v7384_v24  ;;  %v13364_v53 = vsub.f32 %v7325_v21, %v7384_v24  ;;  %v13368_v41 = vsub.f32 %v7326_v26, %v7384_v24  ;;  %v13372_v19 = vsub.f32 %v7327_v14, %v7384_v24 }
 0x578   :  { %v14109_v61 = vmax.f32 %v13286_v62, 0.0  ;;  %v14110_v52 = vmax.f32 %v13280_v30, 0.0  ;;  %v13384_v16 = vsub.f32 %v14111_v33, %v7384_v24  ;;  %v13388_v1 = vsub.f32 %v14112_v58, %v7384_v24 }
 0x579   :  { %v13392_v28 = vsub.f32 %v14113_v60, %v7384_v24  ;;  %v13394_v21 = vsub.f32 %v7333_v27, %v7384_v24  ;;  %v13396_v26 = vsub.f32 %v7334_v12, %v7384_v24  ;;  %v13398_v14 = vsub.f32 %v7335_v2, %v7384_v24 }
 0x57a   :  { %v13376_v63 = vsub.f32 %v14109_v61, %v7384_v24  ;;  %v13380_v50 = vsub.f32 %v14110_v52, %v7384_v24  ;;  %v13400_v30 = vsub.f32 %v7336_v17, %v7384_v24  ;;  %v13402_v62 = vsub.f32 %v7337_v10, %v7384_v24 }
 0x57b   :  { %v13404_v42 = vsub.f32 %v7338_v5, %v7384_v24  ;;  %v13406_v7 = vsub.f32 %v7339_v11, %v7384_v24  ;;  %v13408_v55 = vsub.f32 %v7340_v22, %v7384_v24  ;;  %v13410_v45 = vsub.f32 %v7341_v15, %v7384_v24 }
 0x57c   :  { %v13412_v40 = vsub.f32 %v7342_v31, %v7384_v24  ;;  %v14114_v27 = vmax.f32 %v13143_v57, 0.0  ;;  %v14115_v2 = vmax.f32 %v13149_v9, 0.0  ;;  %v14116_v10 = vmax.f32 %v13146_v36, 0.0 }
 0x57d   :  { %v13432_v54 = vsub.f32 %v14117_v8, %v7384_v24  ;;  %v14118_v57 = vmax.f32 %v13165_v3, 0.0  ;;  %v13442_v22 = vsub.f32 %v14119_v47, %v7384_v24  ;;  %v13448_v31 = vsub.f32 %v14120_v32, %v7384_v24 }
 0x57e   :  { %v13416_v12 = vsub.f32 %v14114_v27, %v7384_v24  ;;  %v13420_v17 = vsub.f32 %v14115_v2, %v7384_v24  ;;  %v13424_v5 = vsub.f32 %v14116_v10, %v7384_v24  ;;  %v13454_v48 = vsub.f32 %v14121_v20, %v7384_v24 }
 0x57f   :  { %v13436_v23 = vsub.f32 %v14118_v57, %v7384_v24  ;;  %v7424_v15 = vmul.f32 %v13432_v54, %v13432_v54  ;;  %v7426_v56 = vmul.f32 %v13442_v22, %v13442_v22  ;;  %v13460_v43 = vsub.f32 %v14122_v37, %v7384_v24 }
 0x580   :  { %v7421_v13 = vmul.f32 %v13416_v12, %v13416_v12  ;;  %v7422_v11 = vmul.f32 %v13420_v17, %v13420_v17  ;;  %v7423_v9 = vmul.f32 %v13424_v5, %v13424_v5  ;;  %v7427_v39 = vmul.f32 %v13448_v31, %v13448_v31 }
 0x581   :  { %v7425_v3 = vmul.f32 %v13436_v23, %v13436_v23  ;;  %v14123_v52 = vmax.f32 %v13202_v0, 0.0  ;;  %v7428_v35 = vmul.f32 %v13454_v48, %v13454_v48  ;;  %v14124_v60 = vmax.f32 %v13196_v49, 0.0 }
 0x582   :  { %v7457_v36 = vadd.f32 %v7422_v11, %v7421_v13  ;;  %v7429_v25 = vmul.f32 %v13460_v43, %v13460_v43  ;;  %v14125_v10 = vmax.f32 %v13207_v46, 0.0  ;;  %v14126_v8 = vmax.f32 %v13220_v34, 0.0 }
 0x583   :  { %v13466_v33 = vsub.f32 %v14123_v52, %v7384_v24  ;;  %v13472_v27 = vsub.f32 %v14124_v60, %v7384_v24  ;;  %v7435_v34 = vmul.f32 %v13348_v51, %v13348_v51  ;;  %v7437_v20 = vmul.f32 %v13356_v29, %v13356_v29 }
 0x584   :  { %v7458_v38 = vadd.f32 %v7457_v36, %v7423_v9  ;;  %v13478_v13 = vsub.f32 %v14125_v10, %v7384_v24  ;;  %v13484_v57 = vsub.f32 %v14126_v8, %v7384_v24  ;;  %v7440_v52 = vmul.f32 %v13368_v41, %v13368_v41 }
 0x585   :  { %v7430_v0 = vmul.f32 %v13466_v33, %v13466_v33  ;;  %v7431_v49 = vmul.f32 %v13472_v27, %v13472_v27  ;;  %v7443_v10 = vmul.f32 %v13380_v50, %v13380_v50 }
 0x586   :  { %v7459_v59 = vadd.f32 %v7458_v38, %v7424_v15  ;;  %v7432_v36 = vmul.f32 %v13478_v13, %v13478_v13  ;;  %v7433_v46 = vmul.f32 %v13484_v57, %v13484_v57  ;;  %v7434_v38 = vmul.f32 %v13344_v4, %v13344_v4 }
 0x588   :  { %v7460_v44 = vadd.f32 %v7459_v59, %v7425_v3  ;;  %v7436_v3 = vmul.f32 %v13352_v18, %v13352_v18 }
 0x58a   :  { %v7461_v61 = vadd.f32 %v7460_v44, %v7426_v56  ;;  %v7438_v44 = vmul.f32 %v13360_v6, %v13360_v6 }
 0x58c   :  { %v7462_v58 = vadd.f32 %v7461_v61, %v7427_v39  ;;  %v7439_v39 = vmul.f32 %v13364_v53, %v13364_v53 }
 0x58e   :  { %v7463_v2 = vadd.f32 %v7462_v58, %v7428_v35  ;;  %v7441_v58 = vmul.f32 %v13372_v19, %v13372_v19 }
 0x590   :  { %v7464_v11 = vadd.f32 %v7463_v2, %v7429_v25  ;;  %v7442_v25 = vmul.f32 %v13376_v63, %v13376_v63 }
 0x592   :  { %v7465_v9 = vadd.f32 %v7464_v11, %v7430_v0  ;;  %v7444_v11 = vmul.f32 %v13384_v16, %v13384_v16 }
 0x594   :  { %v7466_v47 = vadd.f32 %v7465_v9, %v7431_v49  ;;  %v7445_v49 = vmul.f32 %v13388_v1, %v13388_v1 }
 0x596   :  { %v7467_v15 = vadd.f32 %v7466_v47, %v7432_v36  ;;  %v7446_v36 = vmul.f32 %v13392_v28, %v13392_v28 }
 0x598   :  { %v7468_v32 = vadd.f32 %v7467_v15, %v7433_v46  ;;  %v7447_v46 = vmul.f32 %v13394_v21, %v13394_v21 }
 0x59a   :  { %v7469_v24 = vadd.f32 %v7468_v32, %v7434_v38  ;;  %v7448_v38 = vmul.f32 %v13396_v26, %v13396_v26 }
 0x59c   :  { %v7470_v59 = vadd.f32 %v7469_v24, %v7435_v34  ;;  %v7449_v34 = vmul.f32 %v13398_v14, %v13398_v14 }
 0x59e   :  { %v7471_v56 = vadd.f32 %v7470_v59, %v7436_v3  ;;  %v7450_v3 = vmul.f32 %v13400_v30, %v13400_v30 }
 0x5a0   :  { %v7472_v37 = vadd.f32 %v7471_v56, %v7437_v20  ;;  %v7451_v20 = vmul.f32 %v13402_v62, %v13402_v62 }
 0x5a2   :  { %v7473_v61 = vadd.f32 %v7472_v37, %v7438_v44  ;;  %v7452_v44 = vmul.f32 %v13404_v42, %v13404_v42 }
 0x5a4   :  { %v7474_v35 = vadd.f32 %v7473_v61, %v7439_v39  ;;  %v7453_v39 = vmul.f32 %v13406_v7, %v13406_v7 }
 0x5a6   :  { %v7475_v60 = vadd.f32 %v7474_v35, %v7440_v52  ;;  %v7454_v52 = vmul.f32 %v13408_v55, %v13408_v55 }
 0x5a8   :  { %v7476_v2 = vadd.f32 %v7475_v60, %v7441_v58  ;;  %v7455_v58 = vmul.f32 %v13410_v45, %v13410_v45 }
 0x5aa   :  { %v7477_v0 = vadd.f32 %v7476_v2, %v7442_v25  ;;  %v7456_v25 = vmul.f32 %v13412_v40, %v13412_v40 }
 0x5ac   :  { %v7478_v8 = vadd.f32 %v7477_v0, %v7443_v10 }
 0x5ae   :  { %v7479_v9 = vadd.f32 %v7478_v8, %v7444_v11 }
 0x5b0   :  { %v7480_v47 = vadd.f32 %v7479_v9, %v7445_v49 }
 0x5b2   :  { %v7481_v15 = vadd.f32 %v7480_v47, %v7446_v36 }
 0x5b4   :  { %v7482_v32 = vadd.f32 %v7481_v15, %v7447_v46 }
 0x5b6   :  { %v7483_v24 = vadd.f32 %v7482_v32, %v7448_v38 }
 0x5b8   :  { %v7484_v59 = vadd.f32 %v7483_v24, %v7449_v34 }
 0x5ba   :  { %v7485_v56 = vadd.f32 %v7484_v59, %v7450_v3  ;;  %v13551_v3 = vld [vmem:[%s13713_s7] ss:$0 sm:$0xff] }
 0x5bc   :  { %v7486_v37 = vadd.f32 %v7485_v56, %v7451_v20 }
 0x5be   :  { %v7487_v61 = vadd.f32 %v7486_v37, %v7452_v44 }
 0x5c0   :  { %v7488_v35 = vadd.f32 %v7487_v61, %v7453_v39 }
 0x5c2   :  { %v7489_v60 = vadd.f32 %v7488_v35, %v7454_v52 }
 0x5c4   :  { %v7490_v2 = vadd.f32 %v7489_v60, %v7455_v58 }
 0x5c6   :  { %v7491_v10 = vadd.f32 %v7490_v2, %v7456_v25 }
 0x5c8   :  { %v7492_v0 = vrot.slane %v7491_v10, 4 }
 0x5ca   :  { %v7493_v11 = vadd.f32 %v7492_v0, %v7491_v10 }
 0x5cc   :  { %v7494_v8 = vrot.slane %v7493_v11, 2 }
 0x5ce   :  { %v7495_v49 = vadd.f32 %v7494_v8, %v7493_v11 }
 0x5d0   :  { %v7496_v9 = vrot.slane %v7495_v49, 1 }
 0x5d2   :  { %v7497_v36 = vadd.f32 %v7496_v9, %v7495_v49 }
 0x5d4   :  { %v7498_v47 = vmul.f32 0.0034722222, %v7497_v36 }
 0x5d6   :  { %v7499_v46 = vadd.f32 1e-05, %v7498_v47 }
 0x5d8   :  { %9524 = vrsqrt.f32 %v7499_v46 }
 0x5e2   :  { %v13538_v15 = vpop.eup %9524 }
 0x5e3   :  { %v7519_v38 = vmul.f32 %v13538_v15, %v13364_v53  ;;  %v7520_v32 = vmul.f32 %v13538_v15, %v13368_v41  ;;  %v7521_v34 = vmul.f32 %v13538_v15, %v13372_v19  ;;  %v7522_v24 = vmul.f32 %v13538_v15, %v13376_v63 }
 0x5e4   :  { %v7523_v59 = vmul.f32 %v13538_v15, %v13380_v50  ;;  %v7524_v53 = vmul.f32 %v13538_v15, %v13384_v16  ;;  %v7525_v41 = vmul.f32 %v13538_v15, %v13388_v1  ;;  %v7526_v19 = vmul.f32 %v13538_v15, %v13392_v28 }
 0x5e5   :  { %v7527_v63 = vmul.f32 %v13538_v15, %v13394_v21  ;;  %v7528_v20 = vmul.f32 %v13538_v15, %v13396_v26  ;;  %v7529_v56 = vmul.f32 %v13538_v15, %v13398_v14  ;;  %v7530_v50 = vmul.f32 %v13538_v15, %v13400_v30  ;;  %v13582_v14 = vld [vmem:[%s13714_s8] ss:$0 sm:$0xff]  ;;  %s9614_s8 = smov [#allocation3]  }
 0x5e6   :  { %v7531_v16 = vmul.f32 %v13538_v15, %v13402_v62  ;;  %v7532_v1 = vmul.f32 %v13538_v15, %v13404_v42  ;;  %v7533_v28 = vmul.f32 %v13538_v15, %v13406_v7  ;;  %v7534_v21 = vmul.f32 %v13538_v15, %v13408_v55  ;;  %s7715_s16 = sshll.u32 %s9614_s8, 4  ;;  %s7716_s16 = int_to_ptr.vmem [resolvable:$true] %s7715_s16 }
 0x5e7   :  { %v7562_v26 = vmul.f32 %v13551_v3, %v7519_v38  ;;  %v7563_v44 = vmul.f32 %v13551_v3, %v7520_v32  ;;  %v7564_v30 = vmul.f32 %v13551_v3, %v7521_v34  ;;  %v7565_v7 = vmul.f32 %v13551_v3, %v7522_v24  ;;  %s9585_s17 = scalar_lea.vmem %s7716_s16, 32  ;;  %p9590_p1 = scmp.lt.s32.totalorder %s7716_s16, %s7716_s16 }
 0x5e8   :  { %v7566_v37 = vmul.f32 %v13551_v3, %v7523_v59  ;;  %v7567_v52 = vmul.f32 %v13551_v3, %v7524_v53  ;;  %v7568_v58 = vmul.f32 %v13551_v3, %v7525_v41  ;;  %v7569_v10 = vmul.f32 %v13551_v3, %v7526_v19  ;;  %p9586_p0 = scmp.ne.s32.totalorder %s7716_s16, %s9585_s17  ;;  %p9591_p2 = scmp.lt.s32.totalorder %s9585_s17, %s9585_s17 }
 0x5e9   :  { %v7605_v62 = vadd.f32 %v13582_v14, %v7562_v26  ;;  %v7606_v42 = vadd.f32 %v13582_v14, %v7563_v44  ;;  %v7607_v55 = vadd.f32 %v13582_v14, %v7564_v30  ;;  %v7608_v35 = vadd.f32 %v13582_v14, %v7565_v7 }
 0x5ea   :  { %v7609_v60 = vadd.f32 %v13582_v14, %v7566_v37  ;;  %v7610_v0 = vadd.f32 %v13582_v14, %v7567_v52  ;;  %v7570_v49 = vmul.f32 %v13551_v3, %v7527_v63  ;;  %v7611_v9 = vadd.f32 %v13582_v14, %v7568_v58  ;;  %p9592_p3 = por %p9591_p2, %p9590_p1 }
 0x5eb   :  { %v7641_v39 = vmax.f32 %v7605_v62, 0.0  ;;  %v7642_v61 = vmax.f32 %v7606_v42, 0.0  ;;  %v7643_v25 = vmax.f32 %v7607_v55, 0.0  ;;  %v7644_v11 = vmax.f32 %v7608_v35, 0.0 }
 0x5ec   :  { %v7645_v36 = vmax.f32 %v7609_v60, 0.0  ;;  %v7535_v46 = vmul.f32 %v13538_v15, %v13410_v45  ;;  %v7536_v38 = vmul.f32 %v13538_v15, %v13412_v40  ;;  %v7571_v32 = vmul.f32 %v13551_v3, %v7528_v20  ;;  %p9593_p4 = pnand %p9592_p3, %p9586_p0 }
 0x5ed   :  { %v7682_v2 = vadd.f32 %v7642_v61, %v7641_v39  ;;  %v7612_v34 = vadd.f32 %v13582_v14, %v7569_v10  ;;  %v7646_v24 = vmax.f32 %v7610_v0, 0.0  ;;  %v7501_v53 = vmul.f32 %v13538_v15, %v13416_v12 }
 0x5ee   :  { %v7502_v41 = vmul.f32 %v13538_v15, %v13420_v17  ;;  %v7572_v19 = vmul.f32 %v13551_v3, %v7529_v56  ;;  %v7613_v63 = vadd.f32 %v13582_v14, %v7570_v49  ;;  %v7647_v45 = vmax.f32 %v7611_v9, 0.0 }
 0x5ef   :  { %v7683_v8 = vadd.f32 %v7682_v2, %v7643_v25  ;;  %v7573_v40 = vmul.f32 %v13551_v3, %v7530_v50  ;;  %v7614_v20 = vadd.f32 %v13582_v14, %v7571_v32  ;;  %v7648_v44 = vmax.f32 %v7612_v34, 0.0 }
 0x5f0   :  { %v7503_v62 = vmul.f32 %v13538_v15, %v13424_v5  ;;  %v7544_v12 = vmul.f32 %v13551_v3, %v7501_v53  ;;  %v7545_v42 = vmul.f32 %v13551_v3, %v7502_v41  ;;  %v7574_v17 = vmul.f32 %v13551_v3, %v7531_v16 }
 0x5f1   :  { %v7684_v47 = vadd.f32 %v7683_v8, %v7644_v11  ;;  %v7615_v56 = vadd.f32 %v13582_v14, %v7572_v19  ;;  %v7649_v7 = vmax.f32 %v7613_v63, 0.0  ;;  %v7504_v50 = vmul.f32 %v13538_v15, %v13432_v54 }
 0x5f2   :  { %v7575_v55 = vmul.f32 %v13551_v3, %v7532_v1  ;;  %v7616_v39 = vadd.f32 %v13582_v14, %v7573_v40  ;;  %v7650_v61 = vmax.f32 %v7614_v20, 0.0  ;;  %v7505_v5 = vmul.f32 %v13538_v15, %v13436_v23 }
 0x5f3   :  { %v7685_v59 = vadd.f32 %v7684_v47, %v7645_v36  ;;  %v7546_v35 = vmul.f32 %v13551_v3, %v7503_v62  ;;  %v7587_v16 = vadd.f32 %v13582_v14, %v7544_v12  ;;  %v7588_v58 = vadd.f32 %v13582_v14, %v7545_v42 }
 0x5f4   :  { %v7576_v60 = vmul.f32 %v13551_v3, %v7533_v28  ;;  %v7617_v25 = vadd.f32 %v13582_v14, %v7574_v17  ;;  %v7651_v54 = vmax.f32 %v7615_v56, 0.0  ;;  %v7577_v1 = vmul.f32 %v13551_v3, %v7534_v21 }
 0x5f5   :  { %v7686_v26 = vadd.f32 %v7685_v59, %v7646_v24  ;;  %v7506_v10 = vmul.f32 %v13538_v15, %v13442_v22  ;;  %v7547_v0 = vmul.f32 %v13551_v3, %v7504_v50  ;;  %v7618_v23 = vadd.f32 %v13582_v14, %v7575_v55 }
 0x5f6   :  { %v7652_v11 = vmax.f32 %v7616_v39, 0.0  ;;  %v7507_v49 = vmul.f32 %v13538_v15, %v13448_v31  ;;  %v7548_v28 = vmul.f32 %v13551_v3, %v7505_v5  ;;  %v7589_v9 = vadd.f32 %v13582_v14, %v7546_v35 }
 0x5f7   :  { %v7687_v30 = vadd.f32 %v7686_v26, %v7647_v45  ;;  %v7623_v36 = vmax.f32 %v7587_v16, 0.0  ;;  %v7624_v47 = vmax.f32 %v7588_v58, 0.0  ;;  %v7619_v21 = vadd.f32 %v13582_v14, %v7576_v60 }
 0x5f8   :  { %v7653_v32 = vmax.f32 %v7617_v25, 0.0  ;;  %v7578_v22 = vmul.f32 %v13551_v3, %v7535_v46  ;;  %v7620_v24 = vadd.f32 %v13582_v14, %v7577_v1  ;;  %v7508_v59 = vmul.f32 %v13538_v15, %v13454_v48 }
 0x5f9   :  { %v7688_v37 = vadd.f32 %v7687_v30, %v7648_v44  ;;  %v7549_v53 = vmul.f32 %v13551_v3, %v7506_v10  ;;  %v7590_v31 = vadd.f32 %v13582_v14, %v7547_v0  ;;  %v7654_v41 = vmax.f32 %v7618_v23, 0.0 }
 0x5fa   :  { %v7509_v63 = vmul.f32 %v13538_v15, %v13460_v43  ;;  %v7579_v45 = vmul.f32 %v13551_v3, %v7536_v38  ;;  %v7550_v26 = vmul.f32 %v13551_v3, %v7507_v49  ;;  %v7591_v46 = vadd.f32 %v13582_v14, %v7548_v28 }
 0x5fb   :  { %v7689_v52 = vadd.f32 %v7688_v37, %v7649_v7  ;;  %v7625_v40 = vmax.f32 %v7589_v9, 0.0  ;;  %v7659_v20 = vadd.f32 %v7624_v47, %v7623_v36  ;;  %v7655_v44 = vmax.f32 %v7619_v21, 0.0 }
 0x5fc   :  { %v7510_v48 = vmul.f32 %v13538_v15, %v13466_v33  ;;  %v7621_v62 = vadd.f32 %v13582_v14, %v7578_v22  ;;  %v7551_v12 = vmul.f32 %v13551_v3, %v7508_v59  ;;  %v7592_v42 = vadd.f32 %v13582_v14, %v7549_v53 }
 0x5fd   :  { %v7690_v2 = vadd.f32 %v7689_v52, %v7650_v61  ;;  %v7626_v43 = vmax.f32 %v7590_v31, 0.0  ;;  %v7660_v17 = vadd.f32 %v7659_v20, %v7625_v40  ;;  %v7656_v38 = vmax.f32 %v7620_v24, 0.0 }
 0x5fe   :  { %v7511_v7 = vmul.f32 %v13538_v15, %v13472_v27  ;;  %v7622_v37 = vadd.f32 %v13582_v14, %v7579_v45  ;;  %v7552_v50 = vmul.f32 %v13551_v3, %v7509_v63  ;;  %v7593_v55 = vadd.f32 %v13582_v14, %v7550_v26 }
 0x5ff   :  { %v7691_v8 = vadd.f32 %v7690_v2, %v7651_v54  ;;  %v7627_v33 = vmax.f32 %v7591_v46, 0.0  ;;  %v7661_v39 = vadd.f32 %v7660_v17, %v7626_v43  ;;  %v7512_v52 = vmul.f32 %v13538_v15, %v13478_v13 }
 0x600   :  { %v7657_v5 = vmax.f32 %v7621_v62, 0.0  ;;  %v7553_v35 = vmul.f32 %v13551_v3, %v7510_v48  ;;  %v7594_v16 = vadd.f32 %v13582_v14, %v7551_v12  ;;  %v7628_v58 = vmax.f32 %v7592_v42, 0.0 }
 0x601   :  { %v7692_v34 = vadd.f32 %v7691_v8, %v7652_v11  ;;  %v7662_v60 = vadd.f32 %v7661_v39, %v7627_v33  ;;  %v7513_v27 = vmul.f32 %v13538_v15, %v13484_v57  ;;  %v7658_v25 = vmax.f32 %v7622_v37, 0.0 }
 0x602   :  { %v7554_v2 = vmul.f32 %v13551_v3, %v7511_v7  ;;  %v7595_v1 = vadd.f32 %v13582_v14, %v7552_v50  ;;  %v7629_v10 = vmax.f32 %v7593_v55, 0.0  ;;  %v7514_v13 = vmul.f32 %v13538_v15, %v13344_v4 }
 0x603   :  { %v7693_v19 = vadd.f32 %v7692_v34, %v7653_v32  ;;  %v7663_v0 = vadd.f32 %v7662_v60, %v7628_v58  ;;  %v7555_v11 = vmul.f32 %v13551_v3, %v7512_v52  ;;  %v7596_v8 = vadd.f32 %v13582_v14, %v7553_v35 }
 0x604   :  { %v7630_v49 = vmax.f32 %v7594_v16, 0.0  ;;  %v7515_v57 = vmul.f32 %v13538_v15, %v13348_v51  ;;  %v7556_v9 = vmul.f32 %v13551_v3, %v7513_v27  ;;  %v7597_v36 = vadd.f32 %v13582_v14, %v7554_v2 }
 0x605   :  { %v7694_v30 = vadd.f32 %v7693_v19, %v7654_v41  ;;  %v7664_v28 = vadd.f32 %v7663_v0, %v7629_v10  ;;  %v7631_v47 = vmax.f32 %v7595_v1, 0.0  ;;  %v7516_v32 = vmul.f32 %v13538_v15, %v13352_v18 }
 0x606   :  { %v7557_v4 = vmul.f32 %v13551_v3, %v7514_v13  ;;  %v7598_v34 = vadd.f32 %v13582_v14, %v7555_v11  ;;  %v7632_v22 = vmax.f32 %v7596_v8, 0.0  ;;  %v7517_v59 = vmul.f32 %v13538_v15, %v13356_v29 }
 0x607   :  { %v7695_v56 = vadd.f32 %v7694_v30, %v7655_v44  ;;  %v7665_v21 = vadd.f32 %v7664_v28, %v7630_v49  ;;  %v7558_v51 = vmul.f32 %v13551_v3, %v7515_v57  ;;  %v7599_v53 = vadd.f32 %v13582_v14, %v7556_v9 }
 0x608   :  { %v7633_v31 = vmax.f32 %v7597_v36, 0.0  ;;  %v7518_v19 = vmul.f32 %v13538_v15, %v13360_v6  ;;  %v7559_v18 = vmul.f32 %v13551_v3, %v7516_v32  ;;  %v7600_v63 = vadd.f32 %v13582_v14, %v7557_v4 }
 0x609   :  { %v7696_v61 = vadd.f32 %v7695_v56, %v7656_v38  ;;  %v7666_v24 = vadd.f32 %v7665_v21, %v7631_v47  ;;  %v7634_v45 = vmax.f32 %v7598_v34, 0.0  ;;  %v7560_v46 = vmul.f32 %v13551_v3, %v7517_v59 }
 0x60a   :  { %v7601_v40 = vadd.f32 %v13582_v14, %v7558_v51  ;;  %v7635_v29 = vmax.f32 %v7599_v53, 0.0  ;;  %v7561_v44 = vmul.f32 %v13551_v3, %v7518_v19  ;;  %v7602_v30 = vadd.f32 %v13582_v14, %v7559_v18 }
 0x60b   :  { %v7697_v54 = vadd.f32 %v7696_v61, %v7657_v5  ;;  %v7667_v41 = vadd.f32 %v7666_v24, %v7632_v22  ;;  %v7636_v48 = vmax.f32 %v7600_v63, 0.0  ;;  %v7603_v6 = vadd.f32 %v13582_v14, %v7560_v46 }
 0x60c   :  { %v7637_v15 = vmax.f32 %v7601_v40, 0.0  ;;  %v7604_v43 = vadd.f32 %v13582_v14, %v7561_v44  ;;  %v7638_v17 = vmax.f32 %v7602_v30, 0.0 }
 0x60d   :  { %v7698_v23 = vadd.f32 %v7697_v54, %v7658_v25  ;;  %v7668_v26 = vadd.f32 %v7667_v41, %v7633_v31  ;;  %v7639_v7 = vmax.f32 %v7603_v6, 0.0 }
 0x60e   :  { %v7640_v50 = vmax.f32 %v7604_v43, 0.0 }
 0x60f   :  { %v7669_v20 = vadd.f32 %v7668_v26, %v7634_v45  ;;  %v7699_v12 = vrot.slane %v7698_v23, 4 }
 0x611   :  { %v7670_v62 = vadd.f32 %v7669_v20, %v7635_v29  ;;  %v7700_v56 = vadd.f32 %v7699_v12, %v7698_v23 }
 0x613   :  { %v7671_v42 = vadd.f32 %v7670_v62, %v7636_v48  ;;  %v7701_v33 = vrot.slane %v7700_v56, 2 }
 0x615   :  { %v7672_v38 = vadd.f32 %v7671_v42, %v7637_v15  ;;  %v7702_v61 = vadd.f32 %v7701_v33, %v7700_v56 }
 0x617   :  { %v7673_v37 = vadd.f32 %v7672_v38, %v7638_v17  ;;  %v7703_v35 = vrot.slane %v7702_v61, 1 }
 0x619   :  { %v7674_v55 = vadd.f32 %v7673_v37, %v7639_v7  ;;  %v7704_v60 = vadd.f32 %v7703_v35, %v7702_v61 }
 0x61b   :  { %v7675_v3 = vadd.f32 %v7674_v55, %v7640_v50 }
 0x61d   :  { %v7676_v39 = vrot.slane %v7675_v3, 4 }
 0x61f   :  { %v7677_v52 = vadd.f32 %v7676_v39, %v7675_v3 }
 0x621   :  { %v7678_v5 = vrot.slane %v7677_v52, 2 }
 0x623   :  { %v7679_v16 = vadd.f32 %v7678_v5, %v7677_v52 }
 0x625   :  { %v7680_v58 = vrot.slane %v7679_v16, 1 }
 0x627   :  { %v7681_v27 = vadd.f32 %v7680_v58, %v7679_v16 }
 0x629   :  { %v7706_v14 = vsel %vm7705_vm5, %v7681_v27, %v7704_v60 }
 0x62a   :  { %v7707_v25 = vmul.f32 0.0069444445, %v7706_v14 }
 0x62c   :  { %7708 = vst [vmem:[#allocation3] sm:$0x3] %v7707_v25 }
 0x62d   :  { %9596 = shalt.err (!%p9593_p4)
}
 0x62e   :  { %s9597_s19 = scalar_lea.hbm %s13715_s9, 32 }
 0x62f   :  { %p9598_p5 = scmp.ne.s32.totalorder %s13715_s9, %s9597_s19  ;;  %p9601_p6 = scmp.lt.u32.totalorder %s9597_s19, %s13715_s9 }
 0x631   :  { %p9603_p7 = pnand %p9601_p6, %p9598_p5 }
 0x633   :  { %9606 = shalt.err (!%p9603_p7)
}
 0x634   :  { %7718 = dma.vmem_to_hbm [thread:$0]  %s7716_s16, 32, %s13715_s9, [#allocation4]  }
 0x635   :  { %9607 = dma.done.wait [#allocation4], 32  }
 0x636   :  { %9608 = vsyncadd [#allocation4], 4294967264 }
 0x637   :  { %7722 = vsyncpa [#allocation4], 1 }

</bundles_post_ra>
